<compile_context>
chip_gen: v7x
topology: tpu7x:2x2x1
jax: 0.10.0
libtpu: 0.0.40
codegen_flags: <defaults>
</compile_context>

<pallas_src>
import jax
import jax.numpy as jnp
import numpy as np
from jax.experimental import pallas as pl
from jax.experimental.pallas import tpu as pltpu  # noqa: F401  (no TPU-specific params needed here)

HIDDEN_SIZE = 32      # stands in for args.hidden_size
LSTM_LAYERS = 2       # stands in for args.lstm_layers
LN_EPS = 1e-5
D_IN = 4
D_OUT = 4

# Row layout of the packed `vecs` slab (lane width = 4*H):
_V_B1, _V_G1, _V_BE1, _V_B2A, _V_G2, _V_BE2, _V_B2B = range(7)
_V_LSTM = 7            # rows 7 .. 7+L-1          : fused LSTM biases (gate order i,f,o,g)
                       # rows 7+L .. 7+L+B*T-1    : batch-major -> time-major permutation matrix
# Row layout of the packed `w_misc` slab (lane width = H):
_W1_OFF = 0            # rows 0..7                : w1 (4 real rows, zero-padded to 8)
_W2A_OFF = 8           # rows 8..8+H-1            : w2a
                       # rows 8+H..8+2H-1         : w2b (cols 0..3 real, zero-padded)


def _layernorm(y, gamma, beta):
    mu = jnp.mean(y, axis=-1, keepdims=True)
    var = jnp.mean((y - mu) ** 2, axis=-1, keepdims=True)
    return (y - mu) * jax.lax.rsqrt(var + LN_EPS) * gamma + beta


# ----------------------------------------------------------------------------
# Fused kernel: linear_1 -> wavefront LSTM stack -> linear_2 head
# ----------------------------------------------------------------------------
def _make_fused_kernel(B, T, H, L):
    N = B * T
    w2b_off = _W2A_OFF + H
    v_perm = _V_LSTM + L

    def kernel(x_ref, wl_ref, wm_ref, vec_ref, o_ref):
        f32 = jnp.float32
        vec = vec_ref[...]                                    # (7+L+N, 4H)
        wm = wm_ref[...]                                      # (8+2H, H)

        w1 = wm[_W1_OFF:_W1_OFF + D_IN, :]                    # (D_IN, H)
        w2a = wm[_W2A_OFF:_W2A_OFF + H, :]                    # (H, H)
        w2b = wm[w2b_off:w2b_off + H, 0:D_OUT]                # (H, D_OUT)

        b1 = vec[_V_B1:_V_B1 + 1, 0:H]
        g1 = vec[_V_G1:_V_G1 + 1, 0:H]
        be1 = vec[_V_BE1:_V_BE1 + 1, 0:H]
        b2a = vec[_V_B2A:_V_B2A + 1, 0:H]
        g2 = vec[_V_G2:_V_G2 + 1, 0:H]
        be2 = vec[_V_BE2:_V_BE2 + 1, 0:H]
        b2b = vec[_V_B2B:_V_B2B + 1, 0:D_OUT]
        perm = vec[v_perm:v_perm + N, 0:N]                    # (N, N) 0/1 permutation

        # ---- batch-major -> time-major row re-order as one tiny MXU op
        #      (exact: perm is 0/1; off the recurrence critical path).
        x_tm = jnp.dot(perm, x_ref[...],
                       preferred_element_type=f32)            # (T*B, D_IN), row = t*B + b

        # ---- linear_1 + LayerNorm, one batched matmul over all T*B rows
        y1 = _layernorm(jnp.dot(x_tm, w1, preferred_element_type=f32) + b1,
                        g1, be1)                              # (T*B, H)

        # ---- per-layer LSTM weights (pre-transposed, gate order [i,f,o,g])
        wih, whh, bias = [], [], []
        for l in range(L):
            base = 2 * H * l
            wih.append(wl_ref[base:base + H, :])              # (H, 4H)
            whh.append(wl_ref[base + H:base + 2 * H, :])      # (H, 4H)
            bias.append(vec[_V_LSTM + l:_V_LSTM + l + 1, :])  # (1, 4H)

        # ---- layer-0 input projection hoisted off the serial recurrence
        xp0 = jnp.dot(y1, wih[0], preferred_element_type=f32) + bias[0]   # (T*B, 4H)

        # ---- wavefront LSTM: macro-step s runs layer l at timestep t = s - l.
        #      Layers are visited in decreasing l so h[l-1] still holds exactly
        #      the step-t output layer l needs (produced at macro-step s-1).
        #      All h/c state is register-resident (no scratch stores).
        h = [jnp.zeros((B, H), f32) for _ in range(L)]
        c = [jnp.zeros((B, H), f32) for _ in range(L)]
        outs = [None] * T
        for s in range(T + L - 1):
            for l in range(L - 1, -1, -1):
                t = s - l
                if t < 0 or t >= T:
                    continue
                if l == 0:
                    gates = xp0[t * B:(t + 1) * B, :] + jnp.dot(
                        h[0], whh[0], preferred_element_type=f32)         # (B, 4H)
                else:
                    gates = (jnp.dot(h[l - 1], wih[l], preferred_element_type=f32)
                             + jnp.dot(h[l], whh[l], preferred_element_type=f32)
                             + bias[l])
                # Gate order [i, f, o, g]: sigmoid over 3H lanes, tanh over H.
                sig = jax.nn.sigmoid(gates[:, 0:3 * H])
                g_g = jnp.tanh(gates[:, 3 * H:4 * H])
                c[l] = sig[:, H:2 * H] * c[l] + sig[:, 0:H] * g_g
                h[l] = sig[:, 2 * H:3 * H] * jnp.tanh(c[l])
                if l == L - 1:
                    outs[t] = h[l]

        # ---- linear_2 head, per timestep (inputs already in vregs); terminal
        #      lane-sliced stores into the (B, T*D_OUT) output slab, so the
        #      wrapper only needs a free reshape to (B, T, D_OUT).
        for t in range(T):
            z = _layernorm(jnp.dot(outs[t], w2a, preferred_element_type=f32) + b2a,
                           g2, be2)
            z = z * jnp.tanh(jax.nn.softplus(z))              # Mish(x) = x*tanh(softplus(x))
            o_t = jnp.dot(z, w2b, preferred_element_type=f32) + b2b       # (B, D_OUT)
            o_ref[:, t * D_OUT:(t + 1) * D_OUT] = o_t.astype(o_ref.dtype)

    return kernel


def _full_spec(shape):
    zeros = (0,) * len(shape)
    return pl.BlockSpec(shape, lambda: zeros)


@jax.jit
def model_forward(x, packed):
    B, T, d_in = x.shape
    wl = packed["w_lstm"]            # (L*2H, 4H)
    wm = packed["w_misc"]            # (8+2H, H)
    vec = packed["vecs"]             # (7+L+B*T, 4H)
    H = wl.shape[1] // 4
    L = wl.shape[0] // (2 * H)

    x2d = x.reshape(B * T, d_in)     # free reshape (no transpose, no copy)
    out2d = pl.pallas_call(
        _make_fused_kernel(B, T, H, L),
        out_shape=jax.ShapeDtypeStruct((B, T * D_OUT), jnp.float32),
        in_specs=[_full_spec((B * T, d_in)),
                  _full_spec(tuple(wl.shape)),
                  _full_spec(tuple(wm.shape)),
                  _full_spec(tuple(vec.shape))],
        out_specs=_full_spec((B, T * D_OUT)),
    )(x2d, wl, wm, vec)
    return out2d.reshape(B, T, D_OUT)  # free reshape (row-major compatible)


# ----------------------------------------------------------------------------
# Parameter construction (deterministic, synthetic, PyTorch gate order i,f,g,o)
# ----------------------------------------------------------------------------
def init_params(key, hidden=HIDDEN_SIZE, num_layers=LSTM_LAYERS):
    keys = jax.random.split(key, 8 + 4 * num_layers)
    ki = iter(keys)
    s = 0.1
    p = {}
    p["w1"] = jax.random.normal(next(ki), (D_IN, hidden), jnp.float32) * s
    p["b1"] = jax.random.normal(next(ki), (1, hidden), jnp.float32) * s
    p["ln1_g"] = jnp.ones((1, hidden), jnp.float32)
    p["ln1_b"] = jnp.zeros((1, hidden), jnp.float32)
    wihs, whhs, bs = [], [], []
    for _ in range(num_layers):
        wih = jax.random.normal(next(ki), (hidden, 4 * hidden), jnp.float32) * s
        whh = jax.random.normal(next(ki), (hidden, 4 * hidden), jnp.float32) * s
        bih = jax.random.normal(next(ki), (1, 4 * hidden), jnp.float32) * s
        bhh = jax.random.normal(next(ki), (1, 4 * hidden), jnp.float32) * s
        wihs.append(wih)
        whhs.append(whh)
        bs.append(bih + bhh)                                  # biases fused
    p["wih"] = jnp.stack(wihs)                                # (L, H, 4H)
    p["whh"] = jnp.stack(whhs)                                # (L, H, 4H)
    p["blstm"] = jnp.stack(bs)                                # (L, 1, 4H)
    p["w2a"] = jax.random.normal(next(ki), (hidden, hidden), jnp.float32) * s
    p["b2a"] = jax.random.normal(next(ki), (1, hidden), jnp.float32) * s
    p["ln2_g"] = jnp.ones((1, hidden), jnp.float32)
    p["ln2_b"] = jnp.zeros((1, hidden), jnp.float32)
    p["w2b"] = jax.random.normal(next(ki), (hidden, D_OUT), jnp.float32) * s
    p["b2b"] = jax.random.normal(next(ki), (1, D_OUT), jnp.float32) * s
    return p


def pack_params(p, B, T):
    """Pack the 14 canonical params into 3 consolidated kernel inputs (one-time,
    host side).  Re-orders LSTM gate columns [i,f,g,o] -> [i,f,o,g] and appends
    the batch-major -> time-major row-permutation matrix to the vector slab."""
    H = p["w1"].shape[1]
    L = p["wih"].shape[0]
    N = B * T
    assert N <= 4 * H, "permutation matrix must fit the 4H-wide vecs slab"

    perm_cols = np.concatenate([np.arange(0, 2 * H),
                                np.arange(3 * H, 4 * H),
                                np.arange(2 * H, 3 * H)])

    w_lstm = np.concatenate(
        [np.concatenate([np.asarray(p["wih"][l])[:, perm_cols],
                         np.asarray(p["whh"][l])[:, perm_cols]], axis=0)
         for l in range(L)], axis=0).astype(np.float32)        # (L*2H, 4H)

    w1_pad = np.zeros((_W2A_OFF, H), np.float32)
    w1_pad[:D_IN, :] = np.asarray(p["w1"])
    w2b_pad = np.zeros((H, H), np.float32)
    w2b_pad[:, :D_OUT] = np.asarray(p["w2b"])
    w_misc = np.concatenate([w1_pad, np.asarray(p["w2a"]), w2b_pad],
                            axis=0).astype(np.float32)         # (8+2H, H)

    def row(v):
        r = np.zeros((1, 4 * H), np.float32)
        v = np.asarray(v).reshape(1, -1)
        r[:, :v.shape[1]] = v
        return r

    vec_rows = [row(p["b1"]), row(p["ln1_g"]), row(p["ln1_b"]),
                row(p["b2a"]), row(p["ln2_g"]), row(p["ln2_b"]), row(p["b2b"])]
    for l in range(L):
        vec_rows.append(row(np.asarray(p["blstm"][l])[:, perm_cols]))
    # time-major row i = t*B + b  reads  batch-major row b*T + t
    P = np.zeros((N, 4 * H), np.float32)
    for t in range(T):
        for b in range(B):
            P[t * B + b, b * T + t] = 1.0
    vec_rows.append(P)
    vecs = np.concatenate(vec_rows, axis=0).astype(np.float32)  # (7+L+N, 4H)

    return {"w_lstm": jnp.asarray(w_lstm),
            "w_misc": jnp.asarray(w_misc),
            "vecs": jnp.asarray(vecs)}


# ----------------------------------------------------------------------------
# Pure-JAX reference (PyTorch semantics, original gate order) for sanity check
# ----------------------------------------------------------------------------
def _ref_forward(x, p):
    def ln(y, g, b):
        mu = jnp.mean(y, -1, keepdims=True)
        var = jnp.mean((y - mu) ** 2, -1, keepdims=True)
        return (y - mu) * jax.lax.rsqrt(var + LN_EPS) * g + b

    B, T, _ = x.shape
    H = p["w1"].shape[1]
    h_seq = ln(x @ p["w1"] + p["b1"], p["ln1_g"], p["ln1_b"])     # (B,T,H)
    for l in range(p["wih"].shape[0]):
        wih, whh, bias = p["wih"][l], p["whh"][l], p["blstm"][l]
        hs = jnp.zeros((B, H), jnp.float32)
        cs = jnp.zeros((B, H), jnp.float32)
        outs = []
        for t in range(T):
            g = h_seq[:, t, :] @ wih + hs @ whh + bias
            i_g = jax.nn.sigmoid(g[:, 0 * H:1 * H])
            f_g = jax.nn.sigmoid(g[:, 1 * H:2 * H])
            g_g = jnp.tanh(g[:, 2 * H:3 * H])
            o_g = jax.nn.sigmoid(g[:, 3 * H:4 * H])
            cs = f_g * cs + i_g * g_g
            hs = o_g * jnp.tanh(cs)
            outs.append(hs)
        h_seq = jnp.stack(outs, axis=1)
    z = ln(h_seq @ p["w2a"] + p["b2a"], p["ln2_g"], p["ln2_b"])
    z = z * jnp.tanh(jax.nn.softplus(z))
    return z @ p["w2b"] + p["b2b"]


if __name__ == "__main__":
    B, T = 2, 8
    key = jax.random.PRNGKey(0)
    k_x, k_p = jax.random.split(key)
    x = jax.random.normal(k_x, (B, T, D_IN), jnp.float32)
    params = init_params(k_p)
    packed = pack_params(params, B, T)

    out = jax.block_until_ready(model_forward(x, packed))

    ref = _ref_forward(x, params)
    np.testing.assert_allclose(np.asarray(out), np.asarray(ref), rtol=1e-4, atol=1e-4)
    assert out.shape == (B, T, D_OUT)
    print("KERNEL_OK")
</pallas_src>

<mosaic_0001>
module attributes {stable_mosaic.version = 11 : i64} {
  func.func @kernel(%arg0: memref<16x4xf32, #tpu.memory_space<vmem>>, %arg1: memref<128x128xf32, #tpu.memory_space<vmem>>, %arg2: memref<72x32xf32, #tpu.memory_space<vmem>>, %arg3: memref<25x128xf32, #tpu.memory_space<vmem>>, %arg4: memref<2x32xf32, #tpu.memory_space<vmem>>) attributes {dimension_semantics = [], scalar_prefetch = 0 : i64, scratch_operands = 0 : i64, tpu.core_type = #tpu.core_type<tc>} {
    %c0 = arith.constant 0 : index
    %c0_0 = arith.constant 0 : index
    %0 = vector.load %arg3[%c0, %c0_0] : memref<25x128xf32, #tpu.memory_space<vmem>>, vector<25x128xf32>
    %c0_1 = arith.constant 0 : index
    %c0_2 = arith.constant 0 : index
    %1 = vector.load %arg2[%c0_1, %c0_2] : memref<72x32xf32, #tpu.memory_space<vmem>>, vector<72x32xf32>
    %2 = vector.extract_strided_slice %1 {offsets = [0, 0], sizes = [4, 32], strides = [1, 1]} : vector<72x32xf32> to vector<4x32xf32>
    %3 = vector.extract_strided_slice %1 {offsets = [8, 0], sizes = [32, 32], strides = [1, 1]} : vector<72x32xf32> to vector<32x32xf32>
    %4 = vector.extract_strided_slice %1 {offsets = [40, 0], sizes = [32, 4], strides = [1, 1]} : vector<72x32xf32> to vector<32x4xf32>
    %5 = vector.extract_strided_slice %0 {offsets = [0, 0], sizes = [1, 32], strides = [1, 1]} : vector<25x128xf32> to vector<1x32xf32>
    %6 = vector.extract_strided_slice %0 {offsets = [1, 0], sizes = [1, 32], strides = [1, 1]} : vector<25x128xf32> to vector<1x32xf32>
    %7 = vector.extract_strided_slice %0 {offsets = [2, 0], sizes = [1, 32], strides = [1, 1]} : vector<25x128xf32> to vector<1x32xf32>
    %8 = vector.extract_strided_slice %0 {offsets = [3, 0], sizes = [1, 32], strides = [1, 1]} : vector<25x128xf32> to vector<1x32xf32>
    %9 = vector.extract_strided_slice %0 {offsets = [4, 0], sizes = [1, 32], strides = [1, 1]} : vector<25x128xf32> to vector<1x32xf32>
    %10 = vector.extract_strided_slice %0 {offsets = [5, 0], sizes = [1, 32], strides = [1, 1]} : vector<25x128xf32> to vector<1x32xf32>
    %11 = vector.extract_strided_slice %0 {offsets = [6, 0], sizes = [1, 4], strides = [1, 1]} : vector<25x128xf32> to vector<1x4xf32>
    %12 = vector.extract_strided_slice %0 {offsets = [9, 0], sizes = [16, 16], strides = [1, 1]} : vector<25x128xf32> to vector<16x16xf32>
    %c0_3 = arith.constant 0 : index
    %c0_4 = arith.constant 0 : index
    %13 = vector.load %arg0[%c0_3, %c0_4] : memref<16x4xf32, #tpu.memory_space<vmem>>, vector<16x4xf32>
    %cst = arith.constant dense<0.000000e+00> : vector<16x4xf32>
    %14 = tpu.matmul %12, %13, %cst {dimension_numbers = #tpu.dot_dimension_numbers<[1], [0], [0], [1], [0, 0, 1, 1], [], []>} : vector<16x16xf32>, vector<16x4xf32>, vector<16x4xf32> -> vector<16x4xf32>
    %cst_5 = arith.constant dense<0.000000e+00> : vector<16x32xf32>
    %15 = tpu.matmul %14, %2, %cst_5 {dimension_numbers = #tpu.dot_dimension_numbers<[1], [0], [0], [1], [0, 0, 1, 1], [], []>} : vector<16x4xf32>, vector<4x32xf32>, vector<16x32xf32> -> vector<16x32xf32>
    %16 = vector.broadcast %5 : vector<1x32xf32> to vector<16x32xf32>
    %17 = arith.addf %15, %16 : vector<16x32xf32>
    %cst_6 = arith.constant dense<0.000000e+00> : vector<16xf32>
    %18 = vector.multi_reduction <add>, %17, %cst_6 [1] : vector<16x32xf32> to vector<16xf32>
    %19 = vector.shape_cast %18 : vector<16xf32> to vector<16x1xf32>
    %cst_7 = arith.constant 3.200000e+01 : f32
    %20 = vector.broadcast %cst_7 : f32 to vector<16x1xf32>
    %21 = arith.divf %19, %20 : vector<16x1xf32>
    %22 = vector.broadcast %21 : vector<16x1xf32> to vector<16x32xf32>
    %23 = arith.subf %17, %22 : vector<16x32xf32>
    %24 = arith.mulf %23, %23 : vector<16x32xf32>
    %cst_8 = arith.constant dense<0.000000e+00> : vector<16xf32>
    %25 = vector.multi_reduction <add>, %24, %cst_8 [1] : vector<16x32xf32> to vector<16xf32>
    %26 = vector.shape_cast %25 : vector<16xf32> to vector<16x1xf32>
    %cst_9 = arith.constant 3.200000e+01 : f32
    %27 = vector.broadcast %cst_9 : f32 to vector<16x1xf32>
    %28 = arith.divf %26, %27 : vector<16x1xf32>
    %29 = vector.broadcast %21 : vector<16x1xf32> to vector<16x32xf32>
    %30 = arith.subf %17, %29 : vector<16x32xf32>
    %cst_10 = arith.constant 9.99999974E-6 : f32
    %31 = vector.broadcast %cst_10 : f32 to vector<16x1xf32>
    %32 = arith.addf %28, %31 : vector<16x1xf32>
    %33 = math.rsqrt %32 : vector<16x1xf32>
    %34 = vector.broadcast %33 : vector<16x1xf32> to vector<16x32xf32>
    %35 = arith.mulf %30, %34 : vector<16x32xf32>
    %36 = vector.broadcast %6 : vector<1x32xf32> to vector<16x32xf32>
    %37 = arith.mulf %35, %36 : vector<16x32xf32>
    %38 = vector.broadcast %7 : vector<1x32xf32> to vector<16x32xf32>
    %39 = arith.addf %37, %38 : vector<16x32xf32>
    %c0_11 = arith.constant 0 : index
    %c0_12 = arith.constant 0 : index
    %40 = vector.load %arg1[%c0_11, %c0_12] : memref<128x128xf32, #tpu.memory_space<vmem>>, vector<32x128xf32>
    %c32 = arith.constant 32 : index
    %c0_13 = arith.constant 0 : index
    %41 = vector.load %arg1[%c32, %c0_13] : memref<128x128xf32, #tpu.memory_space<vmem>>, vector<32x128xf32>
    %42 = vector.extract_strided_slice %0 {offsets = [7, 0], sizes = [1, 128], strides = [1, 1]} : vector<25x128xf32> to vector<1x128xf32>
    %c64 = arith.constant 64 : index
    %c0_14 = arith.constant 0 : index
    %43 = vector.load %arg1[%c64, %c0_14] : memref<128x128xf32, #tpu.memory_space<vmem>>, vector<32x128xf32>
    %c96 = arith.constant 96 : index
    %c0_15 = arith.constant 0 : index
    %44 = vector.load %arg1[%c96, %c0_15] : memref<128x128xf32, #tpu.memory_space<vmem>>, vector<32x128xf32>
    %45 = vector.extract_strided_slice %0 {offsets = [8, 0], sizes = [1, 128], strides = [1, 1]} : vector<25x128xf32> to vector<1x128xf32>
    %cst_16 = arith.constant dense<0.000000e+00> : vector<16x128xf32>
    %46 = tpu.matmul %39, %40, %cst_16 {dimension_numbers = #tpu.dot_dimension_numbers<[1], [0], [0], [1], [0, 0, 1, 1], [], []>} : vector<16x32xf32>, vector<32x128xf32>, vector<16x128xf32> -> vector<16x128xf32>
    %47 = vector.broadcast %42 : vector<1x128xf32> to vector<16x128xf32>
    %48 = arith.addf %46, %47 : vector<16x128xf32>
    %cst_17 = arith.constant 0.000000e+00 : f32
    %49 = vector.broadcast %cst_17 : f32 to vector<2x32xf32>
    %cst_18 = arith.constant 0.000000e+00 : f32
    %50 = vector.broadcast %cst_18 : f32 to vector<2x32xf32>
    %cst_19 = arith.constant 0.000000e+00 : f32
    %51 = vector.broadcast %cst_19 : f32 to vector<2x32xf32>
    %cst_20 = arith.constant 0.000000e+00 : f32
    %52 = vector.broadcast %cst_20 : f32 to vector<2x32xf32>
    %53 = vector.extract_strided_slice %48 {offsets = [0, 0], sizes = [2, 128], strides = [1, 1]} : vector<16x128xf32> to vector<2x128xf32>
    %cst_21 = arith.constant dense<0.000000e+00> : vector<2x128xf32>
    %54 = tpu.matmul %49, %41, %cst_21 {dimension_numbers = #tpu.dot_dimension_numbers<[1], [0], [0], [1], [0, 0, 1, 1], [], []>} : vector<2x32xf32>, vector<32x128xf32>, vector<2x128xf32> -> vector<2x128xf32>
    %55 = arith.addf %53, %54 : vector<2x128xf32>
    %56 = vector.extract_strided_slice %55 {offsets = [0, 0], sizes = [2, 96], strides = [1, 1]} : vector<2x128xf32> to vector<2x96xf32>
    %57 = arith.negf %56 : vector<2x96xf32>
    %58 = math.exp %57 : vector<2x96xf32>
    %cst_22 = arith.constant 1.000000e+00 : f32
    %59 = vector.broadcast %cst_22 : f32 to vector<2x96xf32>
    %60 = arith.addf %59, %58 : vector<2x96xf32>
    %61 = arith.divf %59, %60 : vector<2x96xf32>
    %62 = vector.extract_strided_slice %55 {offsets = [0, 96], sizes = [2, 32], strides = [1, 1]} : vector<2x128xf32> to vector<2x32xf32>
    %63 = math.tanh %62 : vector<2x32xf32>
    %64 = vector.extract_strided_slice %61 {offsets = [0, 32], sizes = [2, 32], strides = [1, 1]} : vector<2x96xf32> to vector<2x32xf32>
    %65 = arith.mulf %64, %51 : vector<2x32xf32>
    %66 = vector.extract_strided_slice %61 {offsets = [0, 0], sizes = [2, 32], strides = [1, 1]} : vector<2x96xf32> to vector<2x32xf32>
    %67 = arith.mulf %66, %63 : vector<2x32xf32>
    %68 = arith.addf %65, %67 : vector<2x32xf32>
    %69 = vector.extract_strided_slice %61 {offsets = [0, 64], sizes = [2, 32], strides = [1, 1]} : vector<2x96xf32> to vector<2x32xf32>
    %70 = math.tanh %68 : vector<2x32xf32>
    %71 = arith.mulf %69, %70 : vector<2x32xf32>
    %cst_23 = arith.constant dense<0.000000e+00> : vector<2x128xf32>
    %72 = tpu.matmul %71, %43, %cst_23 {dimension_numbers = #tpu.dot_dimension_numbers<[1], [0], [0], [1], [0, 0, 1, 1], [], []>} : vector<2x32xf32>, vector<32x128xf32>, vector<2x128xf32> -> vector<2x128xf32>
    %cst_24 = arith.constant dense<0.000000e+00> : vector<2x128xf32>
    %73 = tpu.matmul %50, %44, %cst_24 {dimension_numbers = #tpu.dot_dimension_numbers<[1], [0], [0], [1], [0, 0, 1, 1], [], []>} : vector<2x32xf32>, vector<32x128xf32>, vector<2x128xf32> -> vector<2x128xf32>
    %74 = arith.addf %72, %73 : vector<2x128xf32>
    %75 = vector.broadcast %45 : vector<1x128xf32> to vector<2x128xf32>
    %76 = arith.addf %74, %75 : vector<2x128xf32>
    %77 = vector.extract_strided_slice %76 {offsets = [0, 0], sizes = [2, 96], strides = [1, 1]} : vector<2x128xf32> to vector<2x96xf32>
    %78 = arith.negf %77 : vector<2x96xf32>
    %79 = math.exp %78 : vector<2x96xf32>
    %cst_25 = arith.constant 1.000000e+00 : f32
    %80 = vector.broadcast %cst_25 : f32 to vector<2x96xf32>
    %81 = arith.addf %80, %79 : vector<2x96xf32>
    %82 = arith.divf %80, %81 : vector<2x96xf32>
    %83 = vector.extract_strided_slice %76 {offsets = [0, 96], sizes = [2, 32], strides = [1, 1]} : vector<2x128xf32> to vector<2x32xf32>
    %84 = math.tanh %83 : vector<2x32xf32>
    %85 = vector.extract_strided_slice %82 {offsets = [0, 32], sizes = [2, 32], strides = [1, 1]} : vector<2x96xf32> to vector<2x32xf32>
    %86 = arith.mulf %85, %52 : vector<2x32xf32>
    %87 = vector.extract_strided_slice %82 {offsets = [0, 0], sizes = [2, 32], strides = [1, 1]} : vector<2x96xf32> to vector<2x32xf32>
    %88 = arith.mulf %87, %84 : vector<2x32xf32>
    %89 = arith.addf %86, %88 : vector<2x32xf32>
    %90 = vector.extract_strided_slice %82 {offsets = [0, 64], sizes = [2, 32], strides = [1, 1]} : vector<2x96xf32> to vector<2x32xf32>
    %91 = math.tanh %89 : vector<2x32xf32>
    %92 = arith.mulf %90, %91 : vector<2x32xf32>
    %93 = vector.extract_strided_slice %48 {offsets = [2, 0], sizes = [2, 128], strides = [1, 1]} : vector<16x128xf32> to vector<2x128xf32>
    %cst_26 = arith.constant dense<0.000000e+00> : vector<2x128xf32>
    %94 = tpu.matmul %71, %41, %cst_26 {dimension_numbers = #tpu.dot_dimension_numbers<[1], [0], [0], [1], [0, 0, 1, 1], [], []>} : vector<2x32xf32>, vector<32x128xf32>, vector<2x128xf32> -> vector<2x128xf32>
    %95 = arith.addf %93, %94 : vector<2x128xf32>
    %96 = vector.extract_strided_slice %95 {offsets = [0, 0], sizes = [2, 96], strides = [1, 1]} : vector<2x128xf32> to vector<2x96xf32>
    %97 = arith.negf %96 : vector<2x96xf32>
    %98 = math.exp %97 : vector<2x96xf32>
    %cst_27 = arith.constant 1.000000e+00 : f32
    %99 = vector.broadcast %cst_27 : f32 to vector<2x96xf32>
    %100 = arith.addf %99, %98 : vector<2x96xf32>
    %101 = arith.divf %99, %100 : vector<2x96xf32>
    %102 = vector.extract_strided_slice %95 {offsets = [0, 96], sizes = [2, 32], strides = [1, 1]} : vector<2x128xf32> to vector<2x32xf32>
    %103 = math.tanh %102 : vector<2x32xf32>
    %104 = vector.extract_strided_slice %101 {offsets = [0, 32], sizes = [2, 32], strides = [1, 1]} : vector<2x96xf32> to vector<2x32xf32>
    %105 = arith.mulf %104, %68 : vector<2x32xf32>
    %106 = vector.extract_strided_slice %101 {offsets = [0, 0], sizes = [2, 32], strides = [1, 1]} : vector<2x96xf32> to vector<2x32xf32>
    %107 = arith.mulf %106, %103 : vector<2x32xf32>
    %108 = arith.addf %105, %107 : vector<2x32xf32>
    %109 = vector.extract_strided_slice %101 {offsets = [0, 64], sizes = [2, 32], strides = [1, 1]} : vector<2x96xf32> to vector<2x32xf32>
    %110 = math.tanh %108 : vector<2x32xf32>
    %111 = arith.mulf %109, %110 : vector<2x32xf32>
    %cst_28 = arith.constant dense<0.000000e+00> : vector<2x128xf32>
    %112 = tpu.matmul %111, %43, %cst_28 {dimension_numbers = #tpu.dot_dimension_numbers<[1], [0], [0], [1], [0, 0, 1, 1], [], []>} : vector<2x32xf32>, vector<32x128xf32>, vector<2x128xf32> -> vector<2x128xf32>
    %cst_29 = arith.constant dense<0.000000e+00> : vector<2x128xf32>
    %113 = tpu.matmul %92, %44, %cst_29 {dimension_numbers = #tpu.dot_dimension_numbers<[1], [0], [0], [1], [0, 0, 1, 1], [], []>} : vector<2x32xf32>, vector<32x128xf32>, vector<2x128xf32> -> vector<2x128xf32>
    %114 = arith.addf %112, %113 : vector<2x128xf32>
    %115 = vector.broadcast %45 : vector<1x128xf32> to vector<2x128xf32>
    %116 = arith.addf %114, %115 : vector<2x128xf32>
    %117 = vector.extract_strided_slice %116 {offsets = [0, 0], sizes = [2, 96], strides = [1, 1]} : vector<2x128xf32> to vector<2x96xf32>
    %118 = arith.negf %117 : vector<2x96xf32>
    %119 = math.exp %118 : vector<2x96xf32>
    %cst_30 = arith.constant 1.000000e+00 : f32
    %120 = vector.broadcast %cst_30 : f32 to vector<2x96xf32>
    %121 = arith.addf %120, %119 : vector<2x96xf32>
    %122 = arith.divf %120, %121 : vector<2x96xf32>
    %123 = vector.extract_strided_slice %116 {offsets = [0, 96], sizes = [2, 32], strides = [1, 1]} : vector<2x128xf32> to vector<2x32xf32>
    %124 = math.tanh %123 : vector<2x32xf32>
    %125 = vector.extract_strided_slice %122 {offsets = [0, 32], sizes = [2, 32], strides = [1, 1]} : vector<2x96xf32> to vector<2x32xf32>
    %126 = arith.mulf %125, %89 : vector<2x32xf32>
    %127 = vector.extract_strided_slice %122 {offsets = [0, 0], sizes = [2, 32], strides = [1, 1]} : vector<2x96xf32> to vector<2x32xf32>
    %128 = arith.mulf %127, %124 : vector<2x32xf32>
    %129 = arith.addf %126, %128 : vector<2x32xf32>
    %130 = vector.extract_strided_slice %122 {offsets = [0, 64], sizes = [2, 32], strides = [1, 1]} : vector<2x96xf32> to vector<2x32xf32>
    %131 = math.tanh %129 : vector<2x32xf32>
    %132 = arith.mulf %130, %131 : vector<2x32xf32>
    %133 = vector.extract_strided_slice %48 {offsets = [4, 0], sizes = [2, 128], strides = [1, 1]} : vector<16x128xf32> to vector<2x128xf32>
    %cst_31 = arith.constant dense<0.000000e+00> : vector<2x128xf32>
    %134 = tpu.matmul %111, %41, %cst_31 {dimension_numbers = #tpu.dot_dimension_numbers<[1], [0], [0], [1], [0, 0, 1, 1], [], []>} : vector<2x32xf32>, vector<32x128xf32>, vector<2x128xf32> -> vector<2x128xf32>
    %135 = arith.addf %133, %134 : vector<2x128xf32>
    %136 = vector.extract_strided_slice %135 {offsets = [0, 0], sizes = [2, 96], strides = [1, 1]} : vector<2x128xf32> to vector<2x96xf32>
    %137 = arith.negf %136 : vector<2x96xf32>
    %138 = math.exp %137 : vector<2x96xf32>
    %cst_32 = arith.constant 1.000000e+00 : f32
    %139 = vector.broadcast %cst_32 : f32 to vector<2x96xf32>
    %140 = arith.addf %139, %138 : vector<2x96xf32>
    %141 = arith.divf %139, %140 : vector<2x96xf32>
    %142 = vector.extract_strided_slice %135 {offsets = [0, 96], sizes = [2, 32], strides = [1, 1]} : vector<2x128xf32> to vector<2x32xf32>
    %143 = math.tanh %142 : vector<2x32xf32>
    %144 = vector.extract_strided_slice %141 {offsets = [0, 32], sizes = [2, 32], strides = [1, 1]} : vector<2x96xf32> to vector<2x32xf32>
    %145 = arith.mulf %144, %108 : vector<2x32xf32>
    %146 = vector.extract_strided_slice %141 {offsets = [0, 0], sizes = [2, 32], strides = [1, 1]} : vector<2x96xf32> to vector<2x32xf32>
    %147 = arith.mulf %146, %143 : vector<2x32xf32>
    %148 = arith.addf %145, %147 : vector<2x32xf32>
    %149 = vector.extract_strided_slice %141 {offsets = [0, 64], sizes = [2, 32], strides = [1, 1]} : vector<2x96xf32> to vector<2x32xf32>
    %150 = math.tanh %148 : vector<2x32xf32>
    %151 = arith.mulf %149, %150 : vector<2x32xf32>
    %cst_33 = arith.constant dense<0.000000e+00> : vector<2x128xf32>
    %152 = tpu.matmul %151, %43, %cst_33 {dimension_numbers = #tpu.dot_dimension_numbers<[1], [0], [0], [1], [0, 0, 1, 1], [], []>} : vector<2x32xf32>, vector<32x128xf32>, vector<2x128xf32> -> vector<2x128xf32>
    %cst_34 = arith.constant dense<0.000000e+00> : vector<2x128xf32>
    %153 = tpu.matmul %132, %44, %cst_34 {dimension_numbers = #tpu.dot_dimension_numbers<[1], [0], [0], [1], [0, 0, 1, 1], [], []>} : vector<2x32xf32>, vector<32x128xf32>, vector<2x128xf32> -> vector<2x128xf32>
    %154 = arith.addf %152, %153 : vector<2x128xf32>
    %155 = vector.broadcast %45 : vector<1x128xf32> to vector<2x128xf32>
    %156 = arith.addf %154, %155 : vector<2x128xf32>
    %157 = vector.extract_strided_slice %156 {offsets = [0, 0], sizes = [2, 96], strides = [1, 1]} : vector<2x128xf32> to vector<2x96xf32>
    %158 = arith.negf %157 : vector<2x96xf32>
    %159 = math.exp %158 : vector<2x96xf32>
    %cst_35 = arith.constant 1.000000e+00 : f32
    %160 = vector.broadcast %cst_35 : f32 to vector<2x96xf32>
    %161 = arith.addf %160, %159 : vector<2x96xf32>
    %162 = arith.divf %160, %161 : vector<2x96xf32>
    %163 = vector.extract_strided_slice %156 {offsets = [0, 96], sizes = [2, 32], strides = [1, 1]} : vector<2x128xf32> to vector<2x32xf32>
    %164 = math.tanh %163 : vector<2x32xf32>
    %165 = vector.extract_strided_slice %162 {offsets = [0, 32], sizes = [2, 32], strides = [1, 1]} : vector<2x96xf32> to vector<2x32xf32>
    %166 = arith.mulf %165, %129 : vector<2x32xf32>
    %167 = vector.extract_strided_slice %162 {offsets = [0, 0], sizes = [2, 32], strides = [1, 1]} : vector<2x96xf32> to vector<2x32xf32>
    %168 = arith.mulf %167, %164 : vector<2x32xf32>
    %169 = arith.addf %166, %168 : vector<2x32xf32>
    %170 = vector.extract_strided_slice %162 {offsets = [0, 64], sizes = [2, 32], strides = [1, 1]} : vector<2x96xf32> to vector<2x32xf32>
    %171 = math.tanh %169 : vector<2x32xf32>
    %172 = arith.mulf %170, %171 : vector<2x32xf32>
    %173 = vector.extract_strided_slice %48 {offsets = [6, 0], sizes = [2, 128], strides = [1, 1]} : vector<16x128xf32> to vector<2x128xf32>
    %cst_36 = arith.constant dense<0.000000e+00> : vector<2x128xf32>
    %174 = tpu.matmul %151, %41, %cst_36 {dimension_numbers = #tpu.dot_dimension_numbers<[1], [0], [0], [1], [0, 0, 1, 1], [], []>} : vector<2x32xf32>, vector<32x128xf32>, vector<2x128xf32> -> vector<2x128xf32>
    %175 = arith.addf %173, %174 : vector<2x128xf32>
    %176 = vector.extract_strided_slice %175 {offsets = [0, 0], sizes = [2, 96], strides = [1, 1]} : vector<2x128xf32> to vector<2x96xf32>
    %177 = arith.negf %176 : vector<2x96xf32>
    %178 = math.exp %177 : vector<2x96xf32>
    %cst_37 = arith.constant 1.000000e+00 : f32
    %179 = vector.broadcast %cst_37 : f32 to vector<2x96xf32>
    %180 = arith.addf %179, %178 : vector<2x96xf32>
    %181 = arith.divf %179, %180 : vector<2x96xf32>
    %182 = vector.extract_strided_slice %175 {offsets = [0, 96], sizes = [2, 32], strides = [1, 1]} : vector<2x128xf32> to vector<2x32xf32>
    %183 = math.tanh %182 : vector<2x32xf32>
    %184 = vector.extract_strided_slice %181 {offsets = [0, 32], sizes = [2, 32], strides = [1, 1]} : vector<2x96xf32> to vector<2x32xf32>
    %185 = arith.mulf %184, %148 : vector<2x32xf32>
    %186 = vector.extract_strided_slice %181 {offsets = [0, 0], sizes = [2, 32], strides = [1, 1]} : vector<2x96xf32> to vector<2x32xf32>
    %187 = arith.mulf %186, %183 : vector<2x32xf32>
    %188 = arith.addf %185, %187 : vector<2x32xf32>
    %189 = vector.extract_strided_slice %181 {offsets = [0, 64], sizes = [2, 32], strides = [1, 1]} : vector<2x96xf32> to vector<2x32xf32>
    %190 = math.tanh %188 : vector<2x32xf32>
    %191 = arith.mulf %189, %190 : vector<2x32xf32>
    %cst_38 = arith.constant dense<0.000000e+00> : vector<2x128xf32>
    %192 = tpu.matmul %191, %43, %cst_38 {dimension_numbers = #tpu.dot_dimension_numbers<[1], [0], [0], [1], [0, 0, 1, 1], [], []>} : vector<2x32xf32>, vector<32x128xf32>, vector<2x128xf32> -> vector<2x128xf32>
    %cst_39 = arith.constant dense<0.000000e+00> : vector<2x128xf32>
    %193 = tpu.matmul %172, %44, %cst_39 {dimension_numbers = #tpu.dot_dimension_numbers<[1], [0], [0], [1], [0, 0, 1, 1], [], []>} : vector<2x32xf32>, vector<32x128xf32>, vector<2x128xf32> -> vector<2x128xf32>
    %194 = arith.addf %192, %193 : vector<2x128xf32>
    %195 = vector.broadcast %45 : vector<1x128xf32> to vector<2x128xf32>
    %196 = arith.addf %194, %195 : vector<2x128xf32>
    %197 = vector.extract_strided_slice %196 {offsets = [0, 0], sizes = [2, 96], strides = [1, 1]} : vector<2x128xf32> to vector<2x96xf32>
    %198 = arith.negf %197 : vector<2x96xf32>
    %199 = math.exp %198 : vector<2x96xf32>
    %cst_40 = arith.constant 1.000000e+00 : f32
    %200 = vector.broadcast %cst_40 : f32 to vector<2x96xf32>
    %201 = arith.addf %200, %199 : vector<2x96xf32>
    %202 = arith.divf %200, %201 : vector<2x96xf32>
    %203 = vector.extract_strided_slice %196 {offsets = [0, 96], sizes = [2, 32], strides = [1, 1]} : vector<2x128xf32> to vector<2x32xf32>
    %204 = math.tanh %203 : vector<2x32xf32>
    %205 = vector.extract_strided_slice %202 {offsets = [0, 32], sizes = [2, 32], strides = [1, 1]} : vector<2x96xf32> to vector<2x32xf32>
    %206 = arith.mulf %205, %169 : vector<2x32xf32>
    %207 = vector.extract_strided_slice %202 {offsets = [0, 0], sizes = [2, 32], strides = [1, 1]} : vector<2x96xf32> to vector<2x32xf32>
    %208 = arith.mulf %207, %204 : vector<2x32xf32>
    %209 = arith.addf %206, %208 : vector<2x32xf32>
    %210 = vector.extract_strided_slice %202 {offsets = [0, 64], sizes = [2, 32], strides = [1, 1]} : vector<2x96xf32> to vector<2x32xf32>
    %211 = math.tanh %209 : vector<2x32xf32>
    %212 = arith.mulf %210, %211 : vector<2x32xf32>
    %213 = vector.extract_strided_slice %48 {offsets = [8, 0], sizes = [2, 128], strides = [1, 1]} : vector<16x128xf32> to vector<2x128xf32>
    %cst_41 = arith.constant dense<0.000000e+00> : vector<2x128xf32>
    %214 = tpu.matmul %191, %41, %cst_41 {dimension_numbers = #tpu.dot_dimension_numbers<[1], [0], [0], [1], [0, 0, 1, 1], [], []>} : vector<2x32xf32>, vector<32x128xf32>, vector<2x128xf32> -> vector<2x128xf32>
    %215 = arith.addf %213, %214 : vector<2x128xf32>
    %216 = vector.extract_strided_slice %215 {offsets = [0, 0], sizes = [2, 96], strides = [1, 1]} : vector<2x128xf32> to vector<2x96xf32>
    %217 = arith.negf %216 : vector<2x96xf32>
    %218 = math.exp %217 : vector<2x96xf32>
    %cst_42 = arith.constant 1.000000e+00 : f32
    %219 = vector.broadcast %cst_42 : f32 to vector<2x96xf32>
    %220 = arith.addf %219, %218 : vector<2x96xf32>
    %221 = arith.divf %219, %220 : vector<2x96xf32>
    %222 = vector.extract_strided_slice %215 {offsets = [0, 96], sizes = [2, 32], strides = [1, 1]} : vector<2x128xf32> to vector<2x32xf32>
    %223 = math.tanh %222 : vector<2x32xf32>
    %224 = vector.extract_strided_slice %221 {offsets = [0, 32], sizes = [2, 32], strides = [1, 1]} : vector<2x96xf32> to vector<2x32xf32>
    %225 = arith.mulf %224, %188 : vector<2x32xf32>
    %226 = vector.extract_strided_slice %221 {offsets = [0, 0], sizes = [2, 32], strides = [1, 1]} : vector<2x96xf32> to vector<2x32xf32>
    %227 = arith.mulf %226, %223 : vector<2x32xf32>
    %228 = arith.addf %225, %227 : vector<2x32xf32>
    %229 = vector.extract_strided_slice %221 {offsets = [0, 64], sizes = [2, 32], strides = [1, 1]} : vector<2x96xf32> to vector<2x32xf32>
    %230 = math.tanh %228 : vector<2x32xf32>
    %231 = arith.mulf %229, %230 : vector<2x32xf32>
    %cst_43 = arith.constant dense<0.000000e+00> : vector<2x128xf32>
    %232 = tpu.matmul %231, %43, %cst_43 {dimension_numbers = #tpu.dot_dimension_numbers<[1], [0], [0], [1], [0, 0, 1, 1], [], []>} : vector<2x32xf32>, vector<32x128xf32>, vector<2x128xf32> -> vector<2x128xf32>
    %cst_44 = arith.constant dense<0.000000e+00> : vector<2x128xf32>
    %233 = tpu.matmul %212, %44, %cst_44 {dimension_numbers = #tpu.dot_dimension_numbers<[1], [0], [0], [1], [0, 0, 1, 1], [], []>} : vector<2x32xf32>, vector<32x128xf32>, vector<2x128xf32> -> vector<2x128xf32>
    %234 = arith.addf %232, %233 : vector<2x128xf32>
    %235 = vector.broadcast %45 : vector<1x128xf32> to vector<2x128xf32>
    %236 = arith.addf %234, %235 : vector<2x128xf32>
    %237 = vector.extract_strided_slice %236 {offsets = [0, 0], sizes = [2, 96], strides = [1, 1]} : vector<2x128xf32> to vector<2x96xf32>
    %238 = arith.negf %237 : vector<2x96xf32>
    %239 = math.exp %238 : vector<2x96xf32>
    %cst_45 = arith.constant 1.000000e+00 : f32
    %240 = vector.broadcast %cst_45 : f32 to vector<2x96xf32>
    %241 = arith.addf %240, %239 : vector<2x96xf32>
    %242 = arith.divf %240, %241 : vector<2x96xf32>
    %243 = vector.extract_strided_slice %236 {offsets = [0, 96], sizes = [2, 32], strides = [1, 1]} : vector<2x128xf32> to vector<2x32xf32>
    %244 = math.tanh %243 : vector<2x32xf32>
    %245 = vector.extract_strided_slice %242 {offsets = [0, 32], sizes = [2, 32], strides = [1, 1]} : vector<2x96xf32> to vector<2x32xf32>
    %246 = arith.mulf %245, %209 : vector<2x32xf32>
    %247 = vector.extract_strided_slice %242 {offsets = [0, 0], sizes = [2, 32], strides = [1, 1]} : vector<2x96xf32> to vector<2x32xf32>
    %248 = arith.mulf %247, %244 : vector<2x32xf32>
    %249 = arith.addf %246, %248 : vector<2x32xf32>
    %250 = vector.extract_strided_slice %242 {offsets = [0, 64], sizes = [2, 32], strides = [1, 1]} : vector<2x96xf32> to vector<2x32xf32>
    %251 = math.tanh %249 : vector<2x32xf32>
    %252 = arith.mulf %250, %251 : vector<2x32xf32>
    %253 = vector.extract_strided_slice %48 {offsets = [10, 0], sizes = [2, 128], strides = [1, 1]} : vector<16x128xf32> to vector<2x128xf32>
    %cst_46 = arith.constant dense<0.000000e+00> : vector<2x128xf32>
    %254 = tpu.matmul %231, %41, %cst_46 {dimension_numbers = #tpu.dot_dimension_numbers<[1], [0], [0], [1], [0, 0, 1, 1], [], []>} : vector<2x32xf32>, vector<32x128xf32>, vector<2x128xf32> -> vector<2x128xf32>
    %255 = arith.addf %253, %254 : vector<2x128xf32>
    %256 = vector.extract_strided_slice %255 {offsets = [0, 0], sizes = [2, 96], strides = [1, 1]} : vector<2x128xf32> to vector<2x96xf32>
    %257 = arith.negf %256 : vector<2x96xf32>
    %258 = math.exp %257 : vector<2x96xf32>
    %cst_47 = arith.constant 1.000000e+00 : f32
    %259 = vector.broadcast %cst_47 : f32 to vector<2x96xf32>
    %260 = arith.addf %259, %258 : vector<2x96xf32>
    %261 = arith.divf %259, %260 : vector<2x96xf32>
    %262 = vector.extract_strided_slice %255 {offsets = [0, 96], sizes = [2, 32], strides = [1, 1]} : vector<2x128xf32> to vector<2x32xf32>
    %263 = math.tanh %262 : vector<2x32xf32>
    %264 = vector.extract_strided_slice %261 {offsets = [0, 32], sizes = [2, 32], strides = [1, 1]} : vector<2x96xf32> to vector<2x32xf32>
    %265 = arith.mulf %264, %228 : vector<2x32xf32>
    %266 = vector.extract_strided_slice %261 {offsets = [0, 0], sizes = [2, 32], strides = [1, 1]} : vector<2x96xf32> to vector<2x32xf32>
    %267 = arith.mulf %266, %263 : vector<2x32xf32>
    %268 = arith.addf %265, %267 : vector<2x32xf32>
    %269 = vector.extract_strided_slice %261 {offsets = [0, 64], sizes = [2, 32], strides = [1, 1]} : vector<2x96xf32> to vector<2x32xf32>
    %270 = math.tanh %268 : vector<2x32xf32>
    %271 = arith.mulf %269, %270 : vector<2x32xf32>
    %cst_48 = arith.constant dense<0.000000e+00> : vector<2x128xf32>
    %272 = tpu.matmul %271, %43, %cst_48 {dimension_numbers = #tpu.dot_dimension_numbers<[1], [0], [0], [1], [0, 0, 1, 1], [], []>} : vector<2x32xf32>, vector<32x128xf32>, vector<2x128xf32> -> vector<2x128xf32>
    %cst_49 = arith.constant dense<0.000000e+00> : vector<2x128xf32>
    %273 = tpu.matmul %252, %44, %cst_49 {dimension_numbers = #tpu.dot_dimension_numbers<[1], [0], [0], [1], [0, 0, 1, 1], [], []>} : vector<2x32xf32>, vector<32x128xf32>, vector<2x128xf32> -> vector<2x128xf32>
    %274 = arith.addf %272, %273 : vector<2x128xf32>
    %275 = vector.broadcast %45 : vector<1x128xf32> to vector<2x128xf32>
    %276 = arith.addf %274, %275 : vector<2x128xf32>
    %277 = vector.extract_strided_slice %276 {offsets = [0, 0], sizes = [2, 96], strides = [1, 1]} : vector<2x128xf32> to vector<2x96xf32>
    %278 = arith.negf %277 : vector<2x96xf32>
    %279 = math.exp %278 : vector<2x96xf32>
    %cst_50 = arith.constant 1.000000e+00 : f32
    %280 = vector.broadcast %cst_50 : f32 to vector<2x96xf32>
    %281 = arith.addf %280, %279 : vector<2x96xf32>
    %282 = arith.divf %280, %281 : vector<2x96xf32>
    %283 = vector.extract_strided_slice %276 {offsets = [0, 96], sizes = [2, 32], strides = [1, 1]} : vector<2x128xf32> to vector<2x32xf32>
    %284 = math.tanh %283 : vector<2x32xf32>
    %285 = vector.extract_strided_slice %282 {offsets = [0, 32], sizes = [2, 32], strides = [1, 1]} : vector<2x96xf32> to vector<2x32xf32>
    %286 = arith.mulf %285, %249 : vector<2x32xf32>
    %287 = vector.extract_strided_slice %282 {offsets = [0, 0], sizes = [2, 32], strides = [1, 1]} : vector<2x96xf32> to vector<2x32xf32>
    %288 = arith.mulf %287, %284 : vector<2x32xf32>
    %289 = arith.addf %286, %288 : vector<2x32xf32>
    %290 = vector.extract_strided_slice %282 {offsets = [0, 64], sizes = [2, 32], strides = [1, 1]} : vector<2x96xf32> to vector<2x32xf32>
    %291 = math.tanh %289 : vector<2x32xf32>
    %292 = arith.mulf %290, %291 : vector<2x32xf32>
    %293 = vector.extract_strided_slice %48 {offsets = [12, 0], sizes = [2, 128], strides = [1, 1]} : vector<16x128xf32> to vector<2x128xf32>
    %cst_51 = arith.constant dense<0.000000e+00> : vector<2x128xf32>
    %294 = tpu.matmul %271, %41, %cst_51 {dimension_numbers = #tpu.dot_dimension_numbers<[1], [0], [0], [1], [0, 0, 1, 1], [], []>} : vector<2x32xf32>, vector<32x128xf32>, vector<2x128xf32> -> vector<2x128xf32>
    %295 = arith.addf %293, %294 : vector<2x128xf32>
    %296 = vector.extract_strided_slice %295 {offsets = [0, 0], sizes = [2, 96], strides = [1, 1]} : vector<2x128xf32> to vector<2x96xf32>
    %297 = arith.negf %296 : vector<2x96xf32>
    %298 = math.exp %297 : vector<2x96xf32>
    %cst_52 = arith.constant 1.000000e+00 : f32
    %299 = vector.broadcast %cst_52 : f32 to vector<2x96xf32>
    %300 = arith.addf %299, %298 : vector<2x96xf32>
    %301 = arith.divf %299, %300 : vector<2x96xf32>
    %302 = vector.extract_strided_slice %295 {offsets = [0, 96], sizes = [2, 32], strides = [1, 1]} : vector<2x128xf32> to vector<2x32xf32>
    %303 = math.tanh %302 : vector<2x32xf32>
    %304 = vector.extract_strided_slice %301 {offsets = [0, 32], sizes = [2, 32], strides = [1, 1]} : vector<2x96xf32> to vector<2x32xf32>
    %305 = arith.mulf %304, %268 : vector<2x32xf32>
    %306 = vector.extract_strided_slice %301 {offsets = [0, 0], sizes = [2, 32], strides = [1, 1]} : vector<2x96xf32> to vector<2x32xf32>
    %307 = arith.mulf %306, %303 : vector<2x32xf32>
    %308 = arith.addf %305, %307 : vector<2x32xf32>
    %309 = vector.extract_strided_slice %301 {offsets = [0, 64], sizes = [2, 32], strides = [1, 1]} : vector<2x96xf32> to vector<2x32xf32>
    %310 = math.tanh %308 : vector<2x32xf32>
    %311 = arith.mulf %309, %310 : vector<2x32xf32>
    %cst_53 = arith.constant dense<0.000000e+00> : vector<2x128xf32>
    %312 = tpu.matmul %311, %43, %cst_53 {dimension_numbers = #tpu.dot_dimension_numbers<[1], [0], [0], [1], [0, 0, 1, 1], [], []>} : vector<2x32xf32>, vector<32x128xf32>, vector<2x128xf32> -> vector<2x128xf32>
    %cst_54 = arith.constant dense<0.000000e+00> : vector<2x128xf32>
    %313 = tpu.matmul %292, %44, %cst_54 {dimension_numbers = #tpu.dot_dimension_numbers<[1], [0], [0], [1], [0, 0, 1, 1], [], []>} : vector<2x32xf32>, vector<32x128xf32>, vector<2x128xf32> -> vector<2x128xf32>
    %314 = arith.addf %312, %313 : vector<2x128xf32>
    %315 = vector.broadcast %45 : vector<1x128xf32> to vector<2x128xf32>
    %316 = arith.addf %314, %315 : vector<2x128xf32>
    %317 = vector.extract_strided_slice %316 {offsets = [0, 0], sizes = [2, 96], strides = [1, 1]} : vector<2x128xf32> to vector<2x96xf32>
    %318 = arith.negf %317 : vector<2x96xf32>
    %319 = math.exp %318 : vector<2x96xf32>
    %cst_55 = arith.constant 1.000000e+00 : f32
    %320 = vector.broadcast %cst_55 : f32 to vector<2x96xf32>
    %321 = arith.addf %320, %319 : vector<2x96xf32>
    %322 = arith.divf %320, %321 : vector<2x96xf32>
    %323 = vector.extract_strided_slice %316 {offsets = [0, 96], sizes = [2, 32], strides = [1, 1]} : vector<2x128xf32> to vector<2x32xf32>
    %324 = math.tanh %323 : vector<2x32xf32>
    %325 = vector.extract_strided_slice %322 {offsets = [0, 32], sizes = [2, 32], strides = [1, 1]} : vector<2x96xf32> to vector<2x32xf32>
    %326 = arith.mulf %325, %289 : vector<2x32xf32>
    %327 = vector.extract_strided_slice %322 {offsets = [0, 0], sizes = [2, 32], strides = [1, 1]} : vector<2x96xf32> to vector<2x32xf32>
    %328 = arith.mulf %327, %324 : vector<2x32xf32>
    %329 = arith.addf %326, %328 : vector<2x32xf32>
    %330 = vector.extract_strided_slice %322 {offsets = [0, 64], sizes = [2, 32], strides = [1, 1]} : vector<2x96xf32> to vector<2x32xf32>
    %331 = math.tanh %329 : vector<2x32xf32>
    %332 = arith.mulf %330, %331 : vector<2x32xf32>
    %333 = vector.extract_strided_slice %48 {offsets = [14, 0], sizes = [2, 128], strides = [1, 1]} : vector<16x128xf32> to vector<2x128xf32>
    %cst_56 = arith.constant dense<0.000000e+00> : vector<2x128xf32>
    %334 = tpu.matmul %311, %41, %cst_56 {dimension_numbers = #tpu.dot_dimension_numbers<[1], [0], [0], [1], [0, 0, 1, 1], [], []>} : vector<2x32xf32>, vector<32x128xf32>, vector<2x128xf32> -> vector<2x128xf32>
    %335 = arith.addf %333, %334 : vector<2x128xf32>
    %336 = vector.extract_strided_slice %335 {offsets = [0, 0], sizes = [2, 96], strides = [1, 1]} : vector<2x128xf32> to vector<2x96xf32>
    %337 = arith.negf %336 : vector<2x96xf32>
    %338 = math.exp %337 : vector<2x96xf32>
    %cst_57 = arith.constant 1.000000e+00 : f32
    %339 = vector.broadcast %cst_57 : f32 to vector<2x96xf32>
    %340 = arith.addf %339, %338 : vector<2x96xf32>
    %341 = arith.divf %339, %340 : vector<2x96xf32>
    %342 = vector.extract_strided_slice %335 {offsets = [0, 96], sizes = [2, 32], strides = [1, 1]} : vector<2x128xf32> to vector<2x32xf32>
    %343 = math.tanh %342 : vector<2x32xf32>
    %344 = vector.extract_strided_slice %341 {offsets = [0, 32], sizes = [2, 32], strides = [1, 1]} : vector<2x96xf32> to vector<2x32xf32>
    %345 = arith.mulf %344, %308 : vector<2x32xf32>
    %346 = vector.extract_strided_slice %341 {offsets = [0, 0], sizes = [2, 32], strides = [1, 1]} : vector<2x96xf32> to vector<2x32xf32>
    %347 = arith.mulf %346, %343 : vector<2x32xf32>
    %348 = arith.addf %345, %347 : vector<2x32xf32>
    %349 = vector.extract_strided_slice %341 {offsets = [0, 64], sizes = [2, 32], strides = [1, 1]} : vector<2x96xf32> to vector<2x32xf32>
    %350 = math.tanh %348 : vector<2x32xf32>
    %351 = arith.mulf %349, %350 : vector<2x32xf32>
    %cst_58 = arith.constant dense<0.000000e+00> : vector<2x128xf32>
    %352 = tpu.matmul %351, %43, %cst_58 {dimension_numbers = #tpu.dot_dimension_numbers<[1], [0], [0], [1], [0, 0, 1, 1], [], []>} : vector<2x32xf32>, vector<32x128xf32>, vector<2x128xf32> -> vector<2x128xf32>
    %cst_59 = arith.constant dense<0.000000e+00> : vector<2x128xf32>
    %353 = tpu.matmul %332, %44, %cst_59 {dimension_numbers = #tpu.dot_dimension_numbers<[1], [0], [0], [1], [0, 0, 1, 1], [], []>} : vector<2x32xf32>, vector<32x128xf32>, vector<2x128xf32> -> vector<2x128xf32>
    %354 = arith.addf %352, %353 : vector<2x128xf32>
    %355 = vector.broadcast %45 : vector<1x128xf32> to vector<2x128xf32>
    %356 = arith.addf %354, %355 : vector<2x128xf32>
    %357 = vector.extract_strided_slice %356 {offsets = [0, 0], sizes = [2, 96], strides = [1, 1]} : vector<2x128xf32> to vector<2x96xf32>
    %358 = arith.negf %357 : vector<2x96xf32>
    %359 = math.exp %358 : vector<2x96xf32>
    %cst_60 = arith.constant 1.000000e+00 : f32
    %360 = vector.broadcast %cst_60 : f32 to vector<2x96xf32>
    %361 = arith.addf %360, %359 : vector<2x96xf32>
    %362 = arith.divf %360, %361 : vector<2x96xf32>
    %363 = vector.extract_strided_slice %356 {offsets = [0, 96], sizes = [2, 32], strides = [1, 1]} : vector<2x128xf32> to vector<2x32xf32>
    %364 = math.tanh %363 : vector<2x32xf32>
    %365 = vector.extract_strided_slice %362 {offsets = [0, 32], sizes = [2, 32], strides = [1, 1]} : vector<2x96xf32> to vector<2x32xf32>
    %366 = arith.mulf %365, %329 : vector<2x32xf32>
    %367 = vector.extract_strided_slice %362 {offsets = [0, 0], sizes = [2, 32], strides = [1, 1]} : vector<2x96xf32> to vector<2x32xf32>
    %368 = arith.mulf %367, %364 : vector<2x32xf32>
    %369 = arith.addf %366, %368 : vector<2x32xf32>
    %370 = vector.extract_strided_slice %362 {offsets = [0, 64], sizes = [2, 32], strides = [1, 1]} : vector<2x96xf32> to vector<2x32xf32>
    %371 = math.tanh %369 : vector<2x32xf32>
    %372 = arith.mulf %370, %371 : vector<2x32xf32>
    %cst_61 = arith.constant dense<0.000000e+00> : vector<2x32xf32>
    %373 = tpu.matmul %92, %3, %cst_61 {dimension_numbers = #tpu.dot_dimension_numbers<[1], [0], [0], [1], [0, 0, 1, 1], [], []>} : vector<2x32xf32>, vector<32x32xf32>, vector<2x32xf32> -> vector<2x32xf32>
    %374 = vector.broadcast %8 : vector<1x32xf32> to vector<2x32xf32>
    %375 = arith.addf %373, %374 : vector<2x32xf32>
    %cst_62 = arith.constant dense<0.000000e+00> : vector<2xf32>
    %376 = vector.multi_reduction <add>, %375, %cst_62 [1] : vector<2x32xf32> to vector<2xf32>
    %377 = vector.shape_cast %376 : vector<2xf32> to vector<2x1xf32>
    %cst_63 = arith.constant 3.200000e+01 : f32
    %378 = vector.broadcast %cst_63 : f32 to vector<2x1xf32>
    %379 = arith.divf %377, %378 : vector<2x1xf32>
    %380 = vector.broadcast %379 : vector<2x1xf32> to vector<2x32xf32>
    %381 = arith.subf %375, %380 : vector<2x32xf32>
    %382 = arith.mulf %381, %381 : vector<2x32xf32>
    %cst_64 = arith.constant dense<0.000000e+00> : vector<2xf32>
    %383 = vector.multi_reduction <add>, %382, %cst_64 [1] : vector<2x32xf32> to vector<2xf32>
    %384 = vector.shape_cast %383 : vector<2xf32> to vector<2x1xf32>
    %cst_65 = arith.constant 3.200000e+01 : f32
    %385 = vector.broadcast %cst_65 : f32 to vector<2x1xf32>
    %386 = arith.divf %384, %385 : vector<2x1xf32>
    %387 = vector.broadcast %379 : vector<2x1xf32> to vector<2x32xf32>
    %388 = arith.subf %375, %387 : vector<2x32xf32>
    %cst_66 = arith.constant 9.99999974E-6 : f32
    %389 = vector.broadcast %cst_66 : f32 to vector<2x1xf32>
    %390 = arith.addf %386, %389 : vector<2x1xf32>
    %391 = math.rsqrt %390 : vector<2x1xf32>
    %392 = vector.broadcast %391 : vector<2x1xf32> to vector<2x32xf32>
    %393 = arith.mulf %388, %392 : vector<2x32xf32>
    %394 = vector.broadcast %9 : vector<1x32xf32> to vector<2x32xf32>
    %395 = arith.mulf %393, %394 : vector<2x32xf32>
    %396 = vector.broadcast %10 : vector<1x32xf32> to vector<2x32xf32>
    %397 = arith.addf %395, %396 : vector<2x32xf32>
    %cst_67 = arith.constant 0.000000e+00 : f32
    %398 = vector.broadcast %cst_67 : f32 to vector<2x32xf32>
    %399 = arith.maximumf %397, %398 : vector<2x32xf32>
    %400 = vector.broadcast %cst_67 : f32 to vector<2x32xf32>
    %401 = arith.subf %397, %400 : vector<2x32xf32>
    %402 = arith.cmpf one, %401, %401 : vector<2x32xf32>
    %403 = vector.broadcast %cst_67 : f32 to vector<2x32xf32>
    %404 = arith.addf %397, %403 : vector<2x32xf32>
    %405 = math.absf %401 : vector<2x32xf32>
    %cst_68 = arith.constant 0.000000e+00 : f32
    %406 = vector.broadcast %cst_68 : f32 to vector<2x32xf32>
    %407 = arith.subf %406, %405 : vector<2x32xf32>
    %408 = math.exp %407 : vector<2x32xf32>
    %409 = math.log1p %408 : vector<2x32xf32>
    %410 = arith.addf %399, %409 : vector<2x32xf32>
    %411 = arith.select %402, %404, %410 : vector<2x32xi1>, vector<2x32xf32>
    %412 = math.tanh %411 : vector<2x32xf32>
    %413 = arith.mulf %397, %412 : vector<2x32xf32>
    %cst_69 = arith.constant dense<0.000000e+00> : vector<2x4xf32>
    %414 = tpu.matmul %413, %4, %cst_69 {dimension_numbers = #tpu.dot_dimension_numbers<[1], [0], [0], [1], [0, 0, 1, 1], [], []>} : vector<2x32xf32>, vector<32x4xf32>, vector<2x4xf32> -> vector<2x4xf32>
    %415 = vector.broadcast %11 : vector<1x4xf32> to vector<2x4xf32>
    %416 = arith.addf %414, %415 : vector<2x4xf32>
    %c0_70 = arith.constant 0 : index
    %c0_71 = arith.constant 0 : index
    %417 = vector.load %arg4[%c0_70, %c0_71] : memref<2x32xf32, #tpu.memory_space<vmem>>, vector<2x4xf32>
    tpu.vector_store %arg4[%c0_70, %c0_71], %416 {strides = array<i32>} : memref<2x32xf32, #tpu.memory_space<vmem>>, vector<2x4xf32>,
    %cst_72 = arith.constant dense<0.000000e+00> : vector<2x32xf32>
    %418 = tpu.matmul %132, %3, %cst_72 {dimension_numbers = #tpu.dot_dimension_numbers<[1], [0], [0], [1], [0, 0, 1, 1], [], []>} : vector<2x32xf32>, vector<32x32xf32>, vector<2x32xf32> -> vector<2x32xf32>
    %419 = vector.broadcast %8 : vector<1x32xf32> to vector<2x32xf32>
    %420 = arith.addf %418, %419 : vector<2x32xf32>
    %cst_73 = arith.constant dense<0.000000e+00> : vector<2xf32>
    %421 = vector.multi_reduction <add>, %420, %cst_73 [1] : vector<2x32xf32> to vector<2xf32>
    %422 = vector.shape_cast %421 : vector<2xf32> to vector<2x1xf32>
    %cst_74 = arith.constant 3.200000e+01 : f32
    %423 = vector.broadcast %cst_74 : f32 to vector<2x1xf32>
    %424 = arith.divf %422, %423 : vector<2x1xf32>
    %425 = vector.broadcast %424 : vector<2x1xf32> to vector<2x32xf32>
    %426 = arith.subf %420, %425 : vector<2x32xf32>
    %427 = arith.mulf %426, %426 : vector<2x32xf32>
    %cst_75 = arith.constant dense<0.000000e+00> : vector<2xf32>
    %428 = vector.multi_reduction <add>, %427, %cst_75 [1] : vector<2x32xf32> to vector<2xf32>
    %429 = vector.shape_cast %428 : vector<2xf32> to vector<2x1xf32>
    %cst_76 = arith.constant 3.200000e+01 : f32
    %430 = vector.broadcast %cst_76 : f32 to vector<2x1xf32>
    %431 = arith.divf %429, %430 : vector<2x1xf32>
    %432 = vector.broadcast %424 : vector<2x1xf32> to vector<2x32xf32>
    %433 = arith.subf %420, %432 : vector<2x32xf32>
    %cst_77 = arith.constant 9.99999974E-6 : f32
    %434 = vector.broadcast %cst_77 : f32 to vector<2x1xf32>
    %435 = arith.addf %431, %434 : vector<2x1xf32>
    %436 = math.rsqrt %435 : vector<2x1xf32>
    %437 = vector.broadcast %436 : vector<2x1xf32> to vector<2x32xf32>
    %438 = arith.mulf %433, %437 : vector<2x32xf32>
    %439 = vector.broadcast %9 : vector<1x32xf32> to vector<2x32xf32>
    %440 = arith.mulf %438, %439 : vector<2x32xf32>
    %441 = vector.broadcast %10 : vector<1x32xf32> to vector<2x32xf32>
    %442 = arith.addf %440, %441 : vector<2x32xf32>
    %cst_78 = arith.constant 0.000000e+00 : f32
    %443 = vector.broadcast %cst_78 : f32 to vector<2x32xf32>
    %444 = arith.maximumf %442, %443 : vector<2x32xf32>
    %445 = vector.broadcast %cst_78 : f32 to vector<2x32xf32>
    %446 = arith.subf %442, %445 : vector<2x32xf32>
    %447 = arith.cmpf one, %446, %446 : vector<2x32xf32>
    %448 = vector.broadcast %cst_78 : f32 to vector<2x32xf32>
    %449 = arith.addf %442, %448 : vector<2x32xf32>
    %450 = math.absf %446 : vector<2x32xf32>
    %cst_79 = arith.constant 0.000000e+00 : f32
    %451 = vector.broadcast %cst_79 : f32 to vector<2x32xf32>
    %452 = arith.subf %451, %450 : vector<2x32xf32>
    %453 = math.exp %452 : vector<2x32xf32>
    %454 = math.log1p %453 : vector<2x32xf32>
    %455 = arith.addf %444, %454 : vector<2x32xf32>
    %456 = arith.select %447, %449, %455 : vector<2x32xi1>, vector<2x32xf32>
    %457 = math.tanh %456 : vector<2x32xf32>
    %458 = arith.mulf %442, %457 : vector<2x32xf32>
    %cst_80 = arith.constant dense<0.000000e+00> : vector<2x4xf32>
    %459 = tpu.matmul %458, %4, %cst_80 {dimension_numbers = #tpu.dot_dimension_numbers<[1], [0], [0], [1], [0, 0, 1, 1], [], []>} : vector<2x32xf32>, vector<32x4xf32>, vector<2x4xf32> -> vector<2x4xf32>
    %460 = vector.broadcast %11 : vector<1x4xf32> to vector<2x4xf32>
    %461 = arith.addf %459, %460 : vector<2x4xf32>
    %c0_81 = arith.constant 0 : index
    %c4 = arith.constant 4 : index
    %462 = vector.load %arg4[%c0_81, %c4] : memref<2x32xf32, #tpu.memory_space<vmem>>, vector<2x4xf32>
    tpu.vector_store %arg4[%c0_81, %c4], %461 {strides = array<i32>} : memref<2x32xf32, #tpu.memory_space<vmem>>, vector<2x4xf32>,
    %cst_82 = arith.constant dense<0.000000e+00> : vector<2x32xf32>
    %463 = tpu.matmul %172, %3, %cst_82 {dimension_numbers = #tpu.dot_dimension_numbers<[1], [0], [0], [1], [0, 0, 1, 1], [], []>} : vector<2x32xf32>, vector<32x32xf32>, vector<2x32xf32> -> vector<2x32xf32>
    %464 = vector.broadcast %8 : vector<1x32xf32> to vector<2x32xf32>
    %465 = arith.addf %463, %464 : vector<2x32xf32>
    %cst_83 = arith.constant dense<0.000000e+00> : vector<2xf32>
    %466 = vector.multi_reduction <add>, %465, %cst_83 [1] : vector<2x32xf32> to vector<2xf32>
    %467 = vector.shape_cast %466 : vector<2xf32> to vector<2x1xf32>
    %cst_84 = arith.constant 3.200000e+01 : f32
    %468 = vector.broadcast %cst_84 : f32 to vector<2x1xf32>
    %469 = arith.divf %467, %468 : vector<2x1xf32>
    %470 = vector.broadcast %469 : vector<2x1xf32> to vector<2x32xf32>
    %471 = arith.subf %465, %470 : vector<2x32xf32>
    %472 = arith.mulf %471, %471 : vector<2x32xf32>
    %cst_85 = arith.constant dense<0.000000e+00> : vector<2xf32>
    %473 = vector.multi_reduction <add>, %472, %cst_85 [1] : vector<2x32xf32> to vector<2xf32>
    %474 = vector.shape_cast %473 : vector<2xf32> to vector<2x1xf32>
    %cst_86 = arith.constant 3.200000e+01 : f32
    %475 = vector.broadcast %cst_86 : f32 to vector<2x1xf32>
    %476 = arith.divf %474, %475 : vector<2x1xf32>
    %477 = vector.broadcast %469 : vector<2x1xf32> to vector<2x32xf32>
    %478 = arith.subf %465, %477 : vector<2x32xf32>
    %cst_87 = arith.constant 9.99999974E-6 : f32
    %479 = vector.broadcast %cst_87 : f32 to vector<2x1xf32>
    %480 = arith.addf %476, %479 : vector<2x1xf32>
    %481 = math.rsqrt %480 : vector<2x1xf32>
    %482 = vector.broadcast %481 : vector<2x1xf32> to vector<2x32xf32>
    %483 = arith.mulf %478, %482 : vector<2x32xf32>
    %484 = vector.broadcast %9 : vector<1x32xf32> to vector<2x32xf32>
    %485 = arith.mulf %483, %484 : vector<2x32xf32>
    %486 = vector.broadcast %10 : vector<1x32xf32> to vector<2x32xf32>
    %487 = arith.addf %485, %486 : vector<2x32xf32>
    %cst_88 = arith.constant 0.000000e+00 : f32
    %488 = vector.broadcast %cst_88 : f32 to vector<2x32xf32>
    %489 = arith.maximumf %487, %488 : vector<2x32xf32>
    %490 = vector.broadcast %cst_88 : f32 to vector<2x32xf32>
    %491 = arith.subf %487, %490 : vector<2x32xf32>
    %492 = arith.cmpf one, %491, %491 : vector<2x32xf32>
    %493 = vector.broadcast %cst_88 : f32 to vector<2x32xf32>
    %494 = arith.addf %487, %493 : vector<2x32xf32>
    %495 = math.absf %491 : vector<2x32xf32>
    %cst_89 = arith.constant 0.000000e+00 : f32
    %496 = vector.broadcast %cst_89 : f32 to vector<2x32xf32>
    %497 = arith.subf %496, %495 : vector<2x32xf32>
    %498 = math.exp %497 : vector<2x32xf32>
    %499 = math.log1p %498 : vector<2x32xf32>
    %500 = arith.addf %489, %499 : vector<2x32xf32>
    %501 = arith.select %492, %494, %500 : vector<2x32xi1>, vector<2x32xf32>
    %502 = math.tanh %501 : vector<2x32xf32>
    %503 = arith.mulf %487, %502 : vector<2x32xf32>
    %cst_90 = arith.constant dense<0.000000e+00> : vector<2x4xf32>
    %504 = tpu.matmul %503, %4, %cst_90 {dimension_numbers = #tpu.dot_dimension_numbers<[1], [0], [0], [1], [0, 0, 1, 1], [], []>} : vector<2x32xf32>, vector<32x4xf32>, vector<2x4xf32> -> vector<2x4xf32>
    %505 = vector.broadcast %11 : vector<1x4xf32> to vector<2x4xf32>
    %506 = arith.addf %504, %505 : vector<2x4xf32>
    %c0_91 = arith.constant 0 : index
    %c8 = arith.constant 8 : index
    %507 = vector.load %arg4[%c0_91, %c8] : memref<2x32xf32, #tpu.memory_space<vmem>>, vector<2x4xf32>
    tpu.vector_store %arg4[%c0_91, %c8], %506 {strides = array<i32>} : memref<2x32xf32, #tpu.memory_space<vmem>>, vector<2x4xf32>,
    %cst_92 = arith.constant dense<0.000000e+00> : vector<2x32xf32>
    %508 = tpu.matmul %212, %3, %cst_92 {dimension_numbers = #tpu.dot_dimension_numbers<[1], [0], [0], [1], [0, 0, 1, 1], [], []>} : vector<2x32xf32>, vector<32x32xf32>, vector<2x32xf32> -> vector<2x32xf32>
    %509 = vector.broadcast %8 : vector<1x32xf32> to vector<2x32xf32>
    %510 = arith.addf %508, %509 : vector<2x32xf32>
    %cst_93 = arith.constant dense<0.000000e+00> : vector<2xf32>
    %511 = vector.multi_reduction <add>, %510, %cst_93 [1] : vector<2x32xf32> to vector<2xf32>
    %512 = vector.shape_cast %511 : vector<2xf32> to vector<2x1xf32>
    %cst_94 = arith.constant 3.200000e+01 : f32
    %513 = vector.broadcast %cst_94 : f32 to vector<2x1xf32>
    %514 = arith.divf %512, %513 : vector<2x1xf32>
    %515 = vector.broadcast %514 : vector<2x1xf32> to vector<2x32xf32>
    %516 = arith.subf %510, %515 : vector<2x32xf32>
    %517 = arith.mulf %516, %516 : vector<2x32xf32>
    %cst_95 = arith.constant dense<0.000000e+00> : vector<2xf32>
    %518 = vector.multi_reduction <add>, %517, %cst_95 [1] : vector<2x32xf32> to vector<2xf32>
    %519 = vector.shape_cast %518 : vector<2xf32> to vector<2x1xf32>
    %cst_96 = arith.constant 3.200000e+01 : f32
    %520 = vector.broadcast %cst_96 : f32 to vector<2x1xf32>
    %521 = arith.divf %519, %520 : vector<2x1xf32>
    %522 = vector.broadcast %514 : vector<2x1xf32> to vector<2x32xf32>
    %523 = arith.subf %510, %522 : vector<2x32xf32>
    %cst_97 = arith.constant 9.99999974E-6 : f32
    %524 = vector.broadcast %cst_97 : f32 to vector<2x1xf32>
    %525 = arith.addf %521, %524 : vector<2x1xf32>
    %526 = math.rsqrt %525 : vector<2x1xf32>
    %527 = vector.broadcast %526 : vector<2x1xf32> to vector<2x32xf32>
    %528 = arith.mulf %523, %527 : vector<2x32xf32>
    %529 = vector.broadcast %9 : vector<1x32xf32> to vector<2x32xf32>
    %530 = arith.mulf %528, %529 : vector<2x32xf32>
    %531 = vector.broadcast %10 : vector<1x32xf32> to vector<2x32xf32>
    %532 = arith.addf %530, %531 : vector<2x32xf32>
    %cst_98 = arith.constant 0.000000e+00 : f32
    %533 = vector.broadcast %cst_98 : f32 to vector<2x32xf32>
    %534 = arith.maximumf %532, %533 : vector<2x32xf32>
    %535 = vector.broadcast %cst_98 : f32 to vector<2x32xf32>
    %536 = arith.subf %532, %535 : vector<2x32xf32>
    %537 = arith.cmpf one, %536, %536 : vector<2x32xf32>
    %538 = vector.broadcast %cst_98 : f32 to vector<2x32xf32>
    %539 = arith.addf %532, %538 : vector<2x32xf32>
    %540 = math.absf %536 : vector<2x32xf32>
    %cst_99 = arith.constant 0.000000e+00 : f32
    %541 = vector.broadcast %cst_99 : f32 to vector<2x32xf32>
    %542 = arith.subf %541, %540 : vector<2x32xf32>
    %543 = math.exp %542 : vector<2x32xf32>
    %544 = math.log1p %543 : vector<2x32xf32>
    %545 = arith.addf %534, %544 : vector<2x32xf32>
    %546 = arith.select %537, %539, %545 : vector<2x32xi1>, vector<2x32xf32>
    %547 = math.tanh %546 : vector<2x32xf32>
    %548 = arith.mulf %532, %547 : vector<2x32xf32>
    %cst_100 = arith.constant dense<0.000000e+00> : vector<2x4xf32>
    %549 = tpu.matmul %548, %4, %cst_100 {dimension_numbers = #tpu.dot_dimension_numbers<[1], [0], [0], [1], [0, 0, 1, 1], [], []>} : vector<2x32xf32>, vector<32x4xf32>, vector<2x4xf32> -> vector<2x4xf32>
    %550 = vector.broadcast %11 : vector<1x4xf32> to vector<2x4xf32>
    %551 = arith.addf %549, %550 : vector<2x4xf32>
    %c0_101 = arith.constant 0 : index
    %c12 = arith.constant 12 : index
    %552 = vector.load %arg4[%c0_101, %c12] : memref<2x32xf32, #tpu.memory_space<vmem>>, vector<2x4xf32>
    tpu.vector_store %arg4[%c0_101, %c12], %551 {strides = array<i32>} : memref<2x32xf32, #tpu.memory_space<vmem>>, vector<2x4xf32>,
    %cst_102 = arith.constant dense<0.000000e+00> : vector<2x32xf32>
    %553 = tpu.matmul %252, %3, %cst_102 {dimension_numbers = #tpu.dot_dimension_numbers<[1], [0], [0], [1], [0, 0, 1, 1], [], []>} : vector<2x32xf32>, vector<32x32xf32>, vector<2x32xf32> -> vector<2x32xf32>
    %554 = vector.broadcast %8 : vector<1x32xf32> to vector<2x32xf32>
    %555 = arith.addf %553, %554 : vector<2x32xf32>
    %cst_103 = arith.constant dense<0.000000e+00> : vector<2xf32>
    %556 = vector.multi_reduction <add>, %555, %cst_103 [1] : vector<2x32xf32> to vector<2xf32>
    %557 = vector.shape_cast %556 : vector<2xf32> to vector<2x1xf32>
    %cst_104 = arith.constant 3.200000e+01 : f32
    %558 = vector.broadcast %cst_104 : f32 to vector<2x1xf32>
    %559 = arith.divf %557, %558 : vector<2x1xf32>
    %560 = vector.broadcast %559 : vector<2x1xf32> to vector<2x32xf32>
    %561 = arith.subf %555, %560 : vector<2x32xf32>
    %562 = arith.mulf %561, %561 : vector<2x32xf32>
    %cst_105 = arith.constant dense<0.000000e+00> : vector<2xf32>
    %563 = vector.multi_reduction <add>, %562, %cst_105 [1] : vector<2x32xf32> to vector<2xf32>
    %564 = vector.shape_cast %563 : vector<2xf32> to vector<2x1xf32>
    %cst_106 = arith.constant 3.200000e+01 : f32
    %565 = vector.broadcast %cst_106 : f32 to vector<2x1xf32>
    %566 = arith.divf %564, %565 : vector<2x1xf32>
    %567 = vector.broadcast %559 : vector<2x1xf32> to vector<2x32xf32>
    %568 = arith.subf %555, %567 : vector<2x32xf32>
    %cst_107 = arith.constant 9.99999974E-6 : f32
    %569 = vector.broadcast %cst_107 : f32 to vector<2x1xf32>
    %570 = arith.addf %566, %569 : vector<2x1xf32>
    %571 = math.rsqrt %570 : vector<2x1xf32>
    %572 = vector.broadcast %571 : vector<2x1xf32> to vector<2x32xf32>
    %573 = arith.mulf %568, %572 : vector<2x32xf32>
    %574 = vector.broadcast %9 : vector<1x32xf32> to vector<2x32xf32>
    %575 = arith.mulf %573, %574 : vector<2x32xf32>
    %576 = vector.broadcast %10 : vector<1x32xf32> to vector<2x32xf32>
    %577 = arith.addf %575, %576 : vector<2x32xf32>
    %cst_108 = arith.constant 0.000000e+00 : f32
    %578 = vector.broadcast %cst_108 : f32 to vector<2x32xf32>
    %579 = arith.maximumf %577, %578 : vector<2x32xf32>
    %580 = vector.broadcast %cst_108 : f32 to vector<2x32xf32>
    %581 = arith.subf %577, %580 : vector<2x32xf32>
    %582 = arith.cmpf one, %581, %581 : vector<2x32xf32>
    %583 = vector.broadcast %cst_108 : f32 to vector<2x32xf32>
    %584 = arith.addf %577, %583 : vector<2x32xf32>
    %585 = math.absf %581 : vector<2x32xf32>
    %cst_109 = arith.constant 0.000000e+00 : f32
    %586 = vector.broadcast %cst_109 : f32 to vector<2x32xf32>
    %587 = arith.subf %586, %585 : vector<2x32xf32>
    %588 = math.exp %587 : vector<2x32xf32>
    %589 = math.log1p %588 : vector<2x32xf32>
    %590 = arith.addf %579, %589 : vector<2x32xf32>
    %591 = arith.select %582, %584, %590 : vector<2x32xi1>, vector<2x32xf32>
    %592 = math.tanh %591 : vector<2x32xf32>
    %593 = arith.mulf %577, %592 : vector<2x32xf32>
    %cst_110 = arith.constant dense<0.000000e+00> : vector<2x4xf32>
    %594 = tpu.matmul %593, %4, %cst_110 {dimension_numbers = #tpu.dot_dimension_numbers<[1], [0], [0], [1], [0, 0, 1, 1], [], []>} : vector<2x32xf32>, vector<32x4xf32>, vector<2x4xf32> -> vector<2x4xf32>
    %595 = vector.broadcast %11 : vector<1x4xf32> to vector<2x4xf32>
    %596 = arith.addf %594, %595 : vector<2x4xf32>
    %c0_111 = arith.constant 0 : index
    %c16 = arith.constant 16 : index
    %597 = vector.load %arg4[%c0_111, %c16] : memref<2x32xf32, #tpu.memory_space<vmem>>, vector<2x4xf32>
    tpu.vector_store %arg4[%c0_111, %c16], %596 {strides = array<i32>} : memref<2x32xf32, #tpu.memory_space<vmem>>, vector<2x4xf32>,
    %cst_112 = arith.constant dense<0.000000e+00> : vector<2x32xf32>
    %598 = tpu.matmul %292, %3, %cst_112 {dimension_numbers = #tpu.dot_dimension_numbers<[1], [0], [0], [1], [0, 0, 1, 1], [], []>} : vector<2x32xf32>, vector<32x32xf32>, vector<2x32xf32> -> vector<2x32xf32>
    %599 = vector.broadcast %8 : vector<1x32xf32> to vector<2x32xf32>
    %600 = arith.addf %598, %599 : vector<2x32xf32>
    %cst_113 = arith.constant dense<0.000000e+00> : vector<2xf32>
    %601 = vector.multi_reduction <add>, %600, %cst_113 [1] : vector<2x32xf32> to vector<2xf32>
    %602 = vector.shape_cast %601 : vector<2xf32> to vector<2x1xf32>
    %cst_114 = arith.constant 3.200000e+01 : f32
    %603 = vector.broadcast %cst_114 : f32 to vector<2x1xf32>
    %604 = arith.divf %602, %603 : vector<2x1xf32>
    %605 = vector.broadcast %604 : vector<2x1xf32> to vector<2x32xf32>
    %606 = arith.subf %600, %605 : vector<2x32xf32>
    %607 = arith.mulf %606, %606 : vector<2x32xf32>
    %cst_115 = arith.constant dense<0.000000e+00> : vector<2xf32>
    %608 = vector.multi_reduction <add>, %607, %cst_115 [1] : vector<2x32xf32> to vector<2xf32>
    %609 = vector.shape_cast %608 : vector<2xf32> to vector<2x1xf32>
    %cst_116 = arith.constant 3.200000e+01 : f32
    %610 = vector.broadcast %cst_116 : f32 to vector<2x1xf32>
    %611 = arith.divf %609, %610 : vector<2x1xf32>
    %612 = vector.broadcast %604 : vector<2x1xf32> to vector<2x32xf32>
    %613 = arith.subf %600, %612 : vector<2x32xf32>
    %cst_117 = arith.constant 9.99999974E-6 : f32
    %614 = vector.broadcast %cst_117 : f32 to vector<2x1xf32>
    %615 = arith.addf %611, %614 : vector<2x1xf32>
    %616 = math.rsqrt %615 : vector<2x1xf32>
    %617 = vector.broadcast %616 : vector<2x1xf32> to vector<2x32xf32>
    %618 = arith.mulf %613, %617 : vector<2x32xf32>
    %619 = vector.broadcast %9 : vector<1x32xf32> to vector<2x32xf32>
    %620 = arith.mulf %618, %619 : vector<2x32xf32>
    %621 = vector.broadcast %10 : vector<1x32xf32> to vector<2x32xf32>
    %622 = arith.addf %620, %621 : vector<2x32xf32>
    %cst_118 = arith.constant 0.000000e+00 : f32
    %623 = vector.broadcast %cst_118 : f32 to vector<2x32xf32>
    %624 = arith.maximumf %622, %623 : vector<2x32xf32>
    %625 = vector.broadcast %cst_118 : f32 to vector<2x32xf32>
    %626 = arith.subf %622, %625 : vector<2x32xf32>
    %627 = arith.cmpf one, %626, %626 : vector<2x32xf32>
    %628 = vector.broadcast %cst_118 : f32 to vector<2x32xf32>
    %629 = arith.addf %622, %628 : vector<2x32xf32>
    %630 = math.absf %626 : vector<2x32xf32>
    %cst_119 = arith.constant 0.000000e+00 : f32
    %631 = vector.broadcast %cst_119 : f32 to vector<2x32xf32>
    %632 = arith.subf %631, %630 : vector<2x32xf32>
    %633 = math.exp %632 : vector<2x32xf32>
    %634 = math.log1p %633 : vector<2x32xf32>
    %635 = arith.addf %624, %634 : vector<2x32xf32>
    %636 = arith.select %627, %629, %635 : vector<2x32xi1>, vector<2x32xf32>
    %637 = math.tanh %636 : vector<2x32xf32>
    %638 = arith.mulf %622, %637 : vector<2x32xf32>
    %cst_120 = arith.constant dense<0.000000e+00> : vector<2x4xf32>
    %639 = tpu.matmul %638, %4, %cst_120 {dimension_numbers = #tpu.dot_dimension_numbers<[1], [0], [0], [1], [0, 0, 1, 1], [], []>} : vector<2x32xf32>, vector<32x4xf32>, vector<2x4xf32> -> vector<2x4xf32>
    %640 = vector.broadcast %11 : vector<1x4xf32> to vector<2x4xf32>
    %641 = arith.addf %639, %640 : vector<2x4xf32>
    %c0_121 = arith.constant 0 : index
    %c20 = arith.constant 20 : index
    %642 = vector.load %arg4[%c0_121, %c20] : memref<2x32xf32, #tpu.memory_space<vmem>>, vector<2x4xf32>
    tpu.vector_store %arg4[%c0_121, %c20], %641 {strides = array<i32>} : memref<2x32xf32, #tpu.memory_space<vmem>>, vector<2x4xf32>,
    %cst_122 = arith.constant dense<0.000000e+00> : vector<2x32xf32>
    %643 = tpu.matmul %332, %3, %cst_122 {dimension_numbers = #tpu.dot_dimension_numbers<[1], [0], [0], [1], [0, 0, 1, 1], [], []>} : vector<2x32xf32>, vector<32x32xf32>, vector<2x32xf32> -> vector<2x32xf32>
    %644 = vector.broadcast %8 : vector<1x32xf32> to vector<2x32xf32>
    %645 = arith.addf %643, %644 : vector<2x32xf32>
    %cst_123 = arith.constant dense<0.000000e+00> : vector<2xf32>
    %646 = vector.multi_reduction <add>, %645, %cst_123 [1] : vector<2x32xf32> to vector<2xf32>
    %647 = vector.shape_cast %646 : vector<2xf32> to vector<2x1xf32>
    %cst_124 = arith.constant 3.200000e+01 : f32
    %648 = vector.broadcast %cst_124 : f32 to vector<2x1xf32>
    %649 = arith.divf %647, %648 : vector<2x1xf32>
    %650 = vector.broadcast %649 : vector<2x1xf32> to vector<2x32xf32>
    %651 = arith.subf %645, %650 : vector<2x32xf32>
    %652 = arith.mulf %651, %651 : vector<2x32xf32>
    %cst_125 = arith.constant dense<0.000000e+00> : vector<2xf32>
    %653 = vector.multi_reduction <add>, %652, %cst_125 [1] : vector<2x32xf32> to vector<2xf32>
    %654 = vector.shape_cast %653 : vector<2xf32> to vector<2x1xf32>
    %cst_126 = arith.constant 3.200000e+01 : f32
    %655 = vector.broadcast %cst_126 : f32 to vector<2x1xf32>
    %656 = arith.divf %654, %655 : vector<2x1xf32>
    %657 = vector.broadcast %649 : vector<2x1xf32> to vector<2x32xf32>
    %658 = arith.subf %645, %657 : vector<2x32xf32>
    %cst_127 = arith.constant 9.99999974E-6 : f32
    %659 = vector.broadcast %cst_127 : f32 to vector<2x1xf32>
    %660 = arith.addf %656, %659 : vector<2x1xf32>
    %661 = math.rsqrt %660 : vector<2x1xf32>
    %662 = vector.broadcast %661 : vector<2x1xf32> to vector<2x32xf32>
    %663 = arith.mulf %658, %662 : vector<2x32xf32>
    %664 = vector.broadcast %9 : vector<1x32xf32> to vector<2x32xf32>
    %665 = arith.mulf %663, %664 : vector<2x32xf32>
    %666 = vector.broadcast %10 : vector<1x32xf32> to vector<2x32xf32>
    %667 = arith.addf %665, %666 : vector<2x32xf32>
    %cst_128 = arith.constant 0.000000e+00 : f32
    %668 = vector.broadcast %cst_128 : f32 to vector<2x32xf32>
    %669 = arith.maximumf %667, %668 : vector<2x32xf32>
    %670 = vector.broadcast %cst_128 : f32 to vector<2x32xf32>
    %671 = arith.subf %667, %670 : vector<2x32xf32>
    %672 = arith.cmpf one, %671, %671 : vector<2x32xf32>
    %673 = vector.broadcast %cst_128 : f32 to vector<2x32xf32>
    %674 = arith.addf %667, %673 : vector<2x32xf32>
    %675 = math.absf %671 : vector<2x32xf32>
    %cst_129 = arith.constant 0.000000e+00 : f32
    %676 = vector.broadcast %cst_129 : f32 to vector<2x32xf32>
    %677 = arith.subf %676, %675 : vector<2x32xf32>
    %678 = math.exp %677 : vector<2x32xf32>
    %679 = math.log1p %678 : vector<2x32xf32>
    %680 = arith.addf %669, %679 : vector<2x32xf32>
    %681 = arith.select %672, %674, %680 : vector<2x32xi1>, vector<2x32xf32>
    %682 = math.tanh %681 : vector<2x32xf32>
    %683 = arith.mulf %667, %682 : vector<2x32xf32>
    %cst_130 = arith.constant dense<0.000000e+00> : vector<2x4xf32>
    %684 = tpu.matmul %683, %4, %cst_130 {dimension_numbers = #tpu.dot_dimension_numbers<[1], [0], [0], [1], [0, 0, 1, 1], [], []>} : vector<2x32xf32>, vector<32x4xf32>, vector<2x4xf32> -> vector<2x4xf32>
    %685 = vector.broadcast %11 : vector<1x4xf32> to vector<2x4xf32>
    %686 = arith.addf %684, %685 : vector<2x4xf32>
    %c0_131 = arith.constant 0 : index
    %c24 = arith.constant 24 : index
    %687 = vector.load %arg4[%c0_131, %c24] : memref<2x32xf32, #tpu.memory_space<vmem>>, vector<2x4xf32>
    tpu.vector_store %arg4[%c0_131, %c24], %686 {strides = array<i32>} : memref<2x32xf32, #tpu.memory_space<vmem>>, vector<2x4xf32>,
    %cst_132 = arith.constant dense<0.000000e+00> : vector<2x32xf32>
    %688 = tpu.matmul %372, %3, %cst_132 {dimension_numbers = #tpu.dot_dimension_numbers<[1], [0], [0], [1], [0, 0, 1, 1], [], []>} : vector<2x32xf32>, vector<32x32xf32>, vector<2x32xf32> -> vector<2x32xf32>
    %689 = vector.broadcast %8 : vector<1x32xf32> to vector<2x32xf32>
    %690 = arith.addf %688, %689 : vector<2x32xf32>
    %cst_133 = arith.constant dense<0.000000e+00> : vector<2xf32>
    %691 = vector.multi_reduction <add>, %690, %cst_133 [1] : vector<2x32xf32> to vector<2xf32>
    %692 = vector.shape_cast %691 : vector<2xf32> to vector<2x1xf32>
    %cst_134 = arith.constant 3.200000e+01 : f32
    %693 = vector.broadcast %cst_134 : f32 to vector<2x1xf32>
    %694 = arith.divf %692, %693 : vector<2x1xf32>
    %695 = vector.broadcast %694 : vector<2x1xf32> to vector<2x32xf32>
    %696 = arith.subf %690, %695 : vector<2x32xf32>
    %697 = arith.mulf %696, %696 : vector<2x32xf32>
    %cst_135 = arith.constant dense<0.000000e+00> : vector<2xf32>
    %698 = vector.multi_reduction <add>, %697, %cst_135 [1] : vector<2x32xf32> to vector<2xf32>
    %699 = vector.shape_cast %698 : vector<2xf32> to vector<2x1xf32>
    %cst_136 = arith.constant 3.200000e+01 : f32
    %700 = vector.broadcast %cst_136 : f32 to vector<2x1xf32>
    %701 = arith.divf %699, %700 : vector<2x1xf32>
    %702 = vector.broadcast %694 : vector<2x1xf32> to vector<2x32xf32>
    %703 = arith.subf %690, %702 : vector<2x32xf32>
    %cst_137 = arith.constant 9.99999974E-6 : f32
    %704 = vector.broadcast %cst_137 : f32 to vector<2x1xf32>
    %705 = arith.addf %701, %704 : vector<2x1xf32>
    %706 = math.rsqrt %705 : vector<2x1xf32>
    %707 = vector.broadcast %706 : vector<2x1xf32> to vector<2x32xf32>
    %708 = arith.mulf %703, %707 : vector<2x32xf32>
    %709 = vector.broadcast %9 : vector<1x32xf32> to vector<2x32xf32>
    %710 = arith.mulf %708, %709 : vector<2x32xf32>
    %711 = vector.broadcast %10 : vector<1x32xf32> to vector<2x32xf32>
    %712 = arith.addf %710, %711 : vector<2x32xf32>
    %cst_138 = arith.constant 0.000000e+00 : f32
    %713 = vector.broadcast %cst_138 : f32 to vector<2x32xf32>
    %714 = arith.maximumf %712, %713 : vector<2x32xf32>
    %715 = vector.broadcast %cst_138 : f32 to vector<2x32xf32>
    %716 = arith.subf %712, %715 : vector<2x32xf32>
    %717 = arith.cmpf one, %716, %716 : vector<2x32xf32>
    %718 = vector.broadcast %cst_138 : f32 to vector<2x32xf32>
    %719 = arith.addf %712, %718 : vector<2x32xf32>
    %720 = math.absf %716 : vector<2x32xf32>
    %cst_139 = arith.constant 0.000000e+00 : f32
    %721 = vector.broadcast %cst_139 : f32 to vector<2x32xf32>
    %722 = arith.subf %721, %720 : vector<2x32xf32>
    %723 = math.exp %722 : vector<2x32xf32>
    %724 = math.log1p %723 : vector<2x32xf32>
    %725 = arith.addf %714, %724 : vector<2x32xf32>
    %726 = arith.select %717, %719, %725 : vector<2x32xi1>, vector<2x32xf32>
    %727 = math.tanh %726 : vector<2x32xf32>
    %728 = arith.mulf %712, %727 : vector<2x32xf32>
    %cst_140 = arith.constant dense<0.000000e+00> : vector<2x4xf32>
    %729 = tpu.matmul %728, %4, %cst_140 {dimension_numbers = #tpu.dot_dimension_numbers<[1], [0], [0], [1], [0, 0, 1, 1], [], []>} : vector<2x32xf32>, vector<32x4xf32>, vector<2x4xf32> -> vector<2x4xf32>
    %730 = vector.broadcast %11 : vector<1x4xf32> to vector<2x4xf32>
    %731 = arith.addf %729, %730 : vector<2x4xf32>
    %c0_141 = arith.constant 0 : index
    %c28 = arith.constant 28 : index
    %732 = vector.load %arg4[%c0_141, %c28] : memref<2x32xf32, #tpu.memory_space<vmem>>, vector<2x4xf32>
    tpu.vector_store %arg4[%c0_141, %c28], %731 {strides = array<i32>} : memref<2x32xf32, #tpu.memory_space<vmem>>, vector<2x4xf32>,
    return
  }
}

</mosaic_0001>

<bundles_post_ra>
// kernel: model_forward.1
= control target key start
LH: loop header
LB: loop body
LE: loop exit
PB: predicated region body
PF: predicated region fallthrough
CT: control target
= control target key end

     0   :  { %9 = vsyncpa [#allocation3], 0  ;;  %s5292_s15 = smov [#allocation2]   ;;  %s6086_s0 = inlined_call_operand.vmem [shape: f32[16,4], index: 0, kind: input, shape index: {}]   ;;  %s6087_s1 = inlined_call_operand.vmem [shape: f32[128,128], index: 1, kind: input, shape index: {}]   ;;  %s6088_s2 = inlined_call_operand.vmem [shape: f32[72,32], index: 2, kind: input, shape index: {}]   ;;  %s6089_s3 = inlined_call_operand.hbm [shape: f32[25,128], index: 3, kind: input, shape index: {}]   ;;  %s6090_s4 = inlined_call_operand.vmem [shape: f32[2,32], index: 4, kind: output, shape index: {}]  }
   0x1   :  { %s21_s16 = sshll.u32 %s5292_s15, 4  ;;  %s5268_s19 = scalar_lea.hbm %s6089_s3, 512  ;;  %s22_s16 = int_to_ptr.vmem [resolvable:$true] %s21_s16 }
   0x2   :  { %p5269_p0 = scmp.ne.s32.totalorder %s6089_s3, %s5268_s19  ;;  %p5272_p1 = scmp.lt.u32.totalorder %s5268_s19, %s6089_s3 }
   0x4   :  { %p5274_p2 = pnand %p5272_p1, %p5269_p0 }
   0x6   :  { %5277 = shalt.err (!%p5274_p2)
}
   0x7   :  { %s5278_s24 = scalar_lea.vmem %s22_s16, 512  ;;  %p5283_p4 = scmp.lt.s32.totalorder %s22_s16, %s22_s16 }
   0x8   :  { %p5279_p3 = scmp.ne.s32.totalorder %s22_s16, %s5278_s24  ;;  %p5284_p5 = scmp.lt.s32.totalorder %s5278_s24, %s5278_s24 }
   0xa   :  { %p5285_p6 = por %p5284_p5, %p5283_p4 }
   0xc   :  { %p5286_p7 = pnand %p5285_p6, %p5279_p3 }
   0xe   :  { %5289 = shalt.err (!%p5286_p7)
}
   0xf   :  { %s5293_s25 = smov 128   ;;  %s5294_s26 = smov 8  }
  0x10   :  { %27 = dma.hbm_to_vmem [thread:$0]  %s6089_s3, 512, %s22_s16, [#allocation3], %s5293_s25, %s5293_s25, %s5294_s26  }
  0x11   :  { %5290 = dma.done.wait [#allocation3], 512  }
  0x12   :  { %5291 = vsyncadd [#allocation3], 4294966784  ;;  %v44_v0 = vld [vmem:[%s6086_s0] sm:$0xff]  ;;  %v45_v1 = vld [vmem:[%s6086_s0 + $0x8] sm:$0xff]  ;;  %vm49_vm0 = vcmask 1046528   ;;  %vm55_vm1 = vcmask 130048   ;;  %v135_v14 = vlaneseq }
  0x13   :  { %v5350_v2 = vld [vmem:[#allocation2 + $0x8] sm:$0xff]  ;;  %v4805_v3 = vpack.c.bf16 %v45_v1, %v44_v0  ;;  %v33_v4 = vld [vmem:[#allocation2 + $0x10] sm:$0xff]  ;;  %v34_v6 = vld [vmem:[#allocation2 + $0x18] sm:$0x1]  ;;  %vm146_vm2 = vcmask 1043456   ;;  %vm139_vm3 = vcmask 31744  }
  0x14   :  { %v50_v5 = vrot.slane %v5350_v2, 1  ;;  %v51_v7 = vrot.slane %v33_v4, 1  ;;  %v53_v8 = vrot.slane %v34_v6, 1  ;;  %v35_v9 = vld [vmem:[%s6088_s2] sm:$0xff]  ;;  %v5356_v15 = vshrl.u32 %v135_v14, 7  ;;  %v5359_v17 = vld [vmem:[#allocation2] sm:$0xff] }
  0x15   :  { %4806 = vmatprep.subr.bf16.mxu0 %v4805_v3  ;;  %vm225_vm4 = vcmask 261120   ;;  %v265_v35 = vld [vmem:[%s6087_s1] sm:$0xff]  ;;  %v266_v36 = vld [vmem:[%s6087_s1 + $0x8] sm:$0xff]  ;;  %v5295_v39 = vmov 0.0|0.0   ;;  %v267_v41 = vld [vmem:[%s6087_s1 + $0x10] sm:$0xff]  ;;  %vm5296_vm5 = vmmov 0  }
  0x16   :  { %4808 = vmatpush3.bf16.msra.mxu0 %v4805_v3  ;;  %v52_v10 = vsel %vm49_vm0, %v50_v5, %v51_v7  ;;  %v54_v11 = vsel %vm49_vm0, %v51_v7, %v53_v8  ;;  %v137_v16 = vsub.s32 0, %v5356_v15  ;;  %v269_v37 = vld [vmem:[%s6087_s1 + $0x20] sm:$0xff]  ;;  %v4809_v38 = vpack.c.bf16 %v266_v36, %v265_v35  ;;  %v270_v40 = vld [vmem:[%s6087_s1 + $0x28] sm:$0xff]  ;;  %v268_v42 = vld [vmem:[%s6087_s1 + $0x18] sm:$0xff]  ;;  %s5298_s23 = smov 32   ;;  %s5300_s5 = smov 4  }
  0x17   :  { %4346 = vmatprep.mubr.msk.f32.mxu0 %vm55_vm1, %v52_v10  ;;  %4349 = vmatprep.subr.msk.mxu0 %vm146_vm2, %v35_v9  ;;  %v5387_v43 = vpack.c.bf16 %v270_v40, %v269_v37  ;;  %v4813_v44 = vpack.c.bf16 %v268_v42, %v267_v41  ;;  %v271_v45 = vld [vmem:[%s6087_s1 + $0x30] sm:$0xff]  ;;  %v272_v46 = vld [vmem:[%s6087_s1 + $0x38] sm:$0xff]  ;;  %v5297_v48 = vmov 0.0   ;;  %v255_v55 = vsub.s32 1, %v5356_v15  ;;  %s5301_s6 = smov 12   ;;  %s5302_s3 = smov 16  }
  0x18   :  { %v138_v18 = vrot.slane %v5359_v17, %v137_v16  ;;  %4810 = vmatprep.subr.bf16.mxu1 %v4809_v38  ;;  %v5398_v47 = vpack.c.bf16 %v272_v46, %v271_v45  ;;  %v261_v56 = vsub.s32 2, %v5356_v15  ;;  %v283_v6 = vsub.s32 7, %v5356_v15  ;;  %s5303_s7 = smov 20   ;;  %s5305_s14 = smov 28  }
  0x19   :  { %4347 = vmatmul.mubr.msk.f32.vlgmr.msra.gmra.mrb[0].mxu0 %vm55_vm1, %v54_v11  ;;  %4812 = vmatpush3.bf16.msra.mxu1 %v4809_v38  ;;  %v256_v57 = vrot.slane %v5359_v17, %v255_v55  ;;  %v5493_v45 = vrot.slane %v5350_v2, %v137_v16  ;;  %vm2647_vm6 = vcmask 254976   ;;  %vm2768_vm9 = vcmask 25600  }
  0x1a   :  { %4350 = vmatpush3.msk.msra.mxu0 %vm146_vm2, %v35_v9  ;;  %4814 = vmatprep.subr.bf16.mxu1 %v4813_v44  ;;  %v262_v60 = vrot.slane %v5359_v17, %v261_v56  ;;  %v284_v7 = vrot.slane %v5359_v17, %v283_v6 }
  0x1b   :  { %4817 = vmatprep.subr.bf16.mxu0 %v5295_v39 }
  0x1d   :  { %4816 = vmatpush3.bf16.msra.mxu1 %v4813_v44 }
  0x1e   :  { %4823 = vmatprep.subr.bf16.mxu1 %v5295_v39 }
  0xec   :  { %v4348_v12 = vpop.f32.mrb[0].mxu0 }
  0xed   :  { %v126_v13 = vpop.f32.mrb[1].mxu0 }
  0xee   :  { %4351 = vmatprep.mubr.msk.f32.mxu0 %vm139_vm3, %v126_v13 }
  0xef   :  { %4352 = vmatmul.mubr.msk.f32.vlgmr.msra.gmra.mrb[2].mxu0 %vm139_vm3, %v4348_v12 }
  0xf0   :  { %4819 = vmatpush3.bf16.msra.mxu0 %v5387_v43  ;;  %4373 = vmatprep.mubr.msk.f32.mxu0 %vm5296_vm5, %v5297_v48 }
  0xf1   :  { %4820 = vmatprep.subr.bf16.mxu0 %v5295_v39 }
  0xf4   :  { %4822 = vmatpush3.bf16.msra.mxu0 %v5398_v47 }
  0xf5   :  { %4829 = vmatprep.subr.bf16.mxu0 %v5295_v39 }
  0xf7   :  { %4374 = vmatmul.mubr.f32.vlgmr.msra.gmra.mrb[4].mxu0 %v5297_v48 }
  0xf8   :  { %4395 = vmatprep.mubr.msk.f32.mxu0 %vm5296_vm5, %v5297_v48 }
 0x1c2   :  { %v4353_v19 = vpop.f32.mrb[2].mxu0 }
 0x1c3   :  { %v216_v20 = vpop.f32.mrb[3].mxu0  ;;  %v222_v22 = vadd.f32 %v4353_v19, %v138_v18 }
 0x1c4   :  { %v217_v21 = vadd.f32 %v216_v20, %v138_v18 }
 0x1c5   :  { %v229_v24 = vsel %vm225_vm4, %v222_v22, 0.0 }
 0x1c6   :  { %v226_v23 = vsel %vm225_vm4, %v217_v21, 0.0 }
 0x1c7   :  { %227 = vadd.xlane.f32.xlu0 %v226_v23 }
 0x1ca   :  { %v435_v4 = vpop.f32.mrb[4].mxu0 }
 0x1cb   :  { %230 = vadd.xlane.f32.xlu0 %v229_v24  ;;  %v4375_v5 = vpop.f32.mrb[5].mxu0 }
 0x254   :  { %v228_v25 = vpop.xlane.xlu0 %227 }
 0x255   :  { %v233_v26 = vmul.f32 0.03125, %v228_v25  ;;  %v277_v25 = vld [vmem:[%s6087_s1 + $0x60] sm:$0xff] }
 0x257   :  { %v235_v27 = vsub.f32 %v217_v21, %v233_v26  ;;  %v278_v26 = vld [vmem:[%s6087_s1 + $0x68] sm:$0xff] }
 0x258   :  { %v231_v28 = vpop.xlane.xlu0 %230 }
 0x259   :  { %v234_v29 = vmul.f32 0.03125, %v231_v28  ;;  %v237_v30 = vmul.f32 %v235_v27, %v235_v27  ;;  %v5436_v28 = vpack.c.bf16 %v278_v26, %v277_v25 }
 0x25b   :  { %v236_v31 = vsub.f32 %v222_v22, %v234_v29  ;;  %v239_v32 = vsel %vm225_vm4, %v237_v30, 0.0  ;;  %v280_v29 = vld [vmem:[%s6087_s1 + $0x78] sm:$0xff]  ;;  %v273_v30 = vld [vmem:[%s6087_s1 + $0x40] sm:$0xff] }
 0x25c   :  { %240 = vadd.xlane.f32.xlu1 %v239_v32 }
 0x25d   :  { %v238_v33 = vmul.f32 %v236_v31, %v236_v31 }
 0x25f   :  { %v242_v34 = vsel %vm225_vm4, %v238_v33, 0.0  ;;  %v275_v33 = vld [vmem:[%s6087_s1 + $0x50] sm:$0xff] }
 0x260   :  { %243 = vadd.xlane.f32.xlu1 %v242_v34  ;;  %v276_v34 = vld [vmem:[%s6087_s1 + $0x58] sm:$0xff] }
 0x261   :  { %v5460_v36 = vpack.c.bf16 %v276_v34, %v275_v33 }
 0x2e9   :  { %v241_v49 = vpop.xlane.xlu1 %240 }
 0x2ea   :  { %v245_v50 = vmul.f32 0.03125, %v241_v49 }
 0x2ec   :  { %v247_v51 = vadd.f32 1e-05, %v245_v50 }
 0x2ed   :  { %v244_v52 = vpop.xlane.xlu1 %243 }
 0x2ee   :  { %5071 = vrsqrt.f32 %v247_v51  ;;  %v246_v53 = vmul.f32 0.03125, %v244_v52 }
 0x2f0   :  { %v248_v54 = vadd.f32 1e-05, %v246_v53 }
 0x2f2   :  { %5073 = vrsqrt.f32 %v248_v54 }
 0x2f8   :  { %v5072_v58 = vpop.eup %5071 }
 0x2f9   :  { %v251_v59 = vmul.f32 %v5072_v58, %v235_v27  ;;  %v279_v27 = vld [vmem:[%s6087_s1 + $0x70] sm:$0xff] }
 0x2fa   :  { %v5456_v35 = vpack.c.bf16 %v280_v29, %v279_v27 }
 0x2fb   :  { %v257_v61 = vmul.f32 %v256_v57, %v251_v59 }
 0x2fc   :  { %v5074_v62 = vpop.eup %5073 }
 0x2fd   :  { %v252_v63 = vmul.f32 %v5074_v62, %v236_v31  ;;  %v263_v0 = vadd.f32 %v262_v60, %v257_v61  ;;  %v274_v31 = vld [vmem:[%s6087_s1 + $0x48] sm:$0xff]  ;;  %s5299_s1 = smov 64  }
 0x2fe   :  { %v5447_v32 = vpack.c.bf16 %v274_v31, %v273_v30 }
 0x2ff   :  { %v258_v1 = vmul.f32 %v256_v57, %v252_v63  ;;  %4362 = vmatprep.mubr.msk.f32.mxu1 %vm225_vm4, %v263_v0 }
 0x300   :  { %4831 = vmatpush3.bf16.msra.mxu0 %v5447_v32 }
 0x301   :  { %v264_v3 = vadd.f32 %v262_v60, %v258_v1  ;;  %4832 = vmatprep.subr.bf16.mxu0 %v5295_v39 }
 0x303   :  { %4363 = vmatmul.mubr.msk.f32.vlgmr.msra.gmra.mrb[0].mxu1 %vm225_vm4, %v264_v3 }
 0x304   :  { %4384 = vmatprep.mubr.msk.f32.mxu1 %vm5296_vm5, %v5297_v48  ;;  %4825 = vmatpush3.bf16.msra.mxu1 %v5436_v28 }
 0x305   :  { %4826 = vmatprep.subr.bf16.mxu1 %v5295_v39  ;;  %4834 = vmatpush3.bf16.msra.mxu0 %v5460_v36 }
 0x306   :  { %4841 = vmatprep.subr.bf16.mxu0 %v5295_v39 }
 0x308   :  { %4828 = vmatpush3.bf16.msra.mxu1 %v5456_v35 }
 0x309   :  { %4835 = vmatprep.subr.bf16.mxu1 %v5295_v39 }
 0x30b   :  { %4385 = vmatmul.mubr.f32.vlgmr.msra.gmra.mrb[2].mxu1 %v5297_v48 }
 0x30c   :  { %4837 = vmatpush3.bf16.msra.mxu1 %v5387_v43  ;;  %4406 = vmatprep.mubr.msk.f32.mxu1 %vm5296_vm5, %v5297_v48 }
 0x30d   :  { %4838 = vmatprep.subr.bf16.mxu1 %v5295_v39 }
 0x310   :  { %4840 = vmatpush3.bf16.msra.mxu1 %v5398_v47 }
 0x311   :  { %4847 = vmatprep.subr.bf16.mxu1 %v5295_v39 }
 0x3d6   :  { %v4364_v8 = vpop.f32.mrb[0].mxu1 }
 0x3d7   :  { %v5417_v9 = vadd.f32 %v4364_v8, %v284_v7  ;;  %v357_v10 = vpop.f32.mrb[1].mxu1 }
 0x3d8   :  { %v5419_v11 = vadd.f32 %v357_v10, %v284_v7 }
 0x3da   :  { %v439_v12 = vadd.f32 %v435_v4, %v5419_v11 }
 0x3dc   :  { %5075 = vtanh.f32 %v439_v12  ;;  %v4075_v14 = vmul.f32 -1.442695, %v439_v12 }
 0x3de   :  { %5077 = vpow2.f32 %v4075_v14  ;;  %v530_v41 = vpop.f32.mrb[2].mxu1 }
 0x3df   :  { %v4386_v42 = vpop.f32.mrb[3].mxu1 }
 0x3e6   :  { %v5076_v13 = vpop.eup %5075 }
 0x3e7   :  { %449 = vrot.lane.b32.xlu0 %v5076_v13, %s5298_s23 }
 0x3e8   :  { %v5078_v18 = vpop.eup %5077 }
 0x3e9   :  { %v443_v19 = vadd.f32 1.0, %v5078_v18 }
 0x3eb   :  { %5079 = vrcp.f32 %v443_v19 }
 0x3f5   :  { %v5080_v20 = vpop.eup %5079 }
 0x3f6   :  { %v447_v22 = vmul.f32 0.0, %v5080_v20 }
 0x459   :  { %v450_v17 = vpop.permute.xlu0 %449 }
 0x45a   :  { %v452_v21 = vmul.f32 %v5080_v20, %v450_v17 }
 0x45c   :  { %454 = vrot.lane.b32.xlu1 %v452_v21, %s5298_s23 }
 0x4ce   :  { %v455_v23 = vpop.permute.xlu1 %454 }
 0x4cf   :  { %v5424_v24 = vadd.f32 %v455_v23, %v447_v22 }
 0x4d1   :  { %5081 = vtanh.f32 %v5424_v24  ;;  %v720_v5 = vrot.slane %v5424_v24, 6 }
 0x4db   :  { %v5082_v37 = vpop.eup %5081 }
 0x4dc   :  { %460 = vrot.lane.b32.xlu1 %v5082_v37, %s5298_s23 }
 0x54e   :  { %v461_v38 = vpop.permute.xlu1 %460 }
 0x54f   :  { %v463_v40 = vmul.f32 %v5080_v20, %v461_v38 }
 0x551   :  { %535 = vrot.lane.b32.xlu1 %v463_v40, %s5299_s1 }
 0x5c3   :  { %v536_v44 = vpop.permute.xlu1 %535 }
 0x5c4   :  { %4396 = vmatmul.mubr.msk.f32.vlgmr.msra.gmra.mrb[6].mxu0 %vm225_vm4, %v536_v44  ;;  %4407 = vmatmul.mubr.msk.f32.vlgmr.msra.gmra.mrb[4].mxu1 %vm225_vm4, %v536_v44 }
 0x5c5   :  { %4843 = vmatpush3.bf16.msra.mxu0 %v5436_v28  ;;  %4849 = vmatpush3.bf16.msra.mxu1 %v5447_v32 }
 0x5c6   :  { %4844 = vmatprep.subr.bf16.mxu0 %v5295_v39  ;;  %4850 = vmatprep.subr.bf16.mxu1 %v5295_v39 }
 0x5c7   :  { %4417 = vmatprep.mubr.msk.f32.mxu0 %vm5296_vm5, %v5297_v48  ;;  %4428 = vmatprep.mubr.msk.f32.mxu1 %vm5296_vm5, %v5297_v48 }
 0x5c9   :  { %4846 = vmatpush3.bf16.msra.mxu0 %v5456_v35  ;;  %4852 = vmatpush3.bf16.msra.mxu1 %v5460_v36 }
 0x5ca   :  { %4853 = vmatprep.subr.bf16.mxu0 %v5295_v39  ;;  %4859 = vmatprep.subr.bf16.mxu1 %v5295_v39 }
 0x697   :  { %v605_v46 = vpop.f32.mrb[6].mxu0  ;;  %v704_v49 = vpop.f32.mrb[4].mxu1 }
 0x698   :  { %v606_v50 = vadd.f32 %v605_v46, %v530_v41  ;;  %v709_v51 = vrot.slane %v704_v49, 6  ;;  %v4397_v52 = vpop.f32.mrb[7].mxu0  ;;  %v4408_v53 = vpop.f32.mrb[5].mxu1 }
 0x69a   :  { %v613_v54 = vadd.f32 %v5493_v45, %v606_v50  ;;  %v711_v55 = vadd.f32 %v709_v51, %v5419_v11 }
 0x69c   :  { %5083 = vtanh.f32 %v613_v54  ;;  %v4077_v2 = vmul.f32 -1.442695, %v613_v54  ;;  %v4079_v16 = vmul.f32 -1.442695, %v711_v55 }
 0x69d   :  { %5085 = vtanh.f32 %v711_v55 }
 0x69e   :  { %5087 = vpow2.f32 %v4077_v2 }
 0x69f   :  { %5089 = vpow2.f32 %v4079_v16 }
 0x6a6   :  { %v5084_v56 = vpop.eup %5083 }
 0x6a7   :  { %v5086_v57 = vpop.eup %5085  ;;  %623 = vrot.lane.b32.xlu0 %v5084_v56, %s5298_s23 }
 0x6a8   :  { %724 = vrot.lane.b32.xlu1 %v5086_v57, %s5298_s23  ;;  %v5088_v58 = vpop.eup %5087 }
 0x6a9   :  { %v5090_v59 = vpop.eup %5089  ;;  %v617_v60 = vadd.f32 1.0, %v5088_v58 }
 0x6aa   :  { %v715_v61 = vadd.f32 1.0, %v5090_v59 }
 0x6ab   :  { %5091 = vrcp.f32 %v617_v60 }
 0x6ac   :  { %5093 = vrcp.f32 %v715_v61 }
 0x6b5   :  { %v5092_v62 = vpop.eup %5091 }
 0x6b6   :  { %v5094_v0 = vpop.eup %5093  ;;  %v621_v6 = vmul.f32 0.0, %v5092_v62 }
 0x6b7   :  { %v722_v7 = vmul.f32 %v5094_v0, %v720_v5 }
 0x719   :  { %v624_v63 = vpop.permute.xlu0 %623 }
 0x71a   :  { %v725_v1 = vpop.permute.xlu1 %724  ;;  %v626_v3 = vmul.f32 %v5092_v62, %v624_v63 }
 0x71b   :  { %v727_v4 = vmul.f32 %v5094_v0, %v725_v1 }
 0x71c   :  { %628 = vrot.lane.b32.xlu0 %v626_v3, %s5298_s23 }
 0x71d   :  { %729 = vrot.lane.b32.xlu1 %v727_v4, %s5298_s23 }
 0x78e   :  { %v629_v8 = vpop.permute.xlu0 %628 }
 0x78f   :  { %v730_v10 = vpop.permute.xlu1 %729  ;;  %v5502_v12 = vadd.f32 %v629_v8, %v621_v6 }
 0x790   :  { %v5504_v13 = vadd.f32 %v730_v10, %v722_v7 }
 0x791   :  { %5095 = vtanh.f32 %v5502_v12 }
 0x792   :  { %5097 = vtanh.f32 %v5504_v13  ;;  %v997_v59 = vrot.slane %v5504_v13, 6 }
 0x79b   :  { %v5096_v14 = vpop.eup %5095 }
 0x79c   :  { %v5098_v18 = vpop.eup %5097  ;;  %634 = vrot.lane.b32.xlu0 %v5096_v14, %s5298_s23 }
 0x79d   :  { %735 = vrot.lane.b32.xlu1 %v5098_v18, %s5298_s23 }
 0x80e   :  { %v635_v19 = vpop.permute.xlu0 %634 }
 0x80f   :  { %v736_v20 = vpop.permute.xlu1 %735  ;;  %v637_v17 = vmul.f32 %v5092_v62, %v635_v19 }
 0x810   :  { %v738_v21 = vmul.f32 %v5094_v0, %v736_v20 }
 0x811   :  { %740 = vrot.lane.b32.xlu0 %v637_v17, %s5299_s1 }
 0x812   :  { %v815_v22 = vrot.slane %v738_v21, 2 }
 0x814   :  { %816 = vrot.lane.b32.xlu1 %v815_v22, %s5299_s1 }
 0x883   :  { %v5512_v23 = vpop.permute.xlu0 %740 }
 0x884   :  { %4418 = vmatmul.mubr.msk.f32.vlgmr.msra.gmra.mrb[8].mxu0 %vm225_vm4, %v5512_v23 }
 0x885   :  { %4855 = vmatpush3.bf16.msra.mxu0 %v5387_v43  ;;  %4439 = vmatprep.mubr.msk.f32.mxu0 %vm5296_vm5, %v5297_v48 }
 0x886   :  { %v817_v24 = vpop.permute.xlu1 %816  ;;  %4856 = vmatprep.subr.bf16.mxu0 %v5295_v39 }
 0x887   :  { %4429 = vmatmul.mubr.msk.f32.vlgmr.msra.gmra.mrb[6].mxu1 %vm225_vm4, %v817_v24 }
 0x888   :  { %4861 = vmatpush3.bf16.msra.mxu1 %v5436_v28  ;;  %4450 = vmatprep.mubr.msk.f32.mxu1 %vm5296_vm5, %v5297_v48 }
 0x889   :  { %4858 = vmatpush3.bf16.msra.mxu0 %v5398_v47  ;;  %4862 = vmatprep.subr.bf16.mxu1 %v5295_v39 }
 0x88a   :  { %4865 = vmatprep.subr.bf16.mxu0 %v5295_v39 }
 0x88c   :  { %4440 = vmatmul.mubr.msk.f32.vlgmr.msra.gmra.mrb[10].mxu0 %vm225_vm4, %v817_v24  ;;  %4864 = vmatpush3.bf16.msra.mxu1 %v5456_v35 }
 0x88d   :  { %4871 = vmatprep.subr.bf16.mxu1 %v5295_v39  ;;  %4867 = vmatpush3.bf16.msra.mxu0 %v5447_v32 }
 0x88e   :  { %4868 = vmatprep.subr.bf16.mxu0 %v5295_v39  ;;  %4461 = vmatprep.mubr.msk.f32.mxu0 %vm5296_vm5, %v5297_v48 }
 0x891   :  { %4870 = vmatpush3.bf16.msra.mxu0 %v5460_v36 }
 0x892   :  { %4877 = vmatprep.subr.bf16.mxu0 %v5295_v39 }
 0x957   :  { %v810_v25 = vpop.f32.mrb[8].mxu0 }
 0x958   :  { %v4419_v26 = vpop.f32.mrb[9].mxu0 }
 0x95a   :  { %v886_v27 = vpop.f32.mrb[6].mxu1 }
 0x95b   :  { %v887_v29 = vadd.f32 %v886_v27, %v810_v25  ;;  %v4430_v30 = vpop.f32.mrb[7].mxu1 }
 0x95d   :  { %v890_v31 = vadd.f32 %v887_v29, %v5493_v45 }
 0x95f   :  { %5099 = vtanh.f32 %v890_v31  ;;  %v981_v33 = vpop.f32.mrb[10].mxu0  ;;  %v4082_v42 = vmul.f32 -1.442695, %v890_v31 }
 0x960   :  { %v986_v34 = vrot.slane %v981_v33, 4  ;;  %v4441_v37 = vpop.f32.mrb[11].mxu0 }
 0x962   :  { %v988_v38 = vadd.f32 %v986_v34, %v5419_v11 }
 0x964   :  { %5101 = vtanh.f32 %v988_v38  ;;  %v4084_v44 = vmul.f32 -1.442695, %v988_v38 }
 0x965   :  { %5103 = vpow2.f32 %v4082_v42 }
 0x966   :  { %5105 = vpow2.f32 %v4084_v44 }
 0x969   :  { %v5100_v40 = vpop.eup %5099 }
 0x96a   :  { %900 = vrot.lane.b32.xlu0 %v5100_v40, %s5298_s23 }
 0x96e   :  { %v5102_v41 = vpop.eup %5101 }
 0x96f   :  { %1001 = vrot.lane.b32.xlu1 %v5102_v41, %s5298_s23  ;;  %v5104_v46 = vpop.eup %5103 }
 0x970   :  { %v894_v49 = vadd.f32 1.0, %v5104_v46  ;;  %v5106_v50 = vpop.eup %5105 }
 0x971   :  { %v992_v51 = vadd.f32 1.0, %v5106_v50 }
 0x972   :  { %5107 = vrcp.f32 %v894_v49 }
 0x973   :  { %5109 = vrcp.f32 %v992_v51 }
 0x97c   :  { %v5108_v52 = vpop.eup %5107 }
 0x97d   :  { %v5110_v55 = vpop.eup %5109  ;;  %v898_v2 = vmul.f32 %v5108_v52, %v5502_v12 }
 0x97e   :  { %v999_v60 = vmul.f32 %v5110_v55, %v997_v59 }
 0x9dc   :  { %v901_v53 = vpop.permute.xlu0 %900 }
 0x9dd   :  { %v903_v54 = vmul.f32 %v5108_v52, %v901_v53 }
 0x9df   :  { %905 = vrot.lane.b32.xlu0 %v903_v54, %s5298_s23 }
 0x9e1   :  { %v1002_v56 = vpop.permute.xlu1 %1001 }
 0x9e2   :  { %v1004_v57 = vmul.f32 %v5110_v55, %v1002_v56 }
 0x9e4   :  { %1006 = vrot.lane.b32.xlu1 %v1004_v57, %s5298_s23 }
 0xa51   :  { %v906_v16 = vpop.permute.xlu0 %905 }
 0xa52   :  { %v5543_v58 = vadd.f32 %v906_v16, %v898_v2 }
 0xa54   :  { %5111 = vtanh.f32 %v5543_v58 }
 0xa56   :  { %v1007_v61 = vpop.permute.xlu1 %1006 }
 0xa57   :  { %v5547_v62 = vadd.f32 %v1007_v61, %v999_v60 }
 0xa59   :  { %5113 = vtanh.f32 %v5547_v62  ;;  %v1274_v42 = vrot.slane %v5547_v62, 6 }
 0xa5e   :  { %v5112_v63 = vpop.eup %5111 }
 0xa5f   :  { %911 = vrot.lane.b32.xlu0 %v5112_v63, %s5298_s23 }
 0xa63   :  { %v5114_v0 = vpop.eup %5113 }
 0xa64   :  { %1012 = vrot.lane.b32.xlu1 %v5114_v0, %s5298_s23 }
 0xad1   :  { %v912_v1 = vpop.permute.xlu0 %911 }
 0xad2   :  { %v914_v3 = vmul.f32 %v5108_v52, %v912_v1 }
 0xad4   :  { %1017 = vrot.lane.b32.xlu0 %v914_v3, %s5299_s1 }
 0xad6   :  { %v1013_v4 = vpop.permute.xlu1 %1012 }
 0xad7   :  { %v1015_v5 = vmul.f32 %v5110_v55, %v1013_v4 }
 0xad9   :  { %v1092_v6 = vrot.slane %v1015_v5, 4 }
 0xadb   :  { %1093 = vrot.lane.b32.xlu1 %v1092_v6, %s5299_s1 }
 0xb46   :  { %v5554_v7 = vpop.permute.xlu0 %1017 }
 0xb47   :  { %4451 = vmatmul.mubr.msk.f32.vlgmr.msra.gmra.mrb[8].mxu1 %vm225_vm4, %v5554_v7 }
 0xb48   :  { %4873 = vmatpush3.bf16.msra.mxu1 %v5387_v43  ;;  %4472 = vmatprep.mubr.msk.f32.mxu1 %vm5296_vm5, %v5297_v48 }
 0xb49   :  { %4874 = vmatprep.subr.bf16.mxu1 %v5295_v39 }
 0xb4c   :  { %4876 = vmatpush3.bf16.msra.mxu1 %v5398_v47 }
 0xb4d   :  { %v1094_v8 = vpop.permute.xlu1 %1093  ;;  %4883 = vmatprep.subr.bf16.mxu1 %v5295_v39 }
 0xb4e   :  { %4462 = vmatmul.mubr.msk.f32.vlgmr.msra.gmra.mrb[12].mxu0 %vm225_vm4, %v1094_v8 }
 0xb4f   :  { %4473 = vmatmul.mubr.msk.f32.vlgmr.msra.gmra.mrb[10].mxu1 %vm225_vm4, %v1094_v8  ;;  %4879 = vmatpush3.bf16.msra.mxu0 %v5436_v28 }
 0xb50   :  { %4880 = vmatprep.subr.bf16.mxu0 %v5295_v39  ;;  %4885 = vmatpush3.bf16.msra.mxu1 %v5447_v32 }
 0xb51   :  { %4886 = vmatprep.subr.bf16.mxu1 %v5295_v39  ;;  %4483 = vmatprep.mubr.msk.f32.mxu0 %vm5296_vm5, %v5297_v48 }
 0xb52   :  { %4494 = vmatprep.mubr.msk.f32.mxu1 %vm5296_vm5, %v5297_v48 }
 0xb53   :  { %4882 = vmatpush3.bf16.msra.mxu0 %v5456_v35 }
 0xb54   :  { %4888 = vmatpush3.bf16.msra.mxu1 %v5460_v36  ;;  %4889 = vmatprep.subr.bf16.mxu0 %v5295_v39 }
 0xb55   :  { %4895 = vmatprep.subr.bf16.mxu1 %v5295_v39 }
 0xc1a   :  { %v1087_v10 = vpop.f32.mrb[8].mxu1 }
 0xc1b   :  { %v4452_v12 = vpop.f32.mrb[9].mxu1 }
 0xc21   :  { %v1163_v13 = vpop.f32.mrb[12].mxu0 }
 0xc22   :  { %v1164_v14 = vadd.f32 %v1163_v13, %v1087_v10  ;;  %v1258_v18 = vpop.f32.mrb[10].mxu1  ;;  %v4463_v19 = vpop.f32.mrb[13].mxu0 }
 0xc23   :  { %v1263_v20 = vrot.slane %v1258_v18, 2  ;;  %v4474_v17 = vpop.f32.mrb[11].mxu1 }
 0xc24   :  { %v1167_v21 = vadd.f32 %v1164_v14, %v5493_v45 }
 0xc25   :  { %v1265_v22 = vadd.f32 %v1263_v20, %v5419_v11 }
 0xc26   :  { %5115 = vtanh.f32 %v1167_v21  ;;  %v4087_v26 = vmul.f32 -1.442695, %v1167_v21 }
 0xc27   :  { %5117 = vtanh.f32 %v1265_v22  ;;  %v4089_v27 = vmul.f32 -1.442695, %v1265_v22 }
 0xc28   :  { %5119 = vpow2.f32 %v4087_v26 }
 0xc29   :  { %5121 = vpow2.f32 %v4089_v27 }
 0xc30   :  { %v5116_v24 = vpop.eup %5115 }
 0xc31   :  { %v5118_v25 = vpop.eup %5117  ;;  %1177 = vrot.lane.b32.xlu1 %v5116_v24, %s5298_s23 }
 0xc32   :  { %1278 = vrot.lane.b32.xlu0 %v5118_v25, %s5298_s23  ;;  %v5120_v29 = vpop.eup %5119 }
 0xc33   :  { %v5122_v30 = vpop.eup %5121  ;;  %v1171_v31 = vadd.f32 1.0, %v5120_v29 }
 0xc34   :  { %v1269_v33 = vadd.f32 1.0, %v5122_v30 }
 0xc35   :  { %5123 = vrcp.f32 %v1171_v31 }
 0xc36   :  { %5125 = vrcp.f32 %v1269_v33 }
 0xc3f   :  { %v5124_v34 = vpop.eup %5123 }
 0xc40   :  { %v5126_v37 = vpop.eup %5125  ;;  %v1175_v44 = vmul.f32 %v5124_v34, %v5543_v58 }
 0xc41   :  { %v1276_v46 = vmul.f32 %v5126_v37, %v1274_v42 }
 0xca3   :  { %v1178_v11 = vpop.permute.xlu1 %1177 }
 0xca4   :  { %v1279_v38 = vpop.permute.xlu0 %1278  ;;  %v1180_v40 = vmul.f32 %v5124_v34, %v1178_v11 }
 0xca5   :  { %v1281_v41 = vmul.f32 %v5126_v37, %v1279_v38 }
 0xca6   :  { %1182 = vrot.lane.b32.xlu1 %v1180_v40, %s5298_s23 }
 0xca7   :  { %1283 = vrot.lane.b32.xlu0 %v1281_v41, %s5298_s23 }
 0xd18   :  { %v1183_v49 = vpop.permute.xlu1 %1182 }
 0xd19   :  { %v1284_v50 = vpop.permute.xlu0 %1283  ;;  %v5586_v51 = vadd.f32 %v1183_v49, %v1175_v44 }
 0xd1a   :  { %v5588_v52 = vadd.f32 %v1284_v50, %v1276_v46 }
 0xd1b   :  { %5127 = vtanh.f32 %v5586_v51 }
 0xd1c   :  { %5129 = vtanh.f32 %v5588_v52  ;;  %v1548_v27 = vrot.slane %v5588_v52, 6 }
 0xd25   :  { %v5128_v53 = vpop.eup %5127 }
 0xd26   :  { %v5130_v54 = vpop.eup %5129  ;;  %1188 = vrot.lane.b32.xlu1 %v5128_v53, %s5298_s23 }
 0xd27   :  { %1289 = vrot.lane.b32.xlu0 %v5130_v54, %s5298_s23 }
 0xd98   :  { %v1189_v55 = vpop.permute.xlu1 %1188 }
 0xd99   :  { %v1290_v56 = vpop.permute.xlu0 %1289  ;;  %v1191_v57 = vmul.f32 %v5124_v34, %v1189_v55 }
 0xd9a   :  { %v1292_v2 = vmul.f32 %v5126_v37, %v1290_v56 }
 0xd9b   :  { %1294 = vrot.lane.b32.xlu0 %v1191_v57, %s5299_s1 }
 0xd9c   :  { %v1369_v16 = vrot.slane %v1292_v2, 6 }
 0xd9e   :  { %1370 = vrot.lane.b32.xlu1 %v1369_v16, %s5299_s1 }
 0xe0d   :  { %v5596_v58 = vpop.permute.xlu0 %1294 }
 0xe0e   :  { %4484 = vmatmul.mubr.msk.f32.vlgmr.msra.gmra.mrb[14].mxu0 %vm225_vm4, %v5596_v58 }
 0xe0f   :  { %4891 = vmatpush3.bf16.msra.mxu0 %v5387_v43  ;;  %4505 = vmatprep.mubr.msk.f32.mxu0 %vm5296_vm5, %v5297_v48 }
 0xe10   :  { %v1371_v59 = vpop.permute.xlu1 %1370  ;;  %4892 = vmatprep.subr.bf16.mxu0 %v5295_v39 }
 0xe11   :  { %4495 = vmatmul.mubr.msk.f32.vlgmr.msra.gmra.mrb[12].mxu1 %vm225_vm4, %v1371_v59 }
 0xe12   :  { %4897 = vmatpush3.bf16.msra.mxu1 %v5436_v28  ;;  %4516 = vmatprep.mubr.msk.f32.mxu1 %vm5296_vm5, %v5297_v48 }
 0xe13   :  { %4894 = vmatpush3.bf16.msra.mxu0 %v5398_v47  ;;  %4898 = vmatprep.subr.bf16.mxu1 %v5295_v39 }
 0xe14   :  { %4901 = vmatprep.subr.bf16.mxu0 %v5295_v39 }
 0xe16   :  { %4506 = vmatmul.mubr.msk.f32.vlgmr.msra.gmra.mrb[16].mxu0 %vm225_vm4, %v1371_v59  ;;  %4900 = vmatpush3.bf16.msra.mxu1 %v5456_v35 }
 0xe17   :  { %4903 = vmatpush3.bf16.msra.mxu0 %v5447_v32  ;;  %4907 = vmatprep.subr.bf16.mxu1 %v5295_v39 }
 0xe18   :  { %4904 = vmatprep.subr.bf16.mxu0 %v5295_v39  ;;  %4527 = vmatprep.mubr.msk.f32.mxu0 %vm5296_vm5, %v5297_v48 }
 0xe1b   :  { %4906 = vmatpush3.bf16.msra.mxu0 %v5460_v36 }
 0xe1c   :  { %4913 = vmatprep.subr.bf16.mxu0 %v5295_v39 }
 0xee1   :  { %v1364_v60 = vpop.f32.mrb[14].mxu0 }
 0xee2   :  { %v4485_v61 = vpop.f32.mrb[15].mxu0 }
 0xee4   :  { %v1440_v62 = vpop.f32.mrb[12].mxu1 }
 0xee5   :  { %v1441_v63 = vadd.f32 %v1440_v62, %v1364_v60  ;;  %v4496_v0 = vpop.f32.mrb[13].mxu1 }
 0xee7   :  { %v1444_v1 = vadd.f32 %v1441_v63, %v5493_v45 }
 0xee9   :  { %5131 = vtanh.f32 %v1444_v1  ;;  %v1535_v3 = vpop.f32.mrb[16].mxu0  ;;  %v4092_v10 = vmul.f32 -1.442695, %v1444_v1 }
 0xeea   :  { %v1539_v4 = vadd.f32 %v1535_v3, %v5417_v9  ;;  %v4507_v5 = vpop.f32.mrb[17].mxu0 }
 0xeec   :  { %5133 = vtanh.f32 %v1539_v4  ;;  %v4094_v12 = vmul.f32 -1.442695, %v1539_v4 }
 0xeed   :  { %5135 = vpow2.f32 %v4092_v10 }
 0xeee   :  { %5137 = vpow2.f32 %v4094_v12 }
 0xef3   :  { %v5132_v6 = vpop.eup %5131 }
 0xef4   :  { %1454 = vrot.lane.b32.xlu0 %v5132_v6, %s5298_s23 }
 0xef6   :  { %v5134_v8 = vpop.eup %5133 }
 0xef7   :  { %1552 = vrot.lane.b32.xlu1 %v5134_v8, %s5298_s23  ;;  %v5136_v13 = vpop.eup %5135 }
 0xef8   :  { %v5138_v14 = vpop.eup %5137  ;;  %v1448_v18 = vadd.f32 1.0, %v5136_v13 }
 0xef9   :  { %v1543_v19 = vadd.f32 1.0, %v5138_v14 }
 0xefa   :  { %5139 = vrcp.f32 %v1448_v18 }
 0xefb   :  { %5141 = vrcp.f32 %v1543_v19 }
 0xf04   :  { %v5140_v20 = vpop.eup %5139 }
 0xf05   :  { %v5142_v22 = vpop.eup %5141  ;;  %v1452_v26 = vmul.f32 %v5140_v20, %v5586_v51 }
 0xf06   :  { %v1550_v31 = vmul.f32 %v5142_v22, %v1548_v27 }
 0xf66   :  { %v1455_v17 = vpop.permute.xlu0 %1454 }
 0xf67   :  { %v1457_v21 = vmul.f32 %v5140_v20, %v1455_v17 }
 0xf69   :  { %1459 = vrot.lane.b32.xlu0 %v1457_v21, %s5298_s23  ;;  %v1553_v24 = vpop.permute.xlu1 %1552 }
 0xf6a   :  { %v1555_v25 = vmul.f32 %v5142_v22, %v1553_v24 }
 0xf6c   :  { %1557 = vrot.lane.b32.xlu1 %v1555_v25, %s5298_s23 }
 0xfdb   :  { %v1460_v29 = vpop.permute.xlu0 %1459 }
 0xfdc   :  { %v5628_v30 = vadd.f32 %v1460_v29, %v1452_v26 }
 0xfde   :  { %5143 = vtanh.f32 %v5628_v30  ;;  %v1558_v33 = vpop.permute.xlu1 %1557 }
 0xfdf   :  { %v5631_v34 = vadd.f32 %v1558_v33, %v1550_v31 }
 0xfe1   :  { %5145 = vtanh.f32 %v5631_v34  ;;  %v1824_v18 = vrot.slane %v5631_v34, 6 }
 0xfe8   :  { %v5144_v11 = vpop.eup %5143 }
 0xfe9   :  { %1465 = vrot.lane.b32.xlu0 %v5144_v11, %s5298_s23 }
 0xfeb   :  { %v5146_v37 = vpop.eup %5145 }
 0xfec   :  { %1563 = vrot.lane.b32.xlu1 %v5146_v37, %s5298_s23 }
0x105b   :  { %v1466_v38 = vpop.permute.xlu0 %1465 }
0x105c   :  { %v1468_v40 = vmul.f32 %v5140_v20, %v1466_v38 }
0x105e   :  { %1568 = vrot.lane.b32.xlu0 %v1468_v40, %s5299_s1  ;;  %v1564_v41 = vpop.permute.xlu1 %1563 }
0x105f   :  { %v1566_v42 = vmul.f32 %v5142_v22, %v1564_v41 }
0x1061   :  { %1643 = vrot.lane.b32.xlu1 %v1566_v42, %s5299_s1 }
0x10d0   :  { %v5638_v44 = vpop.permute.xlu0 %1568 }
0x10d1   :  { %4517 = vmatmul.mubr.msk.f32.vlgmr.msra.gmra.mrb[14].mxu1 %vm225_vm4, %v5638_v44 }
0x10d2   :  { %4909 = vmatpush3.bf16.msra.mxu1 %v5387_v43  ;;  %4538 = vmatprep.mubr.msk.f32.mxu1 %vm5296_vm5, %v5297_v48 }
0x10d3   :  { %v1644_v46 = vpop.permute.xlu1 %1643  ;;  %4910 = vmatprep.subr.bf16.mxu1 %v5295_v39 }
0x10d4   :  { %4528 = vmatmul.mubr.msk.f32.vlgmr.msra.gmra.mrb[18].mxu0 %vm225_vm4, %v1644_v46 }
0x10d5   :  { %4915 = vmatpush3.bf16.msra.mxu0 %v5436_v28  ;;  %4549 = vmatprep.mubr.msk.f32.mxu0 %vm5296_vm5, %v5297_v48 }
0x10d6   :  { %4912 = vmatpush3.bf16.msra.mxu1 %v5398_v47  ;;  %4916 = vmatprep.subr.bf16.mxu0 %v5295_v39 }
0x10d7   :  { %4919 = vmatprep.subr.bf16.mxu1 %v5295_v39 }
0x10d9   :  { %4539 = vmatmul.mubr.msk.f32.vlgmr.msra.gmra.mrb[16].mxu1 %vm225_vm4, %v1644_v46  ;;  %4918 = vmatpush3.bf16.msra.mxu0 %v5456_v35 }
0x10da   :  { %4921 = vmatpush3.bf16.msra.mxu1 %v5447_v32  ;;  %4925 = vmatprep.subr.bf16.mxu0 %v5295_v39 }
0x10db   :  { %4922 = vmatprep.subr.bf16.mxu1 %v5295_v39  ;;  %4560 = vmatprep.mubr.msk.f32.mxu1 %vm5296_vm5, %v5297_v48 }
0x10de   :  { %4924 = vmatpush3.bf16.msra.mxu1 %v5460_v36 }
0x10df   :  { %4931 = vmatprep.subr.bf16.mxu1 %v5295_v39 }
0x11a4   :  { %v1638_v49 = vpop.f32.mrb[14].mxu1 }
0x11a5   :  { %v4518_v50 = vpop.f32.mrb[15].mxu1 }
0x11a7   :  { %v1713_v51 = vpop.f32.mrb[18].mxu0 }
0x11a8   :  { %v1714_v52 = vadd.f32 %v1713_v51, %v1638_v49  ;;  %v4529_v53 = vpop.f32.mrb[19].mxu0 }
0x11aa   :  { %v1717_v54 = vadd.f32 %v1714_v52, %v5493_v45 }
0x11ac   :  { %5147 = vtanh.f32 %v1717_v54  ;;  %v1808_v55 = vpop.f32.mrb[16].mxu1  ;;  %v4097_v60 = vmul.f32 -1.442695, %v1717_v54 }
0x11ad   :  { %v1813_v56 = vrot.slane %v1808_v55, 6  ;;  %v4540_v57 = vpop.f32.mrb[17].mxu1 }
0x11af   :  { %v1815_v2 = vadd.f32 %v1813_v56, %v5417_v9 }
0x11b1   :  { %5149 = vtanh.f32 %v1815_v2  ;;  %v4099_v61 = vmul.f32 -1.442695, %v1815_v2 }
0x11b2   :  { %5151 = vpow2.f32 %v4097_v60 }
0x11b3   :  { %5153 = vpow2.f32 %v4099_v61 }
0x11b6   :  { %v5148_v16 = vpop.eup %5147 }
0x11b7   :  { %1727 = vrot.lane.b32.xlu0 %v5148_v16, %s5298_s23 }
0x11bb   :  { %v5150_v59 = vpop.eup %5149 }
0x11bc   :  { %1828 = vrot.lane.b32.xlu1 %v5150_v59, %s5298_s23  ;;  %v5152_v62 = vpop.eup %5151 }
0x11bd   :  { %v1721_v63 = vadd.f32 1.0, %v5152_v62  ;;  %v5154_v0 = vpop.eup %5153 }
0x11be   :  { %v1819_v1 = vadd.f32 1.0, %v5154_v0 }
0x11bf   :  { %5155 = vrcp.f32 %v1721_v63 }
0x11c0   :  { %5157 = vrcp.f32 %v1819_v1 }
0x11c9   :  { %v5156_v3 = vpop.eup %5155 }
0x11ca   :  { %v5158_v6 = vpop.eup %5157  ;;  %v1725_v12 = vmul.f32 %v5156_v3, %v5628_v30 }
0x11cb   :  { %v1826_v19 = vmul.f32 %v5158_v6, %v1824_v18 }
0x1229   :  { %v1728_v4 = vpop.permute.xlu0 %1727 }
0x122a   :  { %v1730_v5 = vmul.f32 %v5156_v3, %v1728_v4 }
0x122c   :  { %1732 = vrot.lane.b32.xlu0 %v1730_v5, %s5298_s23 }
0x122e   :  { %v1829_v8 = vpop.permute.xlu1 %1828 }
0x122f   :  { %v1831_v10 = vmul.f32 %v5158_v6, %v1829_v8 }
0x1231   :  { %1833 = vrot.lane.b32.xlu1 %v1831_v10, %s5298_s23 }
0x129e   :  { %v1733_v13 = vpop.permute.xlu0 %1732 }
0x129f   :  { %v5669_v14 = vadd.f32 %v1733_v13, %v1725_v12 }
0x12a1   :  { %5159 = vtanh.f32 %v5669_v14 }
0x12a3   :  { %v1834_v20 = vpop.permute.xlu1 %1833 }
0x12a4   :  { %v5673_v17 = vadd.f32 %v1834_v20, %v1826_v19 }
0x12a6   :  { %5161 = vtanh.f32 %v5673_v17  ;;  %v2101_v63 = vrot.slane %v5673_v17, 6 }
0x12ab   :  { %v5160_v21 = vpop.eup %5159 }
0x12ac   :  { %1738 = vrot.lane.b32.xlu0 %v5160_v21, %s5298_s23 }
0x12b0   :  { %v5162_v22 = vpop.eup %5161 }
0x12b1   :  { %1839 = vrot.lane.b32.xlu1 %v5162_v22, %s5298_s23 }
0x131e   :  { %v1739_v24 = vpop.permute.xlu0 %1738 }
0x131f   :  { %v1741_v25 = vmul.f32 %v5156_v3, %v1739_v24 }
0x1321   :  { %1844 = vrot.lane.b32.xlu0 %v1741_v25, %s5299_s1 }
0x1323   :  { %v1840_v26 = vpop.permute.xlu1 %1839 }
0x1324   :  { %v1842_v27 = vmul.f32 %v5158_v6, %v1840_v26 }
0x1326   :  { %v1919_v29 = vrot.slane %v1842_v27, 2 }
0x1328   :  { %1920 = vrot.lane.b32.xlu1 %v1919_v29, %s5299_s1 }
0x1393   :  { %v5680_v30 = vpop.permute.xlu0 %1844 }
0x1394   :  { %4550 = vmatmul.mubr.msk.f32.vlgmr.msra.gmra.mrb[20].mxu0 %vm225_vm4, %v5680_v30 }
0x1395   :  { %4927 = vmatpush3.bf16.msra.mxu0 %v5387_v43  ;;  %4571 = vmatprep.mubr.msk.f32.mxu0 %vm5296_vm5, %v5297_v48 }
0x1396   :  { %4928 = vmatprep.subr.bf16.mxu0 %v5295_v39 }
0x1399   :  { %4930 = vmatpush3.bf16.msra.mxu0 %v5398_v47 }
0x139a   :  { %v1921_v31 = vpop.permute.xlu1 %1920  ;;  %4937 = vmatprep.subr.bf16.mxu0 %v5295_v39 }
0x139b   :  { %4561 = vmatmul.mubr.msk.f32.vlgmr.msra.gmra.mrb[18].mxu1 %vm225_vm4, %v1921_v31 }
0x139c   :  { %4572 = vmatmul.mubr.msk.f32.vlgmr.msra.gmra.mrb[22].mxu0 %vm225_vm4, %v1921_v31  ;;  %4933 = vmatpush3.bf16.msra.mxu1 %v5436_v28 }
0x139d   :  { %4934 = vmatprep.subr.bf16.mxu1 %v5295_v39  ;;  %4939 = vmatpush3.bf16.msra.mxu0 %v5447_v32 }
0x139e   :  { %4582 = vmatprep.mubr.msk.f32.mxu1 %vm5296_vm5, %v5297_v48  ;;  %4940 = vmatprep.subr.bf16.mxu0 %v5295_v39 }
0x139f   :  { %4593 = vmatprep.mubr.msk.f32.mxu0 %vm5296_vm5, %v5297_v48 }
0x13a0   :  { %4936 = vmatpush3.bf16.msra.mxu1 %v5456_v35 }
0x13a1   :  { %4943 = vmatprep.subr.bf16.mxu1 %v5295_v39  ;;  %4942 = vmatpush3.bf16.msra.mxu0 %v5460_v36 }
0x13a2   :  { %4949 = vmatprep.subr.bf16.mxu0 %v5295_v39 }
0x1467   :  { %v1914_v33 = vpop.f32.mrb[20].mxu0 }
0x1468   :  { %v4551_v34 = vpop.f32.mrb[21].mxu0 }
0x146e   :  { %v1990_v11 = vpop.f32.mrb[18].mxu1 }
0x146f   :  { %v1991_v37 = vadd.f32 %v1990_v11, %v1914_v33  ;;  %v4562_v38 = vpop.f32.mrb[19].mxu1  ;;  %v2085_v40 = vpop.f32.mrb[22].mxu0 }
0x1470   :  { %v2090_v41 = vrot.slane %v2085_v40, 4  ;;  %v4573_v42 = vpop.f32.mrb[23].mxu0 }
0x1471   :  { %v1994_v46 = vadd.f32 %v1991_v37, %v5493_v45 }
0x1472   :  { %v2092_v49 = vadd.f32 %v2090_v41, %v5417_v9 }
0x1473   :  { %5163 = vtanh.f32 %v1994_v46  ;;  %v4102_v52 = vmul.f32 -1.442695, %v1994_v46 }
0x1474   :  { %5165 = vtanh.f32 %v2092_v49  ;;  %v4104_v53 = vmul.f32 -1.442695, %v2092_v49 }
0x1475   :  { %5167 = vpow2.f32 %v4102_v52 }
0x1476   :  { %5169 = vpow2.f32 %v4104_v53 }
0x147d   :  { %v5164_v50 = vpop.eup %5163 }
0x147e   :  { %v5166_v51 = vpop.eup %5165  ;;  %2004 = vrot.lane.b32.xlu0 %v5164_v50, %s5298_s23 }
0x147f   :  { %2105 = vrot.lane.b32.xlu1 %v5166_v51, %s5298_s23  ;;  %v5168_v54 = vpop.eup %5167 }
0x1480   :  { %v5170_v55 = vpop.eup %5169  ;;  %v1998_v56 = vadd.f32 1.0, %v5168_v54 }
0x1481   :  { %v2096_v57 = vadd.f32 1.0, %v5170_v55 }
0x1482   :  { %5171 = vrcp.f32 %v1998_v56 }
0x1483   :  { %5173 = vrcp.f32 %v2096_v57 }
0x148c   :  { %v5172_v2 = vpop.eup %5171 }
0x148d   :  { %v5174_v59 = vpop.eup %5173  ;;  %v2002_v0 = vmul.f32 %v5172_v2, %v5669_v14 }
0x148e   :  { %v2103_v3 = vmul.f32 %v5174_v59, %v2101_v63  ;;  %v37_v63 = vld [vmem:[%s6088_s2 + $0x10] sm:$0xff] }
0x14f0   :  { %v2005_v16 = vpop.permute.xlu0 %2004 }
0x14f1   :  { %v2007_v60 = vmul.f32 %v5172_v2, %v2005_v16  ;;  %v2106_v61 = vpop.permute.xlu1 %2105 }
0x14f2   :  { %v2108_v62 = vmul.f32 %v5174_v59, %v2106_v61 }
0x14f3   :  { %2009 = vrot.lane.b32.xlu0 %v2007_v60, %s5298_s23 }
0x14f4   :  { %2110 = vrot.lane.b32.xlu1 %v2108_v62, %s5298_s23  ;;  %v36_v62 = vld [vmem:[%s6088_s2 + $0x8] sm:$0xff] }
0x1565   :  { %v2010_v1 = vpop.permute.xlu0 %2009 }
0x1566   :  { %v5712_v4 = vadd.f32 %v2010_v1, %v2002_v0  ;;  %v2111_v5 = vpop.permute.xlu1 %2110  ;;  %v4962_v0 = vpack.c.bf16 %v37_v63, %v36_v62  ;;  %v38_v1 = vld [vmem:[%s6088_s2 + $0x18] sm:$0xff] }
0x1567   :  { %v5714_v6 = vadd.f32 %v2111_v5, %v2103_v3  ;;  %v39_v3 = vld [vmem:[%s6088_s2 + $0x20] sm:$0xff] }
0x1568   :  { %5175 = vtanh.f32 %v5712_v4  ;;  %v4965_v5 = vpack.c.bf16 %v39_v3, %v38_v1 }
0x1569   :  { %5177 = vtanh.f32 %v5714_v6  ;;  %v2378_v52 = vrot.slane %v5714_v6, 6 }
0x1572   :  { %v5176_v8 = vpop.eup %5175 }
0x1573   :  { %v5178_v10 = vpop.eup %5177  ;;  %2015 = vrot.lane.b32.xlu0 %v5176_v8, %s5298_s23 }
0x1574   :  { %2116 = vrot.lane.b32.xlu1 %v5178_v10, %s5298_s23 }
0x15e5   :  { %v2016_v12 = vpop.permute.xlu0 %2015 }
0x15e6   :  { %v2018_v13 = vmul.f32 %v5172_v2, %v2016_v12  ;;  %v2117_v14 = vpop.permute.xlu1 %2116 }
0x15e7   :  { %v2119_v18 = vmul.f32 %v5174_v59, %v2117_v14 }
0x15e8   :  { %2121 = vrot.lane.b32.xlu0 %v2018_v13, %s5299_s1 }
0x15e9   :  { %v2196_v19 = vrot.slane %v2119_v18, 4 }
0x15eb   :  { %2197 = vrot.lane.b32.xlu1 %v2196_v19, %s5299_s1 }
0x165a   :  { %v5722_v20 = vpop.permute.xlu0 %2121 }
0x165b   :  { %4583 = vmatmul.mubr.msk.f32.vlgmr.msra.gmra.mrb[20].mxu1 %vm225_vm4, %v5722_v20 }
0x165c   :  { %4945 = vmatpush3.bf16.msra.mxu1 %v5387_v43  ;;  %4604 = vmatprep.mubr.msk.f32.mxu1 %vm5296_vm5, %v5297_v48 }
0x165d   :  { %v2198_v17 = vpop.permute.xlu1 %2197  ;;  %4946 = vmatprep.subr.bf16.mxu1 %v5295_v39 }
0x165e   :  { %4594 = vmatmul.mubr.msk.f32.vlgmr.msra.gmra.mrb[24].mxu0 %vm225_vm4, %v2198_v17 }
0x165f   :  { %4951 = vmatpush3.bf16.msra.mxu0 %v5436_v28  ;;  %4615 = vmatprep.mubr.msk.f32.mxu0 %vm5296_vm5, %v5297_v48 }
0x1660   :  { %4948 = vmatpush3.bf16.msra.mxu1 %v5398_v47  ;;  %4952 = vmatprep.subr.bf16.mxu0 %v5295_v39 }
0x1661   :  { %4955 = vmatprep.subr.bf16.mxu1 %v5295_v39 }
0x1663   :  { %4605 = vmatmul.mubr.msk.f32.vlgmr.msra.gmra.mrb[22].mxu1 %vm225_vm4, %v2198_v17  ;;  %4954 = vmatpush3.bf16.msra.mxu0 %v5456_v35 }
0x1664   :  { %4957 = vmatpush3.bf16.msra.mxu1 %v5447_v32  ;;  %4961 = vmatprep.subr.bf16.mxu0 %v5295_v39 }
0x1665   :  { %4958 = vmatprep.subr.bf16.mxu1 %v5295_v39  ;;  %4626 = vmatprep.mubr.msk.f32.mxu1 %vm5296_vm5, %v5297_v48 }
0x1668   :  { %4960 = vmatpush3.bf16.msra.mxu1 %v5460_v36 }
0x1669   :  { %4967 = vmatprep.subr.bf16.mxu1 %v5295_v39 }
0x172e   :  { %v2191_v43 = vpop.f32.mrb[20].mxu1 }
0x172f   :  { %v4584_v47 = vpop.f32.mrb[21].mxu1 }
0x1731   :  { %v2267_v28 = vpop.f32.mrb[24].mxu0 }
0x1732   :  { %v2268_v21 = vadd.f32 %v2267_v28, %v2191_v43  ;;  %v4595_v22 = vpop.f32.mrb[25].mxu0 }
0x1734   :  { %v2271_v35 = vadd.f32 %v2268_v21, %v5493_v45 }
0x1736   :  { %5179 = vtanh.f32 %v2271_v35  ;;  %v2362_v32 = vpop.f32.mrb[22].mxu1  ;;  %v4107_v29 = vmul.f32 -1.442695, %v2271_v35 }
0x1737   :  { %v2367_v24 = vrot.slane %v2362_v32, 2  ;;  %v4606_v25 = vpop.f32.mrb[23].mxu1 }
0x1739   :  { %v2369_v26 = vadd.f32 %v2367_v24, %v5417_v9 }
0x173b   :  { %5181 = vtanh.f32 %v2369_v26  ;;  %v4109_v31 = vmul.f32 -1.442695, %v2369_v26 }
0x173c   :  { %5183 = vpow2.f32 %v4107_v29 }
0x173d   :  { %5185 = vpow2.f32 %v4109_v31 }
0x1740   :  { %v5180_v27 = vpop.eup %5179 }
0x1741   :  { %2281 = vrot.lane.b32.xlu1 %v5180_v27, %s5298_s23 }
0x1745   :  { %v5182_v36 = vpop.eup %5181 }
0x1746   :  { %2382 = vrot.lane.b32.xlu0 %v5182_v36, %s5298_s23  ;;  %v5184_v33 = vpop.eup %5183 }
0x1747   :  { %v2275_v34 = vadd.f32 1.0, %v5184_v33  ;;  %v5186_v11 = vpop.eup %5185 }
0x1748   :  { %v2373_v37 = vadd.f32 1.0, %v5186_v11  ;;  %v2575_v11 = vsub.s32 3, %v5356_v15 }
0x1749   :  { %5187 = vrcp.f32 %v2275_v34 }
0x174a   :  { %5189 = vrcp.f32 %v2373_v37  ;;  %v5827_v37 = vld [vmem:[#allocation2] sm:$0xff] }
0x1753   :  { %v5188_v38 = vpop.eup %5187 }
0x1754   :  { %v5190_v41 = vpop.eup %5189  ;;  %v2279_v49 = vmul.f32 %v5188_v38, %v5712_v4 }
0x1755   :  { %v2380_v53 = vmul.f32 %v5190_v41, %v2378_v52 }
0x17b3   :  { %v2282_v40 = vpop.permute.xlu1 %2281 }
0x17b4   :  { %v2284_v9 = vmul.f32 %v5188_v38, %v2282_v40 }
0x17b6   :  { %2286 = vrot.lane.b32.xlu1 %v2284_v9, %s5298_s23 }
0x17b8   :  { %v2383_v42 = vpop.permute.xlu0 %2382 }
0x17b9   :  { %v2385_v46 = vmul.f32 %v5190_v41, %v2383_v42 }
0x17bb   :  { %2387 = vrot.lane.b32.xlu0 %v2385_v46, %s5298_s23 }
0x1828   :  { %v2287_v50 = vpop.permute.xlu1 %2286 }
0x1829   :  { %v5753_v51 = vadd.f32 %v2287_v50, %v2279_v49 }
0x182b   :  { %5191 = vtanh.f32 %v5753_v51 }
0x182d   :  { %v2388_v54 = vpop.permute.xlu0 %2387 }
0x182e   :  { %v2390_v55 = vadd.f32 %v2388_v54, %v2380_v53 }
0x1830   :  { %5193 = vtanh.f32 %v2390_v55 }
0x1835   :  { %v5192_v56 = vpop.eup %5191 }
0x1836   :  { %2292 = vrot.lane.b32.xlu1 %v5192_v56, %s5298_s23 }
0x183a   :  { %v5194_v57 = vpop.eup %5193 }
0x183b   :  { %2393 = vrot.lane.b32.xlu0 %v5194_v57, %s5298_s23 }
0x18a8   :  { %v2293_v2 = vpop.permute.xlu1 %2292 }
0x18a9   :  { %v2295_v16 = vmul.f32 %v5188_v38, %v2293_v2  ;;  %v5830_v38 = vrot.slane %v5827_v37, %v2575_v11 }
0x18ab   :  { %2398 = vrot.lane.b32.xlu0 %v2295_v16, %s5299_s1 }
0x18ad   :  { %v2394_v59 = vpop.permute.xlu0 %2393 }
0x18ae   :  { %v2396_v60 = vmul.f32 %v5190_v41, %v2394_v59 }
0x18b0   :  { %v2473_v61 = vrot.slane %v2396_v60, 6 }
0x18b2   :  { %2474 = vrot.lane.b32.xlu1 %v2473_v61, %s5299_s1 }
0x191d   :  { %v2399_v4 = vpop.permute.xlu0 %2398 }
0x191e   :  { %4616 = vmatmul.mubr.msk.f32.vlgmr.msra.gmra.mrb[26].mxu0 %vm225_vm4, %v2399_v4 }
0x191f   :  { %4963 = vmatpush3.bf16.msra.mxu0 %v4962_v0  ;;  %4637 = vmatprep.mubr.msk.f32.mxu0 %vm5296_vm5, %v5297_v48 }
0x1920   :  { %4964 = vmatprep.subr.bf16.mxu0 %v5295_v39 }
0x1923   :  { %4966 = vmatpush3.bf16.msra.mxu0 %v4965_v5 }
0x1924   :  { %v2475_v6 = vpop.permute.xlu1 %2474  ;;  %4973 = vmatprep.subr.bf16.mxu0 %v5295_v39 }
0x1925   :  { %4627 = vmatmul.mubr.msk.f32.vlgmr.msra.gmra.mrb[24].mxu1 %vm225_vm4, %v2475_v6 }
0x1926   :  { %4638 = vmatmul.mubr.msk.f32.vlgmr.msra.gmra.mrb[28].mxu0 %vm225_vm4, %v5512_v23  ;;  %4648 = vmatprep.mubr.msk.f32.mxu1 %vm5296_vm5, %v5297_v48 }
0x1927   :  { %4975 = vmatpush3.bf16.msra.mxu0 %v4962_v0  ;;  %4659 = vmatprep.mubr.msk.f32.mxu0 %vm5296_vm5, %v5297_v48 }
0x1928   :  { %4976 = vmatprep.subr.bf16.mxu0 %v5295_v39 }
0x192b   :  { %4978 = vmatpush3.bf16.msra.mxu0 %v4965_v5 }
0x192c   :  { %4985 = vmatprep.subr.bf16.mxu0 %v5295_v39 }
0x192e   :  { %4660 = vmatmul.mubr.msk.f32.vlgmr.msra.gmra.mrb[30].mxu0 %vm225_vm4, %v5554_v7 }
0x192f   :  { %4987 = vmatpush3.bf16.msra.mxu0 %v4962_v0  ;;  %4681 = vmatprep.mubr.msk.f32.mxu0 %vm5296_vm5, %v5297_v48 }
0x1930   :  { %4988 = vmatprep.subr.bf16.mxu0 %v5295_v39 }
0x1933   :  { %4990 = vmatpush3.bf16.msra.mxu0 %v4965_v5 }
0x1934   :  { %4997 = vmatprep.subr.bf16.mxu0 %v5295_v39 }
0x1936   :  { %4682 = vmatmul.mubr.msk.f32.vlgmr.msra.gmra.mrb[32].mxu0 %vm225_vm4, %v5596_v58 }
0x1937   :  { %4999 = vmatpush3.bf16.msra.mxu0 %v4962_v0  ;;  %4703 = vmatprep.mubr.msk.f32.mxu0 %vm5296_vm5, %v5297_v48 }
0x1938   :  { %5000 = vmatprep.subr.bf16.mxu0 %v5295_v39 }
0x193b   :  { %5002 = vmatpush3.bf16.msra.mxu0 %v4965_v5 }
0x193c   :  { %5009 = vmatprep.subr.bf16.mxu0 %v5295_v39 }
0x193e   :  { %4704 = vmatmul.mubr.msk.f32.vlgmr.msra.gmra.mrb[34].mxu0 %vm225_vm4, %v5638_v44 }
0x193f   :  { %5011 = vmatpush3.bf16.msra.mxu0 %v4962_v0  ;;  %4725 = vmatprep.mubr.msk.f32.mxu0 %vm5296_vm5, %v5297_v48 }
0x1940   :  { %5012 = vmatprep.subr.bf16.mxu0 %v5295_v39 }
0x1943   :  { %5014 = vmatpush3.bf16.msra.mxu0 %v4965_v5 }
0x1944   :  { %5021 = vmatprep.subr.bf16.mxu0 %v5295_v39 }
0x1946   :  { %4726 = vmatmul.mubr.msk.f32.vlgmr.msra.gmra.mrb[36].mxu0 %vm225_vm4, %v5680_v30 }
0x1947   :  { %5023 = vmatpush3.bf16.msra.mxu0 %v4962_v0  ;;  %4747 = vmatprep.mubr.msk.f32.mxu0 %vm5296_vm5, %v5297_v48 }
0x1948   :  { %5024 = vmatprep.subr.bf16.mxu0 %v5295_v39 }
0x194b   :  { %5026 = vmatpush3.bf16.msra.mxu0 %v4965_v5 }
0x194c   :  { %5033 = vmatprep.subr.bf16.mxu0 %v5295_v39 }
0x194e   :  { %4748 = vmatmul.mubr.msk.f32.vlgmr.msra.gmra.mrb[38].mxu0 %vm225_vm4, %v5722_v20 }
0x194f   :  { %5035 = vmatpush3.bf16.msra.mxu0 %v4962_v0  ;;  %4769 = vmatprep.mubr.msk.f32.mxu0 %vm5296_vm5, %v5297_v48 }
0x1950   :  { %5036 = vmatprep.subr.bf16.mxu0 %v5295_v39 }
0x1953   :  { %5038 = vmatpush3.bf16.msra.mxu0 %v4965_v5 }
0x1954   :  { %5045 = vmatprep.subr.bf16.mxu0 %v5295_v39 }
0x1956   :  { %4770 = vmatmul.mubr.msk.f32.vlgmr.msra.gmra.mrb[40].mxu0 %vm225_vm4, %v2399_v4 }
0x1957   :  { %5047 = vmatpush3.bf16.msra.mxu0 %v4962_v0  ;;  %4791 = vmatprep.mubr.msk.f32.mxu0 %vm5296_vm5, %v5297_v48 }
0x1958   :  { %5048 = vmatprep.subr.bf16.mxu0 %v5295_v39 }
0x195b   :  { %5050 = vmatpush3.bf16.msra.mxu0 %v4965_v5 }
0x19f1   :  { %v2468_v23 = vpop.f32.mrb[26].mxu0 }
0x19f2   :  { %v4617_v7 = vpop.f32.mrb[27].mxu0 }
0x19f8   :  { %v2544_v58 = vpop.f32.mrb[24].mxu1 }
0x19f9   :  { %v2545_v44 = vadd.f32 %v2544_v58, %v2468_v23  ;;  %v4628_v30 = vpop.f32.mrb[25].mxu1  ;;  %v2643_v8 = vpop.f32.mrb[28].mxu0 }
0x19fa   :  { %v4639_v10 = vpop.f32.mrb[29].mxu0  ;;  %v2644_v40 = vadd.f32 %v2643_v8, %v5830_v38 }
0x19fb   :  { %v2548_v12 = vadd.f32 %v2545_v44, %v5493_v45 }
0x19fc   :  { %v2648_v41 = vsel %vm2647_vm6, %v2644_v40, 0.0 }
0x19fd   :  { %5195 = vtanh.f32 %v2548_v12  ;;  %v4112_v24 = vmul.f32 -1.442695, %v2548_v12 }
0x19ff   :  { %5197 = vpow2.f32 %v4112_v24  ;;  %v2668_v24 = vsub.s32 5, %v5356_v15 }
0x1a01   :  { %v2836_v13 = vpop.f32.mrb[30].mxu0 }
0x1a02   :  { %v4661_v14 = vpop.f32.mrb[31].mxu0  ;;  %v5847_v56 = vadd.f32 %v2836_v13, %v5830_v38 }
0x1a04   :  { %v2840_v2 = vsel %vm2647_vm6, %v5847_v56, 0.0 }
0x1a07   :  { %v5196_v18 = vpop.eup %5195 }
0x1a08   :  { %2558 = vrot.lane.b32.xlu0 %v5196_v18, %s5298_s23 }
0x1a09   :  { %v3020_v19 = vpop.f32.mrb[32].mxu0  ;;  %v5198_v25 = vpop.eup %5197 }
0x1a0a   :  { %v4683_v20 = vpop.f32.mrb[33].mxu0  ;;  %v2552_v45 = vadd.f32 1.0, %v5198_v25  ;;  %v3021_v9 = vadd.f32 %v3020_v19, %v5830_v38  ;;  %v40_v19 = vld [vmem:[%s6088_s2 + $0x28] sm:$0xff] }
0x1a0b   :  { %v41_v20 = vld [vmem:[%s6088_s2 + $0x30] sm:$0xff] }
0x1a0c   :  { %5199 = vrcp.f32 %v2552_v45  ;;  %v3024_v46 = vsel %vm2647_vm6, %v3021_v9, 0.0 }
0x1a11   :  { %v3204_v17 = vpop.f32.mrb[34].mxu0 }
0x1a12   :  { %v4705_v43 = vpop.f32.mrb[35].mxu0  ;;  %v5836_v42 = vadd.f32 %v3204_v17, %v5830_v38  ;;  %v42_v17 = vld [vmem:[%s6088_s2 + $0x38] sm:$0xff] }
0x1a13   :  { %v5884_v43 = vpack.c.bf16 %v41_v20, %v40_v19 }
0x1a14   :  { %v3208_v50 = vsel %vm2647_vm6, %v5836_v42, 0.0 }
0x1a15   :  { %4969 = vmatpush3.bf16.msra.mxu1 %v5884_v43 }
0x1a16   :  { %v5200_v26 = vpop.eup %5199  ;;  %4970 = vmatprep.subr.bf16.mxu1 %v5295_v39 }
0x1a17   :  { %v2556_v29 = vmul.f32 %v5200_v26, %v5753_v51 }
0x1a19   :  { %v3388_v47 = vpop.f32.mrb[36].mxu0 }
0x1a1a   :  { %v4727_v28 = vpop.f32.mrb[37].mxu0  ;;  %v3389_v49 = vadd.f32 %v3388_v47, %v5830_v38  ;;  %v43_v47 = vld [vmem:[%s6088_s2 + $0x40] sm:$0xff] }
0x1a1b   :  { %v5890_v28 = vpack.c.bf16 %v43_v47, %v42_v17 }
0x1a1c   :  { %v3392_v52 = vsel %vm2647_vm6, %v3389_v49, 0.0 }
0x1a1d   :  { %4972 = vmatpush3.bf16.msra.mxu1 %v5890_v28 }
0x1a1e   :  { %4979 = vmatprep.subr.bf16.mxu1 %v5295_v39 }
0x1a21   :  { %v3572_v21 = vpop.f32.mrb[38].mxu0 }
0x1a22   :  { %v4749_v22 = vpop.f32.mrb[39].mxu0  ;;  %v5850_v57 = vadd.f32 %v3572_v21, %v5830_v38 }
0x1a24   :  { %v3576_v16 = vsel %vm2647_vm6, %v5850_v57, 0.0 }
0x1a29   :  { %v3756_v35 = vpop.f32.mrb[40].mxu0 }
0x1a2a   :  { %v4771_v32 = vpop.f32.mrb[41].mxu0  ;;  %v3757_v51 = vadd.f32 %v3756_v35, %v5830_v38 }
0x1a2b   :  { %v2663_v32 = vsub.s32 4, %v5356_v15 }
0x1a2c   :  { %v3760_v53 = vsel %vm2647_vm6, %v3757_v51, 0.0 }
0x1a2d   :  { %v5898_v25 = vrot.slane %v5827_v37, %v2663_v32 }
0x1a7a   :  { %v2559_v27 = vpop.permute.xlu0 %2558 }
0x1a7b   :  { %v2561_v36 = vmul.f32 %v5200_v26, %v2559_v27 }
0x1a7d   :  { %2563 = vrot.lane.b32.xlu1 %v2561_v36, %s5298_s23 }
0x1aef   :  { %v2564_v31 = vpop.permute.xlu1 %2563 }
0x1af0   :  { %v2566_v33 = vadd.f32 %v2564_v31, %v2556_v29 }
0x1af2   :  { %5201 = vtanh.f32 %v2566_v33 }
0x1afc   :  { %v5202_v34 = vpop.eup %5201 }
0x1afd   :  { %2569 = vrot.lane.b32.xlu0 %v5202_v34, %s5298_s23 }
0x1b1c   :  { %2649 = vadd.xlane.f32.xlu0 %v2648_v41 }
0x1b20   :  { %3025 = vadd.xlane.f32.xlu0 %v3024_v46 }
0x1b24   :  { %3209 = vadd.xlane.f32.xlu0 %v3208_v50 }
0x1b28   :  { %3393 = vadd.xlane.f32.xlu0 %v3392_v52 }
0x1b2c   :  { %3761 = vadd.xlane.f32.xlu0 %v3760_v53 }
0x1b6f   :  { %v2570_v54 = vpop.permute.xlu0 %2569 }
0x1b70   :  { %v2572_v55 = vmul.f32 %v5200_v26, %v2570_v54  ;;  %v5901_v26 = vrot.slane %v5827_v37, %v2668_v24 }
0x1b72   :  { %3875 = vrot.lane.b32.xlu1 %v2572_v55, %s5299_s1 }
0x1b96   :  { %2841 = vadd.xlane.f32.xlu1 %v2840_v2 }
0x1b9a   :  { %3577 = vadd.xlane.f32.xlu1 %v3576_v16 }
0x1ba9   :  { %v2650_v59 = vpop.xlane.xlu0 %2649 }
0x1baa   :  { %v2651_v60 = vmul.f32 0.03125, %v2650_v59 }
0x1bac   :  { %v2652_v61 = vsub.f32 %v2644_v40, %v2651_v60 }
0x1bad   :  { %v3026_v62 = vpop.xlane.xlu0 %3025 }
0x1bae   :  { %v3027_v63 = vmul.f32 0.03125, %v3026_v62  ;;  %v2653_v0 = vmul.f32 %v2652_v61, %v2652_v61 }
0x1bb0   :  { %v5856_v1 = vsub.f32 %v3021_v9, %v3027_v63  ;;  %v2654_v3 = vsel %vm2647_vm6, %v2653_v0, 0.0 }
0x1bb1   :  { %v5859_v4 = vpop.xlane.xlu0 %3209  ;;  %2655 = vadd.xlane.f32.xlu0 %v2654_v3 }
0x1bb2   :  { %v3029_v5 = vmul.f32 %v5856_v1, %v5856_v1 }
0x1bb4   :  { %v3030_v6 = vsel %vm2647_vm6, %v3029_v5, 0.0 }
0x1bb5   :  { %v3394_v23 = vpop.xlane.xlu0 %3393  ;;  %3031 = vadd.xlane.f32.xlu0 %v3030_v6 }
0x1bb6   :  { %v3395_v7 = vmul.f32 0.03125, %v3394_v23 }
0x1bb8   :  { %v5864_v58 = vsub.f32 %v3389_v49, %v3395_v7 }
0x1bb9   :  { %v3762_v44 = vpop.xlane.xlu0 %3761 }
0x1bba   :  { %v3763_v30 = vmul.f32 0.03125, %v3762_v44  ;;  %v3397_v8 = vmul.f32 %v5864_v58, %v5864_v58 }
0x1bbc   :  { %v5868_v10 = vsub.f32 %v3757_v51, %v3763_v30  ;;  %v3398_v12 = vsel %vm2647_vm6, %v3397_v8, 0.0 }
0x1bbd   :  { %3399 = vadd.xlane.f32.xlu0 %v3398_v12 }
0x1bbe   :  { %v3765_v13 = vmul.f32 %v5868_v10, %v5868_v10 }
0x1bc0   :  { %v3766_v14 = vsel %vm2647_vm6, %v3765_v13, 0.0 }
0x1bc1   :  { %3767 = vadd.xlane.f32.xlu0 %v3766_v14 }
0x1be4   :  { %v3876_v18 = vpop.permute.xlu1 %3875 }
0x1be5   :  { %4792 = vmatmul.mubr.msk.f32.vlgmr.msra.gmra.mrb[42].mxu0 %vm225_vm4, %v3876_v18 }
0x1c23   :  { %v2842_v59 = vpop.xlane.xlu1 %2841 }
0x1c24   :  { %v2843_v60 = vmul.f32 0.03125, %v2842_v59 }
0x1c26   :  { %v5914_v62 = vsub.f32 %v5847_v56, %v2843_v60 }
0x1c27   :  { %v3578_v63 = vpop.xlane.xlu1 %3577 }
0x1c28   :  { %v3579_v23 = vmul.f32 0.03125, %v3578_v63  ;;  %v2845_v44 = vmul.f32 %v5914_v62, %v5914_v62 }
0x1c2a   :  { %v2846_v56 = vsel %vm2647_vm6, %v2845_v44, 0.0 }
0x1c3e   :  { %v2656_v21 = vpop.xlane.xlu0 %2655 }
0x1c3f   :  { %v2657_v22 = vmul.f32 0.03125, %v2656_v21 }
0x1c41   :  { %v2658_v35 = vadd.f32 1e-05, %v2657_v22 }
0x1c42   :  { %v3032_v12 = vpop.xlane.xlu0 %3031 }
0x1c43   :  { %5203 = vrsqrt.f32 %v2658_v35  ;;  %v3033_v13 = vmul.f32 0.03125, %v3032_v12 }
0x1c45   :  { %v3034_v14 = vadd.f32 1e-05, %v3033_v13 }
0x1c4d   :  { %v5204_v45 = vpop.eup %5203 }
0x1c4e   :  { %v2660_v27 = vmul.f32 %v5204_v45, %v2652_v61  ;;  %v3211_v61 = vmul.f32 0.03125, %v5859_v4  ;;  %v5924_v4 = vsub.f32 %v5850_v57, %v3579_v23  ;;  %v3400_v57 = vpop.xlane.xlu0 %3399 }
0x1c4f   :  { %v3401_v18 = vmul.f32 0.03125, %v3400_v57 }
0x1c50   :  { %v2665_v36 = vmul.f32 %v5898_v25, %v2660_v27  ;;  %v5918_v6 = vsub.f32 %v5836_v42, %v3211_v61  ;;  %v3581_v42 = vmul.f32 %v5924_v4, %v5924_v4 }
0x1c51   :  { %v3402_v20 = vadd.f32 1e-05, %v3401_v18 }
0x1c52   :  { %v2670_v29 = vadd.f32 %v5901_v26, %v2665_v36  ;;  %v3213_v30 = vmul.f32 %v5918_v6, %v5918_v6  ;;  %v3582_v8 = vsel %vm2647_vm6, %v3581_v42, 0.0  ;;  %v3768_v27 = vpop.xlane.xlu0 %3767 }
0x1c54   :  { %v2674_v31 = vand.u32 2147483647, %v2670_v29  ;;  %v2671_v52 = vmax.f32 %v2670_v29, 0.0  ;;  %vm2672_vm8 = vcmp.ne.f32.partialorder %v2670_v29, %v2670_v29 }
0x1c56   :  { %v2675_v33 = vsub.f32 0.0, %v2674_v31 }
0x1c58   :  { %v2676_v34 = vmul.f32 1.442695, %v2675_v33  ;;  %v2693_v33 = vsub.s32 6, %v5356_v15 }
0x1c5a   :  { %5205 = vpow2.f32 %v2676_v34 }
0x1c64   :  { %v5206_v11 = vpop.eup %5205 }
0x1c65   :  { %v2678_v40 = vadd.f32 1.0, %v5206_v11  ;;  %v2681_v9 = vmul.f32 -0.5, %v5206_v11  ;;  %v2684_v46 = vand.u32 2147483647, %v5206_v11 }
0x1c67   :  { %5207 = vlog2.f32 %v2678_v40  ;;  %v2682_v41 = vadd.f32 1.0, %v2681_v9  ;;  %vm2685_vm7 = vcmp.lt.f32.partialorder %v2684_v46, 0.0004427343  ;;  %v5946_v46 = vrot.slane %v5827_v37, %v2693_v33 }
0x1c69   :  { %v2683_v51 = vmul.f32 %v5206_v11, %v2682_v41  ;;  %v3769_v11 = vmul.f32 0.03125, %v3768_v27 }
0x1c71   :  { %v5208_v49 = vpop.eup %5207 }
0x1c72   :  { %v2680_v50 = vmul.f32 0.6931472, %v5208_v49 }
0x1c74   :  { %v2686_v53 = vsel %vm2685_vm7, %v2683_v51, %v2680_v50  ;;  %v3770_v51 = vadd.f32 1e-05, %v3769_v11 }
0x1c75   :  { %v2687_v54 = vadd.f32 %v2686_v53, %v2671_v52 }
0x1c77   :  { %v2688_v55 = vsel %vm2672_vm8, %v2670_v29, %v2687_v54 }
0x1c78   :  { %5209 = vtanh.f32 %v2688_v55 }
0x1c79   :  { %5211 = vrsqrt.f32 %v3034_v14 }
0x1c7a   :  { %5213 = vrsqrt.f32 %v3402_v20 }
0x1c82   :  { %v5210_v2 = vpop.eup %5209 }
0x1c83   :  { %v2690_v16 = vmul.f32 %v5210_v2, %v2670_v29  ;;  %v5212_v19 = vpop.eup %5211 }
0x1c84   :  { %v3036_v17 = vmul.f32 %v5212_v19, %v5856_v1  ;;  %v5214_v49 = vpop.eup %5213 }
0x1c85   :  { %4649 = vmatmul.mubr.msk.f32.vlgmr.msra.gmra.mrb[26].mxu1 %vm225_vm4, %v2690_v16  ;;  %v3404_v15 = vmul.f32 %v5214_v49, %v5864_v58 }
0x1c86   :  { %4981 = vmatpush3.bf16.msra.mxu1 %v5884_v43  ;;  %4670 = vmatprep.mubr.msk.f32.mxu1 %vm5296_vm5, %v5297_v48  ;;  %v3037_v35 = vmul.f32 %v3036_v17, %v5898_v25 }
0x1c87   :  { %4982 = vmatprep.subr.bf16.mxu1 %v5295_v39  ;;  %v3405_v59 = vmul.f32 %v3404_v15, %v5898_v25 }
0x1c88   :  { %v5941_v31 = vadd.f32 %v3037_v35, %v5901_v26 }
0x1c89   :  { %v5957_v58 = vadd.f32 %v3405_v59, %v5901_v26 }
0x1c8a   :  { %4984 = vmatpush3.bf16.msra.mxu1 %v5890_v28  ;;  %v3042_v9 = vand.u32 2147483647, %v5941_v31  ;;  %vm3040_vm13 = vcmp.ne.f32.partialorder %v5941_v31, %v5941_v31 }
0x1c8b   :  { %4991 = vmatprep.subr.bf16.mxu1 %v5295_v39  ;;  %vm3408_vm1 = vcmp.ne.f32.partialorder %v5957_v58, %v5957_v58 }
0x1c8c   :  { %v3043_v54 = vsub.f32 0.0, %v3042_v9 }
0x1c8e   :  { %v3044_v16 = vmul.f32 1.442695, %v3043_v54 }
0x1cb8   :  { %v3945_v0 = vpop.f32.mrb[42].mxu0 }
0x1cb9   :  { %v3946_v3 = vadd.f32 %v3945_v0, %v5830_v38  ;;  %v4793_v5 = vpop.f32.mrb[43].mxu0  ;;  %v3214_v38 = vsel %vm2647_vm6, %v3213_v30, 0.0 }
0x1cbb   :  { %v3949_v7 = vsel %vm2647_vm6, %v3946_v3, 0.0 }
0x1cbc   :  { %3950 = vadd.xlane.f32.xlu1 %v3949_v7 }
0x1cc0   :  { %2847 = vadd.xlane.f32.xlu1 %v2846_v56 }
0x1cc4   :  { %3215 = vadd.xlane.f32.xlu1 %v3214_v38 }
0x1cc8   :  { %3583 = vadd.xlane.f32.xlu1 %v3582_v8 }
0x1d49   :  { %v3951_v47 = vpop.xlane.xlu1 %3950 }
0x1d4a   :  { %v3952_v21 = vmul.f32 0.03125, %v3951_v47 }
0x1d4c   :  { %v5934_v22 = vsub.f32 %v3946_v3, %v3952_v21 }
0x1d4d   :  { %v2848_v32 = vpop.xlane.xlu1 %2847 }
0x1d4e   :  { %v2849_v24 = vmul.f32 0.03125, %v2848_v32  ;;  %v3954_v45 = vmul.f32 %v5934_v22, %v5934_v22 }
0x1d50   :  { %v2850_v36 = vadd.f32 1e-05, %v2849_v24  ;;  %v3955_v29 = vsel %vm2647_vm6, %v3954_v45, 0.0 }
0x1d51   :  { %3956 = vadd.xlane.f32.xlu1 %v3955_v29  ;;  %v3216_v1 = vpop.xlane.xlu1 %3215 }
0x1d52   :  { %5215 = vrsqrt.f32 %v2850_v36  ;;  %v3217_v34 = vmul.f32 0.03125, %v3216_v1 }
0x1d54   :  { %v3218_v40 = vadd.f32 1e-05, %v3217_v34 }
0x1d55   :  { %v3584_v41 = vpop.xlane.xlu1 %3583 }
0x1d56   :  { %5217 = vrsqrt.f32 %v3218_v40  ;;  %v3585_v50 = vmul.f32 0.03125, %v3584_v41 }
0x1d58   :  { %v3586_v52 = vadd.f32 1e-05, %v3585_v50  ;;  %v2764_v53 = vpop.f32.mrb[26].mxu1 }
0x1d59   :  { %v2765_v55 = vadd.f32 %v2764_v53, %v5946_v46  ;;  %v4650_v2 = vpop.f32.mrb[27].mxu1 }
0x1d5a   :  { %5219 = vrsqrt.f32 %v3586_v52 }
0x1d5b   :  { %5221 = vrsqrt.f32 %v3770_v51  ;;  %2769 = vst.msk [vmem:[%s6090_s4] sm:$0x3] %vm2768_vm9, %v2765_v55  ;;  %vm3136_vm9 = vcmask 91200  }
0x1d5c   :  { %v5216_v37 = vpop.eup %5215  ;;  %5223 = vpow2.f32 %v3044_v16 }
0x1d5d   :  { %v2852_v60 = vmul.f32 %v5216_v37, %v5914_v62  ;;  %v3410_v62 = vand.u32 2147483647, %v5957_v58 }
0x1d5f   :  { %v2853_v61 = vmul.f32 %v2852_v60, %v5898_v25  ;;  %v3411_v13 = vsub.f32 0.0, %v3410_v62 }
0x1d60   :  { %v5218_v63 = vpop.eup %5217 }
0x1d61   :  { %v5960_v0 = vadd.f32 %v2853_v61, %v5901_v26  ;;  %v3220_v3 = vmul.f32 %v5218_v63, %v5918_v6  ;;  %v3412_v17 = vmul.f32 1.442695, %v3411_v13  ;;  %v3039_v63 = vmax.f32 %v5941_v31, 0.0 }
0x1d63   :  { %v2858_v5 = vand.u32 2147483647, %v5960_v0  ;;  %v3221_v23 = vmul.f32 %v3220_v3, %v5898_v25  ;;  %v2855_v37 = vmax.f32 %v5960_v0, 0.0  ;;  %vm2856_vm12 = vcmp.ne.f32.partialorder %v5960_v0, %v5960_v0 }
0x1d64   :  { %v5220_v7 = vpop.eup %5219 }
0x1d65   :  { %v5222_v44 = vpop.eup %5221  ;;  %v2859_v56 = vsub.f32 0.0, %v2858_v5  ;;  %v5967_v30 = vadd.f32 %v3221_v23, %v5901_v26  ;;  %v3588_v38 = vmul.f32 %v5220_v7, %v5924_v4 }
0x1d66   :  { %v3772_v6 = vmul.f32 %v5222_v44, %v5868_v10  ;;  %v5224_v18 = vpop.eup %5223 }
0x1d67   :  { %v2860_v42 = vmul.f32 1.442695, %v2859_v56  ;;  %v3226_v8 = vand.u32 2147483647, %v5967_v30  ;;  %v3589_v12 = vmul.f32 %v3588_v38, %v5898_v25  ;;  %v3046_v47 = vadd.f32 1.0, %v5224_v18 }
0x1d68   :  { %v3773_v20 = vmul.f32 %v3772_v6, %v5898_v25  ;;  %v3049_v33 = vmul.f32 -0.5, %v5224_v18  ;;  %v3052_v50 = vand.u32 2147483647, %v5224_v18  ;;  %vm3224_vm15 = vcmp.ne.f32.partialorder %v5967_v30, %v5967_v30 }
0x1d69   :  { %5225 = vpow2.f32 %v2860_v42  ;;  %v3227_v14 = vsub.f32 0.0, %v3226_v8  ;;  %v5974_v57 = vadd.f32 %v3589_v12, %v5901_v26 }
0x1d6a   :  { %v5979_v21 = vadd.f32 %v3773_v20, %v5901_v26  ;;  %v3050_v41 = vadd.f32 1.0, %v3049_v33  ;;  %vm3053_vm11 = vcmp.lt.f32.partialorder %v3052_v50, 0.0004427343 }
0x1d6b   :  { %v3228_v19 = vmul.f32 1.442695, %v3227_v14  ;;  %v3594_v4 = vand.u32 2147483647, %v5974_v57  ;;  %v3223_v14 = vmax.f32 %v5967_v30, 0.0  ;;  %vm3592_vm3 = vcmp.ne.f32.partialorder %v5974_v57, %v5974_v57 }
0x1d6c   :  { %v3778_v32 = vand.u32 2147483647, %v5979_v21  ;;  %v3051_v55 = vmul.f32 %v5224_v18, %v3050_v41  ;;  %vm3776_vm7 = vcmp.ne.f32.partialorder %v5979_v21, %v5979_v21 }
0x1d6d   :  { %5227 = vpow2.f32 %v3228_v19  ;;  %v3595_v10 = vsub.f32 0.0, %v3594_v4 }
0x1d6e   :  { %5229 = vpow2.f32 %v3412_v17  ;;  %v3779_v36 = vsub.f32 0.0, %v3778_v32 }
0x1d6f   :  { %5231 = vlog2.f32 %v3046_v47  ;;  %v3596_v45 = vmul.f32 1.442695, %v3595_v10 }
0x1d70   :  { %v3780_v40 = vmul.f32 1.442695, %v3779_v36  ;;  %v3407_v36 = vmax.f32 %v5957_v58, 0.0 }
0x1d73   :  { %v5226_v35 = vpop.eup %5225 }
0x1d74   :  { %v2862_v24 = vadd.f32 1.0, %v5226_v35  ;;  %v2865_v1 = vmul.f32 -0.5, %v5226_v35  ;;  %v2868_v49 = vand.u32 2147483647, %v5226_v35 }
0x1d76   :  { %5233 = vlog2.f32 %v2862_v24  ;;  %v2866_v9 = vadd.f32 1.0, %v2865_v1  ;;  %vm2869_vm10 = vcmp.lt.f32.partialorder %v2868_v49, 0.0004427343 }
0x1d77   :  { %v5228_v27 = vpop.eup %5227  ;;  %5235 = vpow2.f32 %v3596_v45 }
0x1d78   :  { %v3230_v29 = vadd.f32 1.0, %v5228_v27  ;;  %v5230_v34 = vpop.eup %5229  ;;  %v2867_v15 = vmul.f32 %v5226_v35, %v2866_v9  ;;  %v3233_v2 = vmul.f32 -0.5, %v5228_v27  ;;  %v3236_v44 = vand.u32 2147483647, %v5228_v27 }
0x1d79   :  { %v5232_v11 = vpop.eup %5231  ;;  %v3414_v51 = vadd.f32 1.0, %v5230_v34  ;;  %v3417_v42 = vmul.f32 -0.5, %v5230_v34  ;;  %v3420_v20 = vand.u32 2147483647, %v5230_v34 }
0x1d7a   :  { %5237 = vlog2.f32 %v3230_v29  ;;  %v3048_v52 = vmul.f32 0.6931472, %v5232_v11  ;;  %v3234_v5 = vadd.f32 1.0, %v3233_v2  ;;  %vm3237_vm14 = vcmp.lt.f32.partialorder %v3236_v44, 0.0004427343 }
0x1d7b   :  { %5239 = vpow2.f32 %v3780_v40  ;;  %v3418_v18 = vadd.f32 1.0, %v3417_v42  ;;  %vm3421_vm0 = vcmp.lt.f32.partialorder %v3420_v20, 0.0004427343 }
0x1d7c   :  { %5241 = vlog2.f32 %v3414_v51  ;;  %v3054_v60 = vsel %vm3053_vm11, %v3051_v55, %v3048_v52  ;;  %v3235_v38 = vmul.f32 %v5228_v27, %v3234_v5  ;;  %v3591_v51 = vmax.f32 %v5974_v57, 0.0 }
0x1d7d   :  { %v3055_v7 = vadd.f32 %v3054_v60, %v3039_v63  ;;  %v3419_v10 = vmul.f32 %v5230_v34, %v3418_v18  ;;  %vm3504_vm11 = vcmask 156800  }
0x1d7f   :  { %v3056_v12 = vsel %vm3040_vm13, %v5941_v31, %v3055_v7  ;;  %vm3872_vm13 = vcmask 222400  }
0x1d80   :  { %v5234_v53 = vpop.eup %5233 }
0x1d81   :  { %v2864_v54 = vmul.f32 0.6931472, %v5234_v53  ;;  %v5236_v16 = vpop.eup %5235 }
0x1d82   :  { %v3598_v62 = vadd.f32 1.0, %v5236_v16  ;;  %v3601_v35 = vmul.f32 -0.5, %v5236_v16  ;;  %v3604_v1 = vand.u32 2147483647, %v5236_v16 }
0x1d83   :  { %v2870_v59 = vsel %vm2869_vm10, %v2867_v15, %v2864_v54  ;;  %vm3320_vm10 = vcmask 124000  }
0x1d84   :  { %v5238_v61 = vpop.eup %5237  ;;  %v2871_v3 = vadd.f32 %v2870_v59, %v2855_v37  ;;  %v3602_v29 = vadd.f32 1.0, %v3601_v35  ;;  %vm3605_vm2 = vcmp.lt.f32.partialorder %v3604_v1, 0.0004427343  ;;  %v3775_v59 = vmax.f32 %v5979_v21, 0.0 }
0x1d85   :  { %v3232_v56 = vmul.f32 0.6931472, %v5238_v61  ;;  %v5240_v8 = vpop.eup %5239 }
0x1d86   :  { %v2872_v23 = vsel %vm2856_vm12, %v5960_v0, %v2871_v3  ;;  %v5242_v13 = vpop.eup %5241  ;;  %v3782_v17 = vadd.f32 1.0, %v5240_v8  ;;  %v3603_v11 = vmul.f32 %v5236_v16, %v3602_v29  ;;  %v3785_v40 = vmul.f32 -0.5, %v5240_v8 }
0x1d87   :  { %5243 = vtanh.f32 %v2872_v23  ;;  %v3238_v6 = vsel %vm3237_vm14, %v3235_v38, %v3232_v56  ;;  %v3416_v4 = vmul.f32 0.6931472, %v5242_v13  ;;  %v3788_v53 = vand.u32 2147483647, %v5240_v8 }
0x1d88   :  { %5245 = vlog2.f32 %v3598_v62  ;;  %v3239_v19 = vadd.f32 %v3238_v6, %v3223_v14  ;;  %v3786_v52 = vadd.f32 1.0, %v3785_v40  ;;  %vm3688_vm12 = vcmask 189600  }
0x1d89   :  { %5247 = vtanh.f32 %v3056_v12  ;;  %v3422_v45 = vsel %vm3421_vm0, %v3419_v10, %v3416_v4  ;;  %vm3789_vm6 = vcmp.lt.f32.partialorder %v3788_v53, 0.0004427343  ;;  %vm4061_vm14 = vcmask 255200  }
0x1d8a   :  { %v3240_v24 = vsel %vm3224_vm15, %v5967_v30, %v3239_v19  ;;  %5249 = vlog2.f32 %v3782_v17  ;;  %v3787_v55 = vmul.f32 %v5240_v8, %v3786_v52 }
0x1d8b   :  { %5251 = vtanh.f32 %v3240_v24 }
0x1d91   :  { %v5244_v47 = vpop.eup %5243 }
0x1d92   :  { %v2874_v32 = vmul.f32 %v5244_v47, %v5960_v0  ;;  %v5246_v27 = vpop.eup %5245  ;;  %v3423_v0 = vadd.f32 %v3422_v45, %v3407_v36 }
0x1d93   :  { %v5248_v33 = vpop.eup %5247  ;;  %v3600_v34 = vmul.f32 0.6931472, %v5246_v27 }
0x1d94   :  { %4671 = vmatmul.mubr.msk.f32.vlgmr.msra.gmra.mrb[28].mxu1 %vm225_vm4, %v2874_v32  ;;  %v3058_v9 = vmul.f32 %v5248_v33, %v5941_v31  ;;  %v3424_v41 = vsel %vm3408_vm1, %v5957_v58, %v3423_v0  ;;  %v5250_v50 = vpop.eup %5249 }
0x1d95   :  { %4993 = vmatpush3.bf16.msra.mxu1 %v5884_v43  ;;  %4692 = vmatprep.mubr.msk.f32.mxu1 %vm5296_vm5, %v5297_v48  ;;  %v3606_v49 = vsel %vm3605_vm2, %v3603_v11, %v3600_v34  ;;  %5253 = vtanh.f32 %v3424_v41  ;;  %v5252_v54 = vpop.eup %5251  ;;  %v3784_v15 = vmul.f32 0.6931472, %v5250_v50 }
0x1d96   :  { %4994 = vmatprep.subr.bf16.mxu1 %v5295_v39  ;;  %v3607_v31 = vadd.f32 %v3606_v49, %v3591_v51  ;;  %v3242_v2 = vmul.f32 %v5252_v54, %v5967_v30 }
0x1d97   :  { %v3790_v16 = vsel %vm3789_vm6, %v3787_v55, %v3784_v15 }
0x1d98   :  { %v3608_v37 = vsel %vm3592_vm3, %v5974_v57, %v3607_v31  ;;  %v3791_v60 = vadd.f32 %v3790_v16, %v3775_v59 }
0x1d99   :  { %4996 = vmatpush3.bf16.msra.mxu1 %v5890_v28  ;;  %5255 = vtanh.f32 %v3608_v37 }
0x1d9a   :  { %5003 = vmatprep.subr.bf16.mxu1 %v5295_v39  ;;  %v3792_v63 = vsel %vm3776_vm7, %v5979_v21, %v3791_v60 }
0x1d9b   :  { %5257 = vtanh.f32 %v3792_v63 }
0x1d9c   :  { %4693 = vmatmul.mubr.msk.f32.vlgmr.msra.gmra.mrb[30].mxu1 %vm225_vm4, %v3058_v9 }
0x1d9d   :  { %5005 = vmatpush3.bf16.msra.mxu1 %v5884_v43  ;;  %4714 = vmatprep.mubr.msk.f32.mxu1 %vm5296_vm5, %v5297_v48 }
0x1d9e   :  { %5006 = vmatprep.subr.bf16.mxu1 %v5295_v39 }
0x1d9f   :  { %v5254_v30 = vpop.eup %5253 }
0x1da0   :  { %v3426_v61 = vmul.f32 %v5254_v30, %v5957_v58 }
0x1da1   :  { %5008 = vmatpush3.bf16.msra.mxu1 %v5890_v28 }
0x1da2   :  { %5015 = vmatprep.subr.bf16.mxu1 %v5295_v39 }
0x1da3   :  { %v5256_v3 = vpop.eup %5255 }
0x1da4   :  { %4715 = vmatmul.mubr.msk.f32.vlgmr.msra.gmra.mrb[32].mxu1 %vm225_vm4, %v3242_v2  ;;  %v3610_v5 = vmul.f32 %v5256_v3, %v5974_v57 }
0x1da5   :  { %5017 = vmatpush3.bf16.msra.mxu1 %v5884_v43  ;;  %4736 = vmatprep.mubr.msk.f32.mxu1 %vm5296_vm5, %v5297_v48  ;;  %v5258_v58 = vpop.eup %5257 }
0x1da6   :  { %5018 = vmatprep.subr.bf16.mxu1 %v5295_v39  ;;  %v3794_v23 = vmul.f32 %v5258_v58, %v5979_v21 }
0x1da9   :  { %5020 = vmatpush3.bf16.msra.mxu1 %v5890_v28 }
0x1daa   :  { %5027 = vmatprep.subr.bf16.mxu1 %v5295_v39 }
0x1dac   :  { %4737 = vmatmul.mubr.msk.f32.vlgmr.msra.gmra.mrb[34].mxu1 %vm225_vm4, %v3426_v61 }
0x1dad   :  { %5029 = vmatpush3.bf16.msra.mxu1 %v5884_v43  ;;  %4758 = vmatprep.mubr.msk.f32.mxu1 %vm5296_vm5, %v5297_v48 }
0x1dae   :  { %5030 = vmatprep.subr.bf16.mxu1 %v5295_v39 }
0x1db1   :  { %5032 = vmatpush3.bf16.msra.mxu1 %v5890_v28 }
0x1db2   :  { %5039 = vmatprep.subr.bf16.mxu1 %v5295_v39 }
0x1db4   :  { %4759 = vmatmul.mubr.msk.f32.vlgmr.msra.gmra.mrb[36].mxu1 %vm225_vm4, %v3610_v5 }
0x1db5   :  { %5041 = vmatpush3.bf16.msra.mxu1 %v5884_v43  ;;  %4780 = vmatprep.mubr.msk.f32.mxu1 %vm5296_vm5, %v5297_v48 }
0x1db6   :  { %5042 = vmatprep.subr.bf16.mxu1 %v5295_v39 }
0x1db9   :  { %5044 = vmatpush3.bf16.msra.mxu1 %v5890_v28 }
0x1dba   :  { %5051 = vmatprep.subr.bf16.mxu1 %v5295_v39 }
0x1dbc   :  { %4781 = vmatmul.mubr.msk.f32.vlgmr.msra.gmra.mrb[38].mxu1 %vm225_vm4, %v3794_v23 }
0x1dbd   :  { %5053 = vmatpush3.bf16.msra.mxu1 %v5884_v43  ;;  %4802 = vmatprep.mubr.msk.f32.mxu1 %vm5296_vm5, %v5297_v48 }
0x1dbe   :  { %5054 = vmatprep.subr.bf16.mxu1 %v5295_v39 }
0x1dc1   :  { %5056 = vmatpush3.bf16.msra.mxu1 %v5890_v28 }
0x1dde   :  { %v3957_v57 = vpop.xlane.xlu1 %3956 }
0x1ddf   :  { %v3958_v7 = vmul.f32 0.03125, %v3957_v57 }
0x1de1   :  { %v3959_v44 = vadd.f32 1e-05, %v3958_v7 }
0x1de3   :  { %5259 = vrsqrt.f32 %v3959_v44 }
0x1ded   :  { %v5260_v62 = vpop.eup %5259 }
0x1dee   :  { %v3961_v21 = vmul.f32 %v5260_v62, %v5934_v22 }
0x1df0   :  { %v3962_v56 = vmul.f32 %v3961_v21, %v5898_v25 }
0x1df2   :  { %v3963_v38 = vadd.f32 %v3962_v56, %v5901_v26 }
0x1df4   :  { %v3967_v42 = vand.u32 2147483647, %v3963_v38  ;;  %v3964_v19 = vmax.f32 %v3963_v38, 0.0  ;;  %vm3965_vm8 = vcmp.ne.f32.partialorder %v3963_v38, %v3963_v38 }
0x1df6   :  { %v3968_v43 = vsub.f32 0.0, %v3967_v42 }
0x1df8   :  { %v3969_v8 = vmul.f32 1.442695, %v3968_v43 }
0x1dfa   :  { %5261 = vpow2.f32 %v3969_v8 }
0x1e04   :  { %v5262_v48 = vpop.eup %5261 }
0x1e05   :  { %v3971_v12 = vadd.f32 1.0, %v5262_v48  ;;  %v3974_v39 = vmul.f32 -0.5, %v5262_v48  ;;  %v3977_v6 = vand.u32 2147483647, %v5262_v48 }
0x1e07   :  { %5263 = vlog2.f32 %v3971_v12  ;;  %v3975_v28 = vadd.f32 1.0, %v3974_v39  ;;  %vm3978_vm5 = vcmp.lt.f32.partialorder %v3977_v6, 0.0004427343 }
0x1e09   :  { %v3976_v18 = vmul.f32 %v5262_v48, %v3975_v28 }
0x1e11   :  { %v5264_v13 = vpop.eup %5263 }
0x1e12   :  { %v3973_v14 = vmul.f32 0.6931472, %v5264_v13 }
0x1e14   :  { %v3979_v22 = vsel %vm3978_vm5, %v3976_v18, %v3973_v14 }
0x1e15   :  { %v3980_v20 = vadd.f32 %v3979_v22, %v3964_v19 }
0x1e17   :  { %v3981_v25 = vsel %vm3965_vm8, %v3963_v38, %v3980_v20 }
0x1e18   :  { %5265 = vtanh.f32 %v3981_v25 }
0x1e22   :  { %v5266_v26 = vpop.eup %5265 }
0x1e23   :  { %v3983_v17 = vmul.f32 %v5266_v26, %v3963_v38 }
0x1e25   :  { %4803 = vmatmul.mubr.msk.f32.vlgmr.msra.gmra.mrb[40].mxu1 %vm225_vm4, %v3983_v17  ;;  %vm2952_vm4 = vcmask 58400  }
0x1e67   :  { %v2944_v4 = vpop.f32.mrb[28].mxu1 }
0x1e68   :  { %v2945_v47 = vadd.f32 %v2944_v4, %v5946_v46  ;;  %v4672_v10 = vpop.f32.mrb[29].mxu1 }
0x1e6a   :  { %2949 = vrot.lane.b32.xlu0 %v2945_v47, %s5300_s5 }
0x1e6f   :  { %v3128_v35 = vpop.f32.mrb[30].mxu1 }
0x1e70   :  { %v3129_v32 = vadd.f32 %v3128_v35, %v5946_v46  ;;  %v4694_v24 = vpop.f32.mrb[31].mxu1 }
0x1e72   :  { %3133 = vrot.lane.b32.xlu1 %v3129_v32, %s5294_s26  ;;  %s5304_s26 = smov 24  }
0x1e77   :  { %v3312_v45 = vpop.f32.mrb[32].mxu1 }
0x1e78   :  { %v3313_v27 = vadd.f32 %v3312_v45, %v5946_v46  ;;  %v4716_v36 = vpop.f32.mrb[33].mxu1 }
0x1e7a   :  { %3317 = vrot.lane.b32.xlu1 %v3313_v27, %s5301_s6 }
0x1e7f   :  { %v3496_v29 = vpop.f32.mrb[34].mxu1 }
0x1e80   :  { %v3497_v0 = vadd.f32 %v3496_v29, %v5946_v46  ;;  %v4738_v1 = vpop.f32.mrb[35].mxu1 }
0x1e82   :  { %3501 = vrot.lane.b32.xlu1 %v3497_v0, %s5302_s3 }
0x1e87   :  { %v3680_v33 = vpop.f32.mrb[36].mxu1 }
0x1e88   :  { %v3681_v34 = vadd.f32 %v3680_v33, %v5946_v46  ;;  %v4760_v11 = vpop.f32.mrb[37].mxu1 }
0x1e8a   :  { %3685 = vrot.lane.b32.xlu0 %v3681_v34, %s5303_s7 }
0x1e8f   :  { %v3864_v40 = vpop.f32.mrb[38].mxu1 }
0x1e90   :  { %v3865_v9 = vadd.f32 %v3864_v40, %v5946_v46  ;;  %v4782_v41 = vpop.f32.mrb[39].mxu1 }
0x1e92   :  { %3869 = vrot.lane.b32.xlu1 %v3865_v9, %s5304_s26 }
0x1edc   :  { %v2950_v49 = vpop.permute.xlu0 %2949 }
0x1edd   :  { %2953 = vst.msk [vmem:[%s6090_s4] sm:$0x3] %vm2952_vm4, %v2950_v49 }
0x1ee4   :  { %v3134_v50 = vpop.permute.xlu1 %3133 }
0x1ee5   :  { %3137 = vst.msk [vmem:[%s6090_s4] sm:$0x3] %vm3136_vm9, %v3134_v50 }
0x1eec   :  { %v3318_v51 = vpop.permute.xlu1 %3317 }
0x1eed   :  { %3321 = vst.msk [vmem:[%s6090_s4] sm:$0x3] %vm3320_vm10, %v3318_v51 }
0x1ef4   :  { %v3502_v52 = vpop.permute.xlu1 %3501 }
0x1ef5   :  { %3505 = vst.msk [vmem:[%s6090_s4] sm:$0x3] %vm3504_vm11, %v3502_v52 }
0x1ef8   :  { %v4053_v31 = vpop.f32.mrb[40].mxu1 }
0x1ef9   :  { %v4054_v53 = vadd.f32 %v4053_v31, %v5946_v46  ;;  %v4804_v54 = vpop.f32.mrb[41].mxu1 }
0x1efb   :  { %4058 = vrot.lane.b32.xlu0 %v4054_v53, %s5305_s14 }
0x1efc   :  { %v3686_v15 = vpop.permute.xlu0 %3685 }
0x1efd   :  { %3689 = vst.msk [vmem:[%s6090_s4] sm:$0x3] %vm3688_vm12, %v3686_v15 }
0x1f04   :  { %v3870_v55 = vpop.permute.xlu1 %3869 }
0x1f05   :  { %3873 = vst.msk [vmem:[%s6090_s4] sm:$0x3] %vm3872_vm13, %v3870_v55 }
0x1f6d   :  { %v4059_v2 = vpop.permute.xlu0 %4058 }
0x1f6e   :  { %4062 = vst.msk [vmem:[%s6090_s4] sm:$0x3] %vm4061_vm14, %v4059_v2 }
0x1f6f   :  { %4067 = vsyncpa [#allocation3], 1 }

</bundles_post_ra>
